<compile_context>
chip_gen: v6e
topology: v6e:2x2x1
jax: 0.10.0
libtpu: 0.0.40
codegen_flags: <defaults>
</compile_context>

<pallas_src>
import math
from functools import partial

import jax
import jax.numpy as jnp
from jax.experimental import pallas as pl
from jax.experimental.pallas import tpu as pltpu


COMPUTE_DTYPE = jnp.bfloat16       # MXU input / stored-weight dtype (f32 for strict parity)
_TARGET_BLOCK_ROWS = 512           # ~rows (tn * L) per activation tile in the layer stack
_TARGET_HEAD_ROWS = 512            # ~rows (B * tt) per LM-head tile
_TARGET_VOCAB_TILE = 2048          # lane-dense vocab tile for the LM head


def _vmem_limit_bytes():
    """Chip-aware VMEM budget: ~56 MiB on v7x (64 MiB/TC), up to 112 MiB on v5e/v6e."""
    cap = 64 * 1024 * 1024
    try:
        cap = int(pltpu.get_tpu_info().vmem_capacity_bytes)
    except Exception:   # conservative default if the query is unavailable
        pass
    return max(32 * 1024 * 1024, min(cap - 8 * 1024 * 1024, 112 * 1024 * 1024))


# ----------------------------- tiling helpers --------------------------------

def _largest_divisor(dim, limit, multiple):
    best = 0
    for cand in range(multiple, min(limit, dim) + 1, multiple):
        if dim % cand == 0:
            best = cand
    return best


def _pick_tile(dim, limit, multiples=(1,), full_if_none=True):
    """Largest divisor of `dim` <= limit that is a multiple of the first workable
    entry of `multiples`; falls back to the full dim (always a legal block)."""
    for m in multiples:
        d = _largest_divisor(dim, limit, m)
        if d:
            return d
    return dim if full_if_none else 1


# ----------------------------- in-kernel helpers -----------------------------

def _layer_norm(x, g, b, eps=1e-5):
    # PyTorch nn.LayerNorm semantics (biased variance, eps inside rsqrt).
    mu = jnp.mean(x, axis=-1, keepdims=True)
    var = jnp.mean((x - mu) ** 2, axis=-1, keepdims=True)
    return (x - mu) * jax.lax.rsqrt(var + eps) * g + b


def _erf_f32(x):
    # Abramowitz & Stegun 7.1.26, |abs err| <= 1.5e-7: reproduces PyTorch's exact
    # erf-based GELU with only exp/mul/add (exp lowers to the EUP slot).
    a1, a2, a3, a4, a5 = 0.254829592, -0.284496736, 1.421413741, -1.453152027, 1.061405429
    p = 0.3275911
    ax = jnp.abs(x)
    t = 1.0 / (1.0 + p * ax)
    poly = ((((a5 * t + a4) * t + a3) * t + a2) * t + a1) * t
    y = 1.0 - poly * jnp.exp(-ax * ax)
    return jnp.where(x < 0, -y, y)


def _gelu_exact(x):
    return 0.5 * x * (1.0 + _erf_f32(x * (1.0 / math.sqrt(2.0))))


# ----------------------------- Pallas kernels --------------------------------

def make_stack_kernel(num_heads, compute_dtype):
    def stack_kernel(x_ref,
                     wqkv_ref, bqkv_ref, wo_ref, bo_ref,
                     g1_ref, b1_ref,
                     w1_ref, bf1_ref, w2_ref, bf2_ref,
                     g2_ref, b2_ref,
                     out_ref,
                     act_ref, ctx_ref):
        # x_ref / out_ref block: (tn, L, E) with N = T (attention batch), L = B.
        # act_ref carries the f32 residual stream across the layer grid axis;
        # ctx_ref assembles per-head context at lane offsets h*Dh.
        layer = pl.program_id(1)
        tn, L, E = x_ref.shape
        H = num_heads
        Dh = E // H
        rows = tn * L

        @pl.when(layer == 0)
        def _():
            act_ref[...] = x_ref[...]          # seed the VMEM-resident carry

        x2 = act_ref[...].reshape(rows, E)     # f32 residual stream

        def mm(a, w_ref_, b_ref_):
            w = w_ref_[0]                      # (K, N) bf16 layer-l slice, already in VMEM
            y = jnp.dot(a.astype(w.dtype), w, preferred_element_type=jnp.float32)
            return y + b_ref_[0]               # f32 bias broadcast

        # ---- fused QKV projection; 1/sqrt(Dh) folded into q once ----
        qkv = mm(x2, wqkv_ref, bqkv_ref)                              # (rows, 3E) f32
        scale = 1.0 / math.sqrt(Dh)
        q = (qkv[:, :E] * scale).astype(compute_dtype).reshape(tn, L, E)
        k = qkv[:, E:2 * E].astype(compute_dtype).reshape(tn, L, E)
        v = qkv[:, 2 * E:].astype(compute_dtype).reshape(tn, L, E)

        # ---- multi-head self-attention (bidirectional over L = B, no mask) ----
        for h in range(H):                     # static loop: one batch dim per dot
            sl = slice(h * Dh, (h + 1) * Dh)
            s = jnp.einsum('nld,nmd->nlm', q[:, :, sl], k[:, :, sl],
                           preferred_element_type=jnp.float32)
            m = jnp.max(s, axis=-1, keepdims=True)
            e = jnp.exp(s - m)
            inv = pl.reciprocal(jnp.sum(e, axis=-1, keepdims=True), approx=True)
            pmat = (e * inv).astype(compute_dtype)
            ctx_ref[:, :, sl] = jnp.einsum(
                'nlm,nmd->nld', pmat, v[:, :, sl],
                preferred_element_type=jnp.float32).astype(compute_dtype)

        attn = mm(ctx_ref[...].reshape(rows, E), wo_ref, bo_ref)

        # ---- post-norm residual 1 ----
        h1 = _layer_norm(x2 + attn, g1_ref[0], b1_ref[0])

        # ---- feed-forward: Linear -> GELU(exact) -> Linear ----
        f = mm(h1, w1_ref, bf1_ref)
        f = _gelu_exact(f)
        f = mm(f, w2_ref, bf2_ref)

        # ---- post-norm residual 2 ----
        y = _layer_norm(h1 + f, g2_ref[0], b2_ref[0]).reshape(tn, L, E)
        act_ref[...] = y

        @pl.when(layer == pl.num_programs(1) - 1)
        def _():
            out_ref[...] = y.astype(out_ref.dtype)

    return stack_kernel


def _head_kernel(x_ref, g_ref, b_ref, w_ref, out_ref):
    # x_ref: (tt, B, E) slab of the (T, B, E) activations; out_ref: (B, tt, tv)
    # slab of the (B, T, V) logits.  Final LayerNorm and the (T,B)->(B,T)
    # relayout are folded in here (recomputed per vocab tile; cheap vs matmul).
    xn = _layer_norm(x_ref[...], g_ref[...], b_ref[...])              # (tt, B, E) f32
    xn = jnp.transpose(xn, (1, 0, 2))                                 # (B, tt, E)
    Bb, tt, E = xn.shape
    w = w_ref[...]                                                    # (E, tv) bf16
    y = jnp.dot(xn.reshape(Bb * tt, E).astype(w.dtype), w,
                preferred_element_type=jnp.float32)
    out_ref[...] = y.reshape(Bb, tt, -1)


# ----------------------------- wrappers ---------------------------------------

def transformer_stack(x, p, *, num_heads, compute_dtype=COMPUTE_DTYPE):
    """All transformer layers in one pallas_call: grid = (N tiles, num_layers)."""
    N, L, E = x.shape
    num_layers = p['wqkv'].shape[0]
    FF = p['w1'].shape[2]
    H = num_heads

    # Tile the attention-batch axis N; L and E stay whole inside a tile because
    # attention mixes over L and LayerNorm reduces over E.
    tn = _pick_tile(N, max(1, _TARGET_BLOCK_ROWS // max(L, 1)),
                    multiples=(8, 1), full_if_none=False)
    if N // tn < 2:   # prefer >=2 N tiles (v7x megacore) when tiles stay big enough
        half = _pick_tile(N, max(1, N // 2), multiples=(8, 1), full_if_none=False)
        if half * L >= 128:
            tn = half
    grid = (N // tn, num_layers)              # layer axis innermost (sequential carry)

    act_spec = pl.BlockSpec((tn, L, E), lambda i, l: (i, 0, 0))

    def per_layer(arr):                       # stream layer l's slice of a stacked weight
        return pl.BlockSpec((1,) + arr.shape[1:], lambda i, l: (l, 0, 0))

    weights = (p['wqkv'], p['bqkv'], p['wo'], p['bo'],
               p['ln1_g'], p['ln1_b'],
               p['w1'], p['b1'], p['w2'], p['b2'],
               p['ln2_g'], p['ln2_b'])
    in_specs = [act_spec] + [per_layer(w) for w in weights]

    rows = N * L
    flops = num_layers * (2 * rows * E * 3 * E            # fused QKV projection
                          + 4 * N * H * L * L * (E // H)  # scores + context
                          + 2 * rows * E * E              # output projection
                          + 4 * rows * E * FF)            # FFN
    transcendentals = num_layers * (rows * FF + N * H * L * L)
    weight_bytes = sum(int(w.size) * w.dtype.itemsize for w in weights)
    bytes_accessed = 2 * rows * E * 4 + weight_bytes * (N // tn)

    return pl.pallas_call(
        make_stack_kernel(num_heads, compute_dtype),
        out_shape=jax.ShapeDtypeStruct(x.shape, jnp.float32),
        grid=grid,
        in_specs=in_specs,
        out_specs=act_spec,
        scratch_shapes=[pltpu.VMEM((tn, L, E), jnp.float32),      # residual carry
                        pltpu.VMEM((tn, L, E), compute_dtype)],   # per-head ctx assembly
        compiler_params=pltpu.CompilerParams(
            dimension_semantics=("parallel", "arbitrary"),
            vmem_limit_bytes=_vmem_limit_bytes()),
        cost_estimate=pl.CostEstimate(flops=int(flops),
                                      transcendentals=int(transcendentals),
                                      bytes_accessed=int(bytes_accessed)),
    )(x, *weights)


def ln_head(x, g, b, w_head, *, compute_dtype=COMPUTE_DTYPE):
    """Final LayerNorm + LM head; x is (T, B, E), output is (B, T, V)."""
    del compute_dtype
    T, B, E = x.shape
    V = w_head.shape[1]
    tt = _pick_tile(T, max(1, _TARGET_HEAD_ROWS // max(B, 1)),
                    multiples=(8,), full_if_none=True)
    tv = _pick_tile(V, _TARGET_VOCAB_TILE, multiples=(256, 128), full_if_none=True)
    # Vocab axis OUTER: each (E, tv) w_head tile is fetched exactly once; the
    # much smaller activation slab is re-streamed per vocab tile instead.
    grid = (V // tv, T // tt)

    flops = 2 * T * B * E * V
    bytes_accessed = (T * B * E * 4 * (V // tv)
                      + E * V * w_head.dtype.itemsize + B * T * V * 4)

    return pl.pallas_call(
        _head_kernel,
        out_shape=jax.ShapeDtypeStruct((B, T, V), jnp.float32),
        grid=grid,
        in_specs=[
            pl.BlockSpec((tt, B, E), lambda jv, it: (it, 0, 0)),   # activation slab
            pl.BlockSpec((1, E), lambda jv, it: (0, 0)),           # ln_f gamma (resident)
            pl.BlockSpec((1, E), lambda jv, it: (0, 0)),           # ln_f beta  (resident)
            pl.BlockSpec((E, tv), lambda jv, it: (0, jv)),         # w_head: one pass total
        ],
        out_specs=pl.BlockSpec((B, tt, tv), lambda jv, it: (0, it, jv)),  # lane-dense
        compiler_params=pltpu.CompilerParams(
            dimension_semantics=("parallel", "parallel"),
            vmem_limit_bytes=_vmem_limit_bytes()),
        cost_estimate=pl.CostEstimate(flops=int(flops), transcendentals=0,
                                      bytes_accessed=int(bytes_accessed)),
    )(x, g, b, w_head)


def simple_gpt_forward(tokens, params, *, num_heads, compute_dtype=COMPUTE_DTYPE):
    B, T = tokens.shape

    # Embedding gathers + positional add, produced directly in (T, B, E) layout:
    # batch_first=False means attention mixes dim 0 of the PyTorch (B, T, E)
    # input, which is axis L = B here.  Transposing the tiny int token matrix
    # avoids a full-activation transpose before the layers.
    tok_emb = jnp.take(params['tok_emb'], tokens.T, axis=0)          # (T, B, E)
    pos_emb = params['pos_emb'][:T]                                  # (T, E)
    x = (tok_emb + pos_emb[:, None, :]).astype(jnp.float32)         # (N=T, L=B, E)

    x = transformer_stack(x, params, num_heads=num_heads, compute_dtype=compute_dtype)

    # Final LayerNorm + LM head; the (T,B,E)->(B,T,V) relayout happens in-kernel.
    return ln_head(x, params['ln_f_g'], params['ln_f_b'], params['w_head'])


# ----------------------------- deterministic init ------------------------------

def init_params(key, *, vocab_size, embed_size, num_heads, num_layers, context_length,
                weight_dtype=COMPUTE_DTYPE):
    assert embed_size % num_heads == 0
    E = embed_size
    FF = 4 * E

    def nrm(k, shape, scale=0.02):
        return scale * jax.random.normal(k, shape, dtype=jnp.float32)

    keys = iter(jax.random.split(key, 3 + 6 * num_layers))
    tok_emb = nrm(next(keys), (vocab_size, E))
    pos_emb = nrm(next(keys), (context_length, E))
    w_head = nrm(next(keys), (E, vocab_size)).astype(weight_dtype)   # logits = x @ W

    wqkv, wo, w1, w2 = [], [], [], []
    for _ in range(num_layers):
        wq = nrm(next(keys), (E, E))
        wk = nrm(next(keys), (E, E))
        wv = nrm(next(keys), (E, E))
        wqkv.append(jnp.concatenate([wq, wk, wv], axis=1))           # fused (E, 3E)
        wo.append(nrm(next(keys), (E, E)))
        w1.append(nrm(next(keys), (E, FF)))
        w2.append(nrm(next(keys), (FF, E)))

    def stackw(ws):
        return jnp.stack(ws).astype(weight_dtype)

    zeros = lambda c: jnp.zeros((num_layers, 1, c), jnp.float32)
    ones = lambda c: jnp.ones((num_layers, 1, c), jnp.float32)

    return {
        'tok_emb': tok_emb, 'pos_emb': pos_emb,
        'ln_f_g': jnp.ones((1, E), jnp.float32),
        'ln_f_b': jnp.zeros((1, E), jnp.float32),
        'w_head': w_head,
        # Per-layer weights stacked along a leading layer axis (streamed per
        # layer step of the fused kernel); matrices in bf16, biases/LN in f32.
        'wqkv': stackw(wqkv), 'bqkv': zeros(3 * E),
        'wo': stackw(wo), 'bo': zeros(E),
        'ln1_g': ones(E), 'ln1_b': zeros(E),
        'w1': stackw(w1), 'b1': zeros(FF),
        'w2': stackw(w2), 'b2': zeros(E),
        'ln2_g': ones(E), 'ln2_b': zeros(E),
    }


# ----------------------------- demo -------------------------------------------

if __name__ == "__main__":
    # NOTE: demo shapes are tiny (E=32); real configs should pick E, 4E, vocab as
    # multiples of 128/256 so every tile is lane-dense.
    vocab_size, embed_size, num_heads, num_layers, context_length = 64, 32, 4, 2, 16
    B, T = 2, 8

    key = jax.random.PRNGKey(0)
    pkey, xkey = jax.random.split(key)
    params = init_params(pkey, vocab_size=vocab_size, embed_size=embed_size,
                         num_heads=num_heads, num_layers=num_layers,
                         context_length=context_length)
    tokens = jax.random.randint(xkey, (B, T), 0, vocab_size, dtype=jnp.int32)

    fwd = jax.jit(partial(simple_gpt_forward, num_heads=num_heads))
    logits = fwd(tokens, params)
    jax.block_until_ready(logits)

    assert logits.shape == (B, T, vocab_size)
    assert logits.dtype == jnp.float32
    print("KERNEL_OK")
</pallas_src>

<mosaic_0001>
module attributes {stable_mosaic.version = 11 : i64} {
  func.func @_head_kernel(%arg0: i32, %arg1: i32, %arg2: memref<8x2x32xf32, #tpu.memory_space<vmem>>, %arg3: memref<1x32xf32, #tpu.memory_space<vmem>>, %arg4: memref<1x32xf32, #tpu.memory_space<vmem>>, %arg5: memref<32x64xbf16, #tpu.memory_space<vmem>>, %arg6: memref<2x8x64xf32, #tpu.memory_space<vmem>>) attributes {dimension_semantics = [#tpu.dimension_semantics<parallel>, #tpu.dimension_semantics<parallel>], iteration_bounds = array<i64: 1, 1>, scalar_prefetch = 0 : i64, scratch_operands = 0 : i64, tpu.core_type = #tpu.core_type<tc>, window_params = [{transform_indices = @transform_0, window_bounds = array<i64: 8, 2, 32>}, {pipeline_mode = #tpu.pipeline_mode<synchronous>, transform_indices = @transform_1, window_bounds = array<i64: 1, 32>}, {pipeline_mode = #tpu.pipeline_mode<synchronous>, transform_indices = @transform_2, window_bounds = array<i64: 1, 32>}, {transform_indices = @transform_3, window_bounds = array<i64: 32, 64>}, {transform_indices = @transform_4, window_bounds = array<i64: 2, 8, 64>}]} {
    %c0 = arith.constant 0 : index
    %c0_0 = arith.constant 0 : index
    %c0_1 = arith.constant 0 : index
    %0 = vector.load %arg2[%c0, %c0_0, %c0_1] : memref<8x2x32xf32, #tpu.memory_space<vmem>>, vector<8x2x32xf32>
    %c0_2 = arith.constant 0 : index
    %c0_3 = arith.constant 0 : index
    %1 = vector.load %arg3[%c0_2, %c0_3] : memref<1x32xf32, #tpu.memory_space<vmem>>, vector<1x32xf32>
    %c0_4 = arith.constant 0 : index
    %c0_5 = arith.constant 0 : index
    %2 = vector.load %arg4[%c0_4, %c0_5] : memref<1x32xf32, #tpu.memory_space<vmem>>, vector<1x32xf32>
    %cst = arith.constant dense<0.000000e+00> : vector<8x2xf32>
    %3 = vector.multi_reduction <add>, %0, %cst [2] : vector<8x2x32xf32> to vector<8x2xf32>
    %4 = vector.shape_cast %3 : vector<8x2xf32> to vector<8x2x1xf32>
    %cst_6 = arith.constant 3.200000e+01 : f32
    %5 = vector.broadcast %cst_6 : f32 to vector<8x2x1xf32>
    %6 = arith.divf %4, %5 : vector<8x2x1xf32>
    %7 = vector.broadcast %6 : vector<8x2x1xf32> to vector<8x2x32xf32>
    %8 = arith.subf %0, %7 : vector<8x2x32xf32>
    %9 = arith.mulf %8, %8 : vector<8x2x32xf32>
    %cst_7 = arith.constant dense<0.000000e+00> : vector<8x2xf32>
    %10 = vector.multi_reduction <add>, %9, %cst_7 [2] : vector<8x2x32xf32> to vector<8x2xf32>
    %11 = vector.shape_cast %10 : vector<8x2xf32> to vector<8x2x1xf32>
    %cst_8 = arith.constant 3.200000e+01 : f32
    %12 = vector.broadcast %cst_8 : f32 to vector<8x2x1xf32>
    %13 = arith.divf %11, %12 : vector<8x2x1xf32>
    %14 = vector.broadcast %6 : vector<8x2x1xf32> to vector<8x2x32xf32>
    %15 = arith.subf %0, %14 : vector<8x2x32xf32>
    %cst_9 = arith.constant 9.99999974E-6 : f32
    %16 = vector.broadcast %cst_9 : f32 to vector<8x2x1xf32>
    %17 = arith.addf %13, %16 : vector<8x2x1xf32>
    %18 = math.rsqrt %17 : vector<8x2x1xf32>
    %19 = vector.broadcast %18 : vector<8x2x1xf32> to vector<8x2x32xf32>
    %20 = arith.mulf %15, %19 : vector<8x2x32xf32>
    %21 = vector.shape_cast %1 : vector<1x32xf32> to vector<1x1x32xf32>
    %22 = vector.broadcast %21 : vector<1x1x32xf32> to vector<8x2x32xf32>
    %23 = arith.mulf %20, %22 : vector<8x2x32xf32>
    %24 = vector.shape_cast %2 : vector<1x32xf32> to vector<1x1x32xf32>
    %25 = vector.broadcast %24 : vector<1x1x32xf32> to vector<8x2x32xf32>
    %26 = arith.addf %23, %25 : vector<8x2x32xf32>
    %27 = tpu.transpose %26, [1, 0, 2] : vector<8x2x32xf32> -> vector<2x8x32xf32>
    %c0_10 = arith.constant 0 : index
    %c0_11 = arith.constant 0 : index
    %28 = vector.load %arg5[%c0_10, %c0_11] : memref<32x64xbf16, #tpu.memory_space<vmem>>, vector<32x64xbf16>
    %29 = vector.shape_cast %27 : vector<2x8x32xf32> to vector<16x32xf32>
    %30 = arith.truncf %29 : vector<16x32xf32> to vector<16x32xbf16>
    %cst_12 = arith.constant dense<0.000000e+00> : vector<16x64xf32>
    %31 = tpu.matmul %30, %28, %cst_12 {dimension_numbers = #tpu.dot_dimension_numbers<[1], [0], [0], [1], [0, 0, 1, 1], [], []>} : vector<16x32xbf16>, vector<32x64xbf16>, vector<16x64xf32> -> vector<16x64xf32>
    %32 = vector.shape_cast %31 : vector<16x64xf32> to vector<2x8x64xf32>
    %c0_13 = arith.constant 0 : index
    %c0_14 = arith.constant 0 : index
    %c0_15 = arith.constant 0 : index
    %33 = vector.load %arg6[%c0_13, %c0_14, %c0_15] : memref<2x8x64xf32, #tpu.memory_space<vmem>>, vector<2x8x64xf32>
    tpu.vector_store %arg6[%c0_13, %c0_14, %c0_15], %32 {strides = array<i32>} : memref<2x8x64xf32, #tpu.memory_space<vmem>>, vector<2x8x64xf32>,
    return
  }
  func.func @transform_0(%arg0: i32, %arg1: i32) -> (i32, i32, i32) {
    %c0_i32 = arith.constant 0 : i32
    %c0_i32_0 = arith.constant 0 : i32
    %c0_i32_1 = arith.constant 0 : i32
    return %arg1, %c0_i32, %c0_i32_0 : i32, i32, i32
  }
  func.func @transform_1(%arg0: i32, %arg1: i32) -> (i32, i32) {
    %c0_i32 = arith.constant 0 : i32
    %c0_i32_0 = arith.constant 0 : i32
    %c0_i32_1 = arith.constant 0 : i32
    return %c0_i32, %c0_i32_0 : i32, i32
  }
  func.func @transform_2(%arg0: i32, %arg1: i32) -> (i32, i32) {
    %c0_i32 = arith.constant 0 : i32
    %c0_i32_0 = arith.constant 0 : i32
    %c0_i32_1 = arith.constant 0 : i32
    return %c0_i32, %c0_i32_0 : i32, i32
  }
  func.func @transform_3(%arg0: i32, %arg1: i32) -> (i32, i32) {
    %c0_i32 = arith.constant 0 : i32
    %c0_i32_0 = arith.constant 0 : i32
    return %c0_i32, %arg0 : i32, i32
  }
  func.func @transform_4(%arg0: i32, %arg1: i32) -> (i32, i32, i32) {
    %c0_i32 = arith.constant 0 : i32
    %c0_i32_0 = arith.constant 0 : i32
    return %c0_i32, %arg1, %arg0 : i32, i32, i32
  }
}

module attributes {stable_mosaic.version = 11 : i64} {
  func.func @stack_kernel(%arg0: i32, %arg1: i32, %arg2: memref<8x2x32xf32, #tpu.memory_space<vmem>>, %arg3: memref<1x32x96xbf16, #tpu.memory_space<vmem>>, %arg4: memref<1x1x96xf32, #tpu.memory_space<vmem>>, %arg5: memref<1x32x32xbf16, #tpu.memory_space<vmem>>, %arg6: memref<1x1x32xf32, #tpu.memory_space<vmem>>, %arg7: memref<1x1x32xf32, #tpu.memory_space<vmem>>, %arg8: memref<1x1x32xf32, #tpu.memory_space<vmem>>, %arg9: memref<1x32x128xbf16, #tpu.memory_space<vmem>>, %arg10: memref<1x1x128xf32, #tpu.memory_space<vmem>>, %arg11: memref<1x128x32xbf16, #tpu.memory_space<vmem>>, %arg12: memref<1x1x32xf32, #tpu.memory_space<vmem>>, %arg13: memref<1x1x32xf32, #tpu.memory_space<vmem>>, %arg14: memref<1x1x32xf32, #tpu.memory_space<vmem>>, %arg15: memref<8x2x32xf32, #tpu.memory_space<vmem>>, %arg16: memref<8x2x32xf32, #tpu.memory_space<vmem>>, %arg17: memref<8x2x32xbf16, #tpu.memory_space<vmem>>) attributes {dimension_semantics = [#tpu.dimension_semantics<parallel>, #tpu.dimension_semantics<arbitrary>], iteration_bounds = array<i64: 1, 2>, scalar_prefetch = 0 : i64, scratch_operands = 2 : i64, tpu.core_type = #tpu.core_type<tc>, window_params = [{transform_indices = @transform_0, window_bounds = array<i64: 8, 2, 32>}, {transform_indices = @transform_1, window_bounds = array<i64: 1, 32, 96>}, {transform_indices = @transform_2, window_bounds = array<i64: 1, 1, 96>}, {transform_indices = @transform_3, window_bounds = array<i64: 1, 32, 32>}, {transform_indices = @transform_4, window_bounds = array<i64: 1, 1, 32>}, {transform_indices = @transform_5, window_bounds = array<i64: 1, 1, 32>}, {transform_indices = @transform_6, window_bounds = array<i64: 1, 1, 32>}, {transform_indices = @transform_7, window_bounds = array<i64: 1, 32, 128>}, {transform_indices = @transform_8, window_bounds = array<i64: 1, 1, 128>}, {transform_indices = @transform_9, window_bounds = array<i64: 1, 128, 32>}, {transform_indices = @transform_10, window_bounds = array<i64: 1, 1, 32>}, {transform_indices = @transform_11, window_bounds = array<i64: 1, 1, 32>}, {transform_indices = @transform_12, window_bounds = array<i64: 1, 1, 32>}, {transform_indices = @transform_13, window_bounds = array<i64: 8, 2, 32>}]} {
    %c0_i32 = arith.constant 0 : i32
    %0 = arith.cmpi eq, %arg1, %c0_i32 : i32
    %1 = arith.extui %0 : i1 to i32
    %c0_i32_0 = arith.constant 0 : i32
    %2 = arith.cmpi ne, %1, %c0_i32_0 : i32
    scf.if %2 {
      %c0_100 = arith.constant 0 : index
      %c0_101 = arith.constant 0 : index
      %c0_102 = arith.constant 0 : index
      %220 = vector.load %arg2[%c0_100, %c0_101, %c0_102] : memref<8x2x32xf32, #tpu.memory_space<vmem>>, vector<8x2x32xf32>
      %c0_103 = arith.constant 0 : index
      %c0_104 = arith.constant 0 : index
      %c0_105 = arith.constant 0 : index
      %221 = vector.load %arg16[%c0_103, %c0_104, %c0_105] : memref<8x2x32xf32, #tpu.memory_space<vmem>>, vector<8x2x32xf32>
      tpu.vector_store %arg16[%c0_103, %c0_104, %c0_105], %220 {strides = array<i32>} : memref<8x2x32xf32, #tpu.memory_space<vmem>>, vector<8x2x32xf32>,
    } else {
    }
    %c0 = arith.constant 0 : index
    %c0_1 = arith.constant 0 : index
    %c0_2 = arith.constant 0 : index
    %3 = vector.load %arg16[%c0, %c0_1, %c0_2] : memref<8x2x32xf32, #tpu.memory_space<vmem>>, vector<8x2x32xf32>
    %4 = vector.shape_cast %3 : vector<8x2x32xf32> to vector<16x32xf32>
    %c0_3 = arith.constant 0 : index
    %c0_4 = arith.constant 0 : index
    %c0_5 = arith.constant 0 : index
    %5 = vector.load %arg3[%c0_3, %c0_4, %c0_5] : memref<1x32x96xbf16, #tpu.memory_space<vmem>>, vector<1x32x96xbf16>
    %6 = vector.shape_cast %5 : vector<1x32x96xbf16> to vector<32x96xbf16>
    %7 = arith.truncf %4 : vector<16x32xf32> to vector<16x32xbf16>
    %cst = arith.constant dense<0.000000e+00> : vector<16x96xf32>
    %8 = tpu.matmul %7, %6, %cst {dimension_numbers = #tpu.dot_dimension_numbers<[1], [0], [0], [1], [0, 0, 1, 1], [], []>} : vector<16x32xbf16>, vector<32x96xbf16>, vector<16x96xf32> -> vector<16x96xf32>
    %c0_6 = arith.constant 0 : index
    %c0_7 = arith.constant 0 : index
    %c0_8 = arith.constant 0 : index
    %9 = vector.load %arg4[%c0_6, %c0_7, %c0_8] : memref<1x1x96xf32, #tpu.memory_space<vmem>>, vector<1x1x96xf32>
    %10 = vector.shape_cast %9 : vector<1x1x96xf32> to vector<1x96xf32>
    %11 = vector.broadcast %10 : vector<1x96xf32> to vector<16x96xf32>
    %12 = arith.addf %8, %11 : vector<16x96xf32>
    %13 = vector.extract_strided_slice %12 {offsets = [0, 0], sizes = [16, 32], strides = [1, 1]} : vector<16x96xf32> to vector<16x32xf32>
    %cst_9 = arith.constant 0.353553385 : f32
    %14 = vector.broadcast %cst_9 : f32 to vector<16x32xf32>
    %15 = arith.mulf %13, %14 : vector<16x32xf32>
    %16 = arith.truncf %15 : vector<16x32xf32> to vector<16x32xbf16>
    %17 = vector.shape_cast %16 : vector<16x32xbf16> to vector<8x2x32xbf16>
    %18 = vector.extract_strided_slice %12 {offsets = [0, 32], sizes = [16, 32], strides = [1, 1]} : vector<16x96xf32> to vector<16x32xf32>
    %19 = arith.truncf %18 : vector<16x32xf32> to vector<16x32xbf16>
    %20 = vector.shape_cast %19 : vector<16x32xbf16> to vector<8x2x32xbf16>
    %21 = vector.extract_strided_slice %12 {offsets = [0, 64], sizes = [16, 32], strides = [1, 1]} : vector<16x96xf32> to vector<16x32xf32>
    %22 = arith.truncf %21 : vector<16x32xf32> to vector<16x32xbf16>
    %23 = vector.shape_cast %22 : vector<16x32xbf16> to vector<8x2x32xbf16>
    %24 = vector.extract_strided_slice %17 {offsets = [0, 0, 0], sizes = [8, 2, 8], strides = [1, 1, 1]} : vector<8x2x32xbf16> to vector<8x2x8xbf16>
    %25 = vector.extract_strided_slice %20 {offsets = [0, 0, 0], sizes = [8, 2, 8], strides = [1, 1, 1]} : vector<8x2x32xbf16> to vector<8x2x8xbf16>
    "tpu.trace_start"() <{level = 10 : i32, message = "nld,nmd->nlm"}> : () -> ()
    %cst_10 = arith.constant dense<0.000000e+00> : vector<8x2x2xf32>
    %26 = tpu.matmul %24, %25, %cst_10 {dimension_numbers = #tpu.dot_dimension_numbers<[2], [2], [1], [1], [0, 0, 0, 1, 1, 1], [0], [0]>} : vector<8x2x8xbf16>, vector<8x2x8xbf16>, vector<8x2x2xf32> -> vector<8x2x2xf32>
    "tpu.trace_stop"() : () -> ()
    %cst_11 = arith.constant dense<0xFF800000> : vector<8x2xf32>
    %27 = vector.multi_reduction <maximumf>, %26, %cst_11 [2] : vector<8x2x2xf32> to vector<8x2xf32>
    %28 = vector.shape_cast %27 : vector<8x2xf32> to vector<8x2x1xf32>
    %29 = vector.broadcast %28 : vector<8x2x1xf32> to vector<8x2x2xf32>
    %30 = arith.subf %26, %29 : vector<8x2x2xf32>
    %31 = math.exp %30 : vector<8x2x2xf32>
    %cst_12 = arith.constant dense<0.000000e+00> : vector<8x2xf32>
    %32 = vector.multi_reduction <add>, %31, %cst_12 [2] : vector<8x2x2xf32> to vector<8x2xf32>
    %33 = vector.shape_cast %32 : vector<8x2xf32> to vector<8x2x1xf32>
    %34 = tpu.reciprocal %33 {approx = true} : vector<8x2x1xf32> -> vector<8x2x1xf32>
    %35 = vector.broadcast %34 : vector<8x2x1xf32> to vector<8x2x2xf32>
    %36 = arith.mulf %31, %35 : vector<8x2x2xf32>
    %37 = arith.truncf %36 : vector<8x2x2xf32> to vector<8x2x2xbf16>
    %38 = vector.extract_strided_slice %23 {offsets = [0, 0, 0], sizes = [8, 2, 8], strides = [1, 1, 1]} : vector<8x2x32xbf16> to vector<8x2x8xbf16>
    "tpu.trace_start"() <{level = 10 : i32, message = "nlm,nmd->nld"}> : () -> ()
    %cst_13 = arith.constant dense<0.000000e+00> : vector<8x2x8xf32>
    %39 = tpu.matmul %37, %38, %cst_13 {dimension_numbers = #tpu.dot_dimension_numbers<[2], [1], [1], [2], [0, 0, 0, 1, 1, 2], [0], [0]>} : vector<8x2x2xbf16>, vector<8x2x8xbf16>, vector<8x2x8xf32> -> vector<8x2x8xf32>
    "tpu.trace_stop"() : () -> ()
    %40 = arith.truncf %39 : vector<8x2x8xf32> to vector<8x2x8xbf16>
    %c0_14 = arith.constant 0 : index
    %c0_15 = arith.constant 0 : index
    %c0_16 = arith.constant 0 : index
    %41 = vector.load %arg17[%c0_14, %c0_15, %c0_16] : memref<8x2x32xbf16, #tpu.memory_space<vmem>>, vector<8x2x8xbf16>
    tpu.vector_store %arg17[%c0_14, %c0_15, %c0_16], %40 {strides = array<i32>} : memref<8x2x32xbf16, #tpu.memory_space<vmem>>, vector<8x2x8xbf16>,
    %42 = vector.extract_strided_slice %17 {offsets = [0, 0, 8], sizes = [8, 2, 8], strides = [1, 1, 1]} : vector<8x2x32xbf16> to vector<8x2x8xbf16>
    %43 = vector.extract_strided_slice %20 {offsets = [0, 0, 8], sizes = [8, 2, 8], strides = [1, 1, 1]} : vector<8x2x32xbf16> to vector<8x2x8xbf16>
    "tpu.trace_start"() <{level = 10 : i32, message = "nld,nmd->nlm"}> : () -> ()
    %cst_17 = arith.constant dense<0.000000e+00> : vector<8x2x2xf32>
    %44 = tpu.matmul %42, %43, %cst_17 {dimension_numbers = #tpu.dot_dimension_numbers<[2], [2], [1], [1], [0, 0, 0, 1, 1, 1], [0], [0]>} : vector<8x2x8xbf16>, vector<8x2x8xbf16>, vector<8x2x2xf32> -> vector<8x2x2xf32>
    "tpu.trace_stop"() : () -> ()
    %cst_18 = arith.constant dense<0xFF800000> : vector<8x2xf32>
    %45 = vector.multi_reduction <maximumf>, %44, %cst_18 [2] : vector<8x2x2xf32> to vector<8x2xf32>
    %46 = vector.shape_cast %45 : vector<8x2xf32> to vector<8x2x1xf32>
    %47 = vector.broadcast %46 : vector<8x2x1xf32> to vector<8x2x2xf32>
    %48 = arith.subf %44, %47 : vector<8x2x2xf32>
    %49 = math.exp %48 : vector<8x2x2xf32>
    %cst_19 = arith.constant dense<0.000000e+00> : vector<8x2xf32>
    %50 = vector.multi_reduction <add>, %49, %cst_19 [2] : vector<8x2x2xf32> to vector<8x2xf32>
    %51 = vector.shape_cast %50 : vector<8x2xf32> to vector<8x2x1xf32>
    %52 = tpu.reciprocal %51 {approx = true} : vector<8x2x1xf32> -> vector<8x2x1xf32>
    %53 = vector.broadcast %52 : vector<8x2x1xf32> to vector<8x2x2xf32>
    %54 = arith.mulf %49, %53 : vector<8x2x2xf32>
    %55 = arith.truncf %54 : vector<8x2x2xf32> to vector<8x2x2xbf16>
    %56 = vector.extract_strided_slice %23 {offsets = [0, 0, 8], sizes = [8, 2, 8], strides = [1, 1, 1]} : vector<8x2x32xbf16> to vector<8x2x8xbf16>
    "tpu.trace_start"() <{level = 10 : i32, message = "nlm,nmd->nld"}> : () -> ()
    %cst_20 = arith.constant dense<0.000000e+00> : vector<8x2x8xf32>
    %57 = tpu.matmul %55, %56, %cst_20 {dimension_numbers = #tpu.dot_dimension_numbers<[2], [1], [1], [2], [0, 0, 0, 1, 1, 2], [0], [0]>} : vector<8x2x2xbf16>, vector<8x2x8xbf16>, vector<8x2x8xf32> -> vector<8x2x8xf32>
    "tpu.trace_stop"() : () -> ()
    %58 = arith.truncf %57 : vector<8x2x8xf32> to vector<8x2x8xbf16>
    %c0_21 = arith.constant 0 : index
    %c0_22 = arith.constant 0 : index
    %c8 = arith.constant 8 : index
    %59 = vector.load %arg17[%c0_21, %c0_22, %c8] : memref<8x2x32xbf16, #tpu.memory_space<vmem>>, vector<8x2x8xbf16>
    tpu.vector_store %arg17[%c0_21, %c0_22, %c8], %58 {strides = array<i32>} : memref<8x2x32xbf16, #tpu.memory_space<vmem>>, vector<8x2x8xbf16>,
    %60 = vector.extract_strided_slice %17 {offsets = [0, 0, 16], sizes = [8, 2, 8], strides = [1, 1, 1]} : vector<8x2x32xbf16> to vector<8x2x8xbf16>
    %61 = vector.extract_strided_slice %20 {offsets = [0, 0, 16], sizes = [8, 2, 8], strides = [1, 1, 1]} : vector<8x2x32xbf16> to vector<8x2x8xbf16>
    "tpu.trace_start"() <{level = 10 : i32, message = "nld,nmd->nlm"}> : () -> ()
    %cst_23 = arith.constant dense<0.000000e+00> : vector<8x2x2xf32>
    %62 = tpu.matmul %60, %61, %cst_23 {dimension_numbers = #tpu.dot_dimension_numbers<[2], [2], [1], [1], [0, 0, 0, 1, 1, 1], [0], [0]>} : vector<8x2x8xbf16>, vector<8x2x8xbf16>, vector<8x2x2xf32> -> vector<8x2x2xf32>
    "tpu.trace_stop"() : () -> ()
    %cst_24 = arith.constant dense<0xFF800000> : vector<8x2xf32>
    %63 = vector.multi_reduction <maximumf>, %62, %cst_24 [2] : vector<8x2x2xf32> to vector<8x2xf32>
    %64 = vector.shape_cast %63 : vector<8x2xf32> to vector<8x2x1xf32>
    %65 = vector.broadcast %64 : vector<8x2x1xf32> to vector<8x2x2xf32>
    %66 = arith.subf %62, %65 : vector<8x2x2xf32>
    %67 = math.exp %66 : vector<8x2x2xf32>
    %cst_25 = arith.constant dense<0.000000e+00> : vector<8x2xf32>
    %68 = vector.multi_reduction <add>, %67, %cst_25 [2] : vector<8x2x2xf32> to vector<8x2xf32>
    %69 = vector.shape_cast %68 : vector<8x2xf32> to vector<8x2x1xf32>
    %70 = tpu.reciprocal %69 {approx = true} : vector<8x2x1xf32> -> vector<8x2x1xf32>
    %71 = vector.broadcast %70 : vector<8x2x1xf32> to vector<8x2x2xf32>
    %72 = arith.mulf %67, %71 : vector<8x2x2xf32>
    %73 = arith.truncf %72 : vector<8x2x2xf32> to vector<8x2x2xbf16>
    %74 = vector.extract_strided_slice %23 {offsets = [0, 0, 16], sizes = [8, 2, 8], strides = [1, 1, 1]} : vector<8x2x32xbf16> to vector<8x2x8xbf16>
    "tpu.trace_start"() <{level = 10 : i32, message = "nlm,nmd->nld"}> : () -> ()
    %cst_26 = arith.constant dense<0.000000e+00> : vector<8x2x8xf32>
    %75 = tpu.matmul %73, %74, %cst_26 {dimension_numbers = #tpu.dot_dimension_numbers<[2], [1], [1], [2], [0, 0, 0, 1, 1, 2], [0], [0]>} : vector<8x2x2xbf16>, vector<8x2x8xbf16>, vector<8x2x8xf32> -> vector<8x2x8xf32>
    "tpu.trace_stop"() : () -> ()
    %76 = arith.truncf %75 : vector<8x2x8xf32> to vector<8x2x8xbf16>
    %c0_27 = arith.constant 0 : index
    %c0_28 = arith.constant 0 : index
    %c16 = arith.constant 16 : index
    %77 = vector.load %arg17[%c0_27, %c0_28, %c16] : memref<8x2x32xbf16, #tpu.memory_space<vmem>>, vector<8x2x8xbf16>
    tpu.vector_store %arg17[%c0_27, %c0_28, %c16], %76 {strides = array<i32>} : memref<8x2x32xbf16, #tpu.memory_space<vmem>>, vector<8x2x8xbf16>,
    %78 = vector.extract_strided_slice %17 {offsets = [0, 0, 24], sizes = [8, 2, 8], strides = [1, 1, 1]} : vector<8x2x32xbf16> to vector<8x2x8xbf16>
    %79 = vector.extract_strided_slice %20 {offsets = [0, 0, 24], sizes = [8, 2, 8], strides = [1, 1, 1]} : vector<8x2x32xbf16> to vector<8x2x8xbf16>
    "tpu.trace_start"() <{level = 10 : i32, message = "nld,nmd->nlm"}> : () -> ()
    %cst_29 = arith.constant dense<0.000000e+00> : vector<8x2x2xf32>
    %80 = tpu.matmul %78, %79, %cst_29 {dimension_numbers = #tpu.dot_dimension_numbers<[2], [2], [1], [1], [0, 0, 0, 1, 1, 1], [0], [0]>} : vector<8x2x8xbf16>, vector<8x2x8xbf16>, vector<8x2x2xf32> -> vector<8x2x2xf32>
    "tpu.trace_stop"() : () -> ()
    %cst_30 = arith.constant dense<0xFF800000> : vector<8x2xf32>
    %81 = vector.multi_reduction <maximumf>, %80, %cst_30 [2] : vector<8x2x2xf32> to vector<8x2xf32>
    %82 = vector.shape_cast %81 : vector<8x2xf32> to vector<8x2x1xf32>
    %83 = vector.broadcast %82 : vector<8x2x1xf32> to vector<8x2x2xf32>
    %84 = arith.subf %80, %83 : vector<8x2x2xf32>
    %85 = math.exp %84 : vector<8x2x2xf32>
    %cst_31 = arith.constant dense<0.000000e+00> : vector<8x2xf32>
    %86 = vector.multi_reduction <add>, %85, %cst_31 [2] : vector<8x2x2xf32> to vector<8x2xf32>
    %87 = vector.shape_cast %86 : vector<8x2xf32> to vector<8x2x1xf32>
    %88 = tpu.reciprocal %87 {approx = true} : vector<8x2x1xf32> -> vector<8x2x1xf32>
    %89 = vector.broadcast %88 : vector<8x2x1xf32> to vector<8x2x2xf32>
    %90 = arith.mulf %85, %89 : vector<8x2x2xf32>
    %91 = arith.truncf %90 : vector<8x2x2xf32> to vector<8x2x2xbf16>
    %92 = vector.extract_strided_slice %23 {offsets = [0, 0, 24], sizes = [8, 2, 8], strides = [1, 1, 1]} : vector<8x2x32xbf16> to vector<8x2x8xbf16>
    "tpu.trace_start"() <{level = 10 : i32, message = "nlm,nmd->nld"}> : () -> ()
    %cst_32 = arith.constant dense<0.000000e+00> : vector<8x2x8xf32>
    %93 = tpu.matmul %91, %92, %cst_32 {dimension_numbers = #tpu.dot_dimension_numbers<[2], [1], [1], [2], [0, 0, 0, 1, 1, 2], [0], [0]>} : vector<8x2x2xbf16>, vector<8x2x8xbf16>, vector<8x2x8xf32> -> vector<8x2x8xf32>
    "tpu.trace_stop"() : () -> ()
    %94 = arith.truncf %93 : vector<8x2x8xf32> to vector<8x2x8xbf16>
    %c0_33 = arith.constant 0 : index
    %c0_34 = arith.constant 0 : index
    %c24 = arith.constant 24 : index
    %95 = vector.load %arg17[%c0_33, %c0_34, %c24] : memref<8x2x32xbf16, #tpu.memory_space<vmem>>, vector<8x2x8xbf16>
    tpu.vector_store %arg17[%c0_33, %c0_34, %c24], %94 {strides = array<i32>} : memref<8x2x32xbf16, #tpu.memory_space<vmem>>, vector<8x2x8xbf16>,
    %c0_35 = arith.constant 0 : index
    %c0_36 = arith.constant 0 : index
    %c0_37 = arith.constant 0 : index
    %96 = vector.load %arg17[%c0_35, %c0_36, %c0_37] : memref<8x2x32xbf16, #tpu.memory_space<vmem>>, vector<8x2x32xbf16>
    %97 = vector.shape_cast %96 : vector<8x2x32xbf16> to vector<16x32xbf16>
    %c0_38 = arith.constant 0 : index
    %c0_39 = arith.constant 0 : index
    %c0_40 = arith.constant 0 : index
    %98 = vector.load %arg5[%c0_38, %c0_39, %c0_40] : memref<1x32x32xbf16, #tpu.memory_space<vmem>>, vector<1x32x32xbf16>
    %99 = vector.shape_cast %98 : vector<1x32x32xbf16> to vector<32x32xbf16>
    %cst_41 = arith.constant dense<0.000000e+00> : vector<16x32xf32>
    %100 = tpu.matmul %97, %99, %cst_41 {dimension_numbers = #tpu.dot_dimension_numbers<[1], [0], [0], [1], [0, 0, 1, 1], [], []>} : vector<16x32xbf16>, vector<32x32xbf16>, vector<16x32xf32> -> vector<16x32xf32>
    %c0_42 = arith.constant 0 : index
    %c0_43 = arith.constant 0 : index
    %c0_44 = arith.constant 0 : index
    %101 = vector.load %arg6[%c0_42, %c0_43, %c0_44] : memref<1x1x32xf32, #tpu.memory_space<vmem>>, vector<1x1x32xf32>
    %102 = vector.shape_cast %101 : vector<1x1x32xf32> to vector<1x32xf32>
    %103 = vector.broadcast %102 : vector<1x32xf32> to vector<16x32xf32>
    %104 = arith.addf %100, %103 : vector<16x32xf32>
    %105 = arith.addf %4, %104 : vector<16x32xf32>
    %c0_45 = arith.constant 0 : index
    %c0_46 = arith.constant 0 : index
    %c0_47 = arith.constant 0 : index
    %106 = vector.load %arg7[%c0_45, %c0_46, %c0_47] : memref<1x1x32xf32, #tpu.memory_space<vmem>>, vector<1x1x32xf32>
    %107 = vector.shape_cast %106 : vector<1x1x32xf32> to vector<1x32xf32>
    %c0_48 = arith.constant 0 : index
    %c0_49 = arith.constant 0 : index
    %c0_50 = arith.constant 0 : index
    %108 = vector.load %arg8[%c0_48, %c0_49, %c0_50] : memref<1x1x32xf32, #tpu.memory_space<vmem>>, vector<1x1x32xf32>
    %109 = vector.shape_cast %108 : vector<1x1x32xf32> to vector<1x32xf32>
    %cst_51 = arith.constant dense<0.000000e+00> : vector<16xf32>
    %110 = vector.multi_reduction <add>, %105, %cst_51 [1] : vector<16x32xf32> to vector<16xf32>
    %111 = vector.shape_cast %110 : vector<16xf32> to vector<16x1xf32>
    %cst_52 = arith.constant 3.200000e+01 : f32
    %112 = vector.broadcast %cst_52 : f32 to vector<16x1xf32>
    %113 = arith.divf %111, %112 : vector<16x1xf32>
    %114 = vector.broadcast %113 : vector<16x1xf32> to vector<16x32xf32>
    %115 = arith.subf %105, %114 : vector<16x32xf32>
    %116 = arith.mulf %115, %115 : vector<16x32xf32>
    %cst_53 = arith.constant dense<0.000000e+00> : vector<16xf32>
    %117 = vector.multi_reduction <add>, %116, %cst_53 [1] : vector<16x32xf32> to vector<16xf32>
    %118 = vector.shape_cast %117 : vector<16xf32> to vector<16x1xf32>
    %cst_54 = arith.constant 3.200000e+01 : f32
    %119 = vector.broadcast %cst_54 : f32 to vector<16x1xf32>
    %120 = arith.divf %118, %119 : vector<16x1xf32>
    %121 = vector.broadcast %113 : vector<16x1xf32> to vector<16x32xf32>
    %122 = arith.subf %105, %121 : vector<16x32xf32>
    %cst_55 = arith.constant 9.99999974E-6 : f32
    %123 = vector.broadcast %cst_55 : f32 to vector<16x1xf32>
    %124 = arith.addf %120, %123 : vector<16x1xf32>
    %125 = math.rsqrt %124 : vector<16x1xf32>
    %126 = vector.broadcast %125 : vector<16x1xf32> to vector<16x32xf32>
    %127 = arith.mulf %122, %126 : vector<16x32xf32>
    %128 = vector.broadcast %107 : vector<1x32xf32> to vector<16x32xf32>
    %129 = arith.mulf %127, %128 : vector<16x32xf32>
    %130 = vector.broadcast %109 : vector<1x32xf32> to vector<16x32xf32>
    %131 = arith.addf %129, %130 : vector<16x32xf32>
    %c0_56 = arith.constant 0 : index
    %c0_57 = arith.constant 0 : index
    %c0_58 = arith.constant 0 : index
    %132 = vector.load %arg9[%c0_56, %c0_57, %c0_58] : memref<1x32x128xbf16, #tpu.memory_space<vmem>>, vector<1x32x128xbf16>
    %133 = vector.shape_cast %132 : vector<1x32x128xbf16> to vector<32x128xbf16>
    %134 = arith.truncf %131 : vector<16x32xf32> to vector<16x32xbf16>
    %cst_59 = arith.constant dense<0.000000e+00> : vector<16x128xf32>
    %135 = tpu.matmul %134, %133, %cst_59 {dimension_numbers = #tpu.dot_dimension_numbers<[1], [0], [0], [1], [0, 0, 1, 1], [], []>} : vector<16x32xbf16>, vector<32x128xbf16>, vector<16x128xf32> -> vector<16x128xf32>
    %c0_60 = arith.constant 0 : index
    %c0_61 = arith.constant 0 : index
    %c0_62 = arith.constant 0 : index
    %136 = vector.load %arg10[%c0_60, %c0_61, %c0_62] : memref<1x1x128xf32, #tpu.memory_space<vmem>>, vector<1x1x128xf32>
    %137 = vector.shape_cast %136 : vector<1x1x128xf32> to vector<1x128xf32>
    %138 = vector.broadcast %137 : vector<1x128xf32> to vector<16x128xf32>
    %139 = arith.addf %135, %138 : vector<16x128xf32>
    %cst_63 = arith.constant 5.000000e-01 : f32
    %140 = vector.broadcast %cst_63 : f32 to vector<16x128xf32>
    %141 = arith.mulf %140, %139 : vector<16x128xf32>
    %cst_64 = arith.constant 0.707106769 : f32
    %142 = vector.broadcast %cst_64 : f32 to vector<16x128xf32>
    %143 = arith.mulf %139, %142 : vector<16x128xf32>
    %144 = math.absf %143 : vector<16x128xf32>
    %cst_65 = arith.constant 0.327591091 : f32
    %145 = vector.broadcast %cst_65 : f32 to vector<16x128xf32>
    %146 = arith.mulf %145, %144 : vector<16x128xf32>
    %cst_66 = arith.constant 1.000000e+00 : f32
    %147 = vector.broadcast %cst_66 : f32 to vector<16x128xf32>
    %148 = arith.addf %147, %146 : vector<16x128xf32>
    %cst_67 = arith.constant 1.000000e+00 : f32
    %149 = vector.broadcast %cst_67 : f32 to vector<16x128xf32>
    %150 = arith.divf %149, %148 : vector<16x128xf32>
    %cst_68 = arith.constant 1.06140542 : f32
    %151 = vector.broadcast %cst_68 : f32 to vector<16x128xf32>
    %152 = arith.mulf %151, %150 : vector<16x128xf32>
    %cst_69 = arith.constant -1.45315206 : f32
    %153 = vector.broadcast %cst_69 : f32 to vector<16x128xf32>
    %154 = arith.addf %152, %153 : vector<16x128xf32>
    %155 = arith.mulf %154, %150 : vector<16x128xf32>
    %cst_70 = arith.constant 1.42141378 : f32
    %156 = vector.broadcast %cst_70 : f32 to vector<16x128xf32>
    %157 = arith.addf %155, %156 : vector<16x128xf32>
    %158 = arith.mulf %157, %150 : vector<16x128xf32>
    %cst_71 = arith.constant -0.284496725 : f32
    %159 = vector.broadcast %cst_71 : f32 to vector<16x128xf32>
    %160 = arith.addf %158, %159 : vector<16x128xf32>
    %161 = arith.mulf %160, %150 : vector<16x128xf32>
    %cst_72 = arith.constant 0.254829586 : f32
    %162 = vector.broadcast %cst_72 : f32 to vector<16x128xf32>
    %163 = arith.addf %161, %162 : vector<16x128xf32>
    %164 = arith.mulf %163, %150 : vector<16x128xf32>
    %cst_73 = arith.constant 0.000000e+00 : f32
    %165 = vector.broadcast %cst_73 : f32 to vector<16x128xf32>
    %166 = arith.subf %165, %144 : vector<16x128xf32>
    %167 = arith.mulf %166, %144 : vector<16x128xf32>
    %168 = math.exp %167 : vector<16x128xf32>
    %169 = arith.mulf %164, %168 : vector<16x128xf32>
    %cst_74 = arith.constant 1.000000e+00 : f32
    %170 = vector.broadcast %cst_74 : f32 to vector<16x128xf32>
    %171 = arith.subf %170, %169 : vector<16x128xf32>
    %cst_75 = arith.constant 0.000000e+00 : f32
    %172 = vector.broadcast %cst_75 : f32 to vector<16x128xf32>
    %173 = arith.cmpf olt, %143, %172 : vector<16x128xf32>
    %cst_76 = arith.constant 0.000000e+00 : f32
    %174 = vector.broadcast %cst_76 : f32 to vector<16x128xf32>
    %175 = arith.subf %174, %171 : vector<16x128xf32>
    %176 = arith.select %173, %175, %171 : vector<16x128xi1>, vector<16x128xf32>
    %cst_77 = arith.constant 1.000000e+00 : f32
    %177 = vector.broadcast %cst_77 : f32 to vector<16x128xf32>
    %178 = arith.addf %177, %176 : vector<16x128xf32>
    %179 = arith.mulf %141, %178 : vector<16x128xf32>
    %c0_78 = arith.constant 0 : index
    %c0_79 = arith.constant 0 : index
    %c0_80 = arith.constant 0 : index
    %180 = vector.load %arg11[%c0_78, %c0_79, %c0_80] : memref<1x128x32xbf16, #tpu.memory_space<vmem>>, vector<1x128x32xbf16>
    %181 = vector.shape_cast %180 : vector<1x128x32xbf16> to vector<128x32xbf16>
    %182 = arith.truncf %179 : vector<16x128xf32> to vector<16x128xbf16>
    %cst_81 = arith.constant dense<0.000000e+00> : vector<16x32xf32>
    %183 = tpu.matmul %182, %181, %cst_81 {dimension_numbers = #tpu.dot_dimension_numbers<[1], [0], [0], [1], [0, 0, 1, 1], [], []>} : vector<16x128xbf16>, vector<128x32xbf16>, vector<16x32xf32> -> vector<16x32xf32>
    %c0_82 = arith.constant 0 : index
    %c0_83 = arith.constant 0 : index
    %c0_84 = arith.constant 0 : index
    %184 = vector.load %arg12[%c0_82, %c0_83, %c0_84] : memref<1x1x32xf32, #tpu.memory_space<vmem>>, vector<1x1x32xf32>
    %185 = vector.shape_cast %184 : vector<1x1x32xf32> to vector<1x32xf32>
    %186 = vector.broadcast %185 : vector<1x32xf32> to vector<16x32xf32>
    %187 = arith.addf %183, %186 : vector<16x32xf32>
    %188 = arith.addf %131, %187 : vector<16x32xf32>
    %c0_85 = arith.constant 0 : index
    %c0_86 = arith.constant 0 : index
    %c0_87 = arith.constant 0 : index
    %189 = vector.load %arg13[%c0_85, %c0_86, %c0_87] : memref<1x1x32xf32, #tpu.memory_space<vmem>>, vector<1x1x32xf32>
    %190 = vector.shape_cast %189 : vector<1x1x32xf32> to vector<1x32xf32>
    %c0_88 = arith.constant 0 : index
    %c0_89 = arith.constant 0 : index
    %c0_90 = arith.constant 0 : index
    %191 = vector.load %arg14[%c0_88, %c0_89, %c0_90] : memref<1x1x32xf32, #tpu.memory_space<vmem>>, vector<1x1x32xf32>
    %192 = vector.shape_cast %191 : vector<1x1x32xf32> to vector<1x32xf32>
    %cst_91 = arith.constant dense<0.000000e+00> : vector<16xf32>
    %193 = vector.multi_reduction <add>, %188, %cst_91 [1] : vector<16x32xf32> to vector<16xf32>
    %194 = vector.shape_cast %193 : vector<16xf32> to vector<16x1xf32>
    %cst_92 = arith.constant 3.200000e+01 : f32
    %195 = vector.broadcast %cst_92 : f32 to vector<16x1xf32>
    %196 = arith.divf %194, %195 : vector<16x1xf32>
    %197 = vector.broadcast %196 : vector<16x1xf32> to vector<16x32xf32>
    %198 = arith.subf %188, %197 : vector<16x32xf32>
    %199 = arith.mulf %198, %198 : vector<16x32xf32>
    %cst_93 = arith.constant dense<0.000000e+00> : vector<16xf32>
    %200 = vector.multi_reduction <add>, %199, %cst_93 [1] : vector<16x32xf32> to vector<16xf32>
    %201 = vector.shape_cast %200 : vector<16xf32> to vector<16x1xf32>
    %cst_94 = arith.constant 3.200000e+01 : f32
    %202 = vector.broadcast %cst_94 : f32 to vector<16x1xf32>
    %203 = arith.divf %201, %202 : vector<16x1xf32>
    %204 = vector.broadcast %196 : vector<16x1xf32> to vector<16x32xf32>
    %205 = arith.subf %188, %204 : vector<16x32xf32>
    %cst_95 = arith.constant 9.99999974E-6 : f32
    %206 = vector.broadcast %cst_95 : f32 to vector<16x1xf32>
    %207 = arith.addf %203, %206 : vector<16x1xf32>
    %208 = math.rsqrt %207 : vector<16x1xf32>
    %209 = vector.broadcast %208 : vector<16x1xf32> to vector<16x32xf32>
    %210 = arith.mulf %205, %209 : vector<16x32xf32>
    %211 = vector.broadcast %190 : vector<1x32xf32> to vector<16x32xf32>
    %212 = arith.mulf %210, %211 : vector<16x32xf32>
    %213 = vector.broadcast %192 : vector<1x32xf32> to vector<16x32xf32>
    %214 = arith.addf %212, %213 : vector<16x32xf32>
    %215 = vector.shape_cast %214 : vector<16x32xf32> to vector<8x2x32xf32>
    %c0_96 = arith.constant 0 : index
    %c0_97 = arith.constant 0 : index
    %c0_98 = arith.constant 0 : index
    %216 = vector.load %arg16[%c0_96, %c0_97, %c0_98] : memref<8x2x32xf32, #tpu.memory_space<vmem>>, vector<8x2x32xf32>
    tpu.vector_store %arg16[%c0_96, %c0_97, %c0_98], %215 {strides = array<i32>} : memref<8x2x32xf32, #tpu.memory_space<vmem>>, vector<8x2x32xf32>,
    %c1_i32 = arith.constant 1 : i32
    %217 = arith.cmpi eq, %arg1, %c1_i32 : i32
    %218 = arith.extui %217 : i1 to i32
    %c0_i32_99 = arith.constant 0 : i32
    %219 = arith.cmpi ne, %218, %c0_i32_99 : i32
    scf.if %219 {
      %c0_100 = arith.constant 0 : index
      %c0_101 = arith.constant 0 : index
      %c0_102 = arith.constant 0 : index
      %220 = vector.load %arg15[%c0_100, %c0_101, %c0_102] : memref<8x2x32xf32, #tpu.memory_space<vmem>>, vector<8x2x32xf32>
      tpu.vector_store %arg15[%c0_100, %c0_101, %c0_102], %215 {strides = array<i32>} : memref<8x2x32xf32, #tpu.memory_space<vmem>>, vector<8x2x32xf32>,
    } else {
    }
    return
  }
  func.func @transform_0(%arg0: i32, %arg1: i32) -> (i32, i32, i32) {
    %c0_i32 = arith.constant 0 : i32
    %c0_i32_0 = arith.constant 0 : i32
    %c0_i32_1 = arith.constant 0 : i32
    return %arg0, %c0_i32, %c0_i32_0 : i32, i32, i32
  }
  func.func @transform_1(%arg0: i32, %arg1: i32) -> (i32, i32, i32) {
    %c0_i32 = arith.constant 0 : i32
    %c0_i32_0 = arith.constant 0 : i32
    %c0_i32_1 = arith.constant 0 : i32
    return %arg1, %c0_i32, %c0_i32_0 : i32, i32, i32
  }
  func.func @transform_2(%arg0: i32, %arg1: i32) -> (i32, i32, i32) {
    %c0_i32 = arith.constant 0 : i32
    %c0_i32_0 = arith.constant 0 : i32
    %c0_i32_1 = arith.constant 0 : i32
    return %arg1, %c0_i32, %c0_i32_0 : i32, i32, i32
  }
  func.func @transform_3(%arg0: i32, %arg1: i32) -> (i32, i32, i32) {
    %c0_i32 = arith.constant 0 : i32
    %c0_i32_0 = arith.constant 0 : i32
    %c0_i32_1 = arith.constant 0 : i32
    return %arg1, %c0_i32, %c0_i32_0 : i32, i32, i32
  }
  func.func @transform_4(%arg0: i32, %arg1: i32) -> (i32, i32, i32) {
    %c0_i32 = arith.constant 0 : i32
    %c0_i32_0 = arith.constant 0 : i32
    %c0_i32_1 = arith.constant 0 : i32
    return %arg1, %c0_i32, %c0_i32_0 : i32, i32, i32
  }
  func.func @transform_5(%arg0: i32, %arg1: i32) -> (i32, i32, i32) {
    %c0_i32 = arith.constant 0 : i32
    %c0_i32_0 = arith.constant 0 : i32
    %c0_i32_1 = arith.constant 0 : i32
    return %arg1, %c0_i32, %c0_i32_0 : i32, i32, i32
  }
  func.func @transform_6(%arg0: i32, %arg1: i32) -> (i32, i32, i32) {
    %c0_i32 = arith.constant 0 : i32
    %c0_i32_0 = arith.constant 0 : i32
    %c0_i32_1 = arith.constant 0 : i32
    return %arg1, %c0_i32, %c0_i32_0 : i32, i32, i32
  }
  func.func @transform_7(%arg0: i32, %arg1: i32) -> (i32, i32, i32) {
    %c0_i32 = arith.constant 0 : i32
    %c0_i32_0 = arith.constant 0 : i32
    %c0_i32_1 = arith.constant 0 : i32
    return %arg1, %c0_i32, %c0_i32_0 : i32, i32, i32
  }
  func.func @transform_8(%arg0: i32, %arg1: i32) -> (i32, i32, i32) {
    %c0_i32 = arith.constant 0 : i32
    %c0_i32_0 = arith.constant 0 : i32
    %c0_i32_1 = arith.constant 0 : i32
    return %arg1, %c0_i32, %c0_i32_0 : i32, i32, i32
  }
  func.func @transform_9(%arg0: i32, %arg1: i32) -> (i32, i32, i32) {
    %c0_i32 = arith.constant 0 : i32
    %c0_i32_0 = arith.constant 0 : i32
    %c0_i32_1 = arith.constant 0 : i32
    return %arg1, %c0_i32, %c0_i32_0 : i32, i32, i32
  }
  func.func @transform_10(%arg0: i32, %arg1: i32) -> (i32, i32, i32) {
    %c0_i32 = arith.constant 0 : i32
    %c0_i32_0 = arith.constant 0 : i32
    %c0_i32_1 = arith.constant 0 : i32
    return %arg1, %c0_i32, %c0_i32_0 : i32, i32, i32
  }
  func.func @transform_11(%arg0: i32, %arg1: i32) -> (i32, i32, i32) {
    %c0_i32 = arith.constant 0 : i32
    %c0_i32_0 = arith.constant 0 : i32
    %c0_i32_1 = arith.constant 0 : i32
    return %arg1, %c0_i32, %c0_i32_0 : i32, i32, i32
  }
  func.func @transform_12(%arg0: i32, %arg1: i32) -> (i32, i32, i32) {
    %c0_i32 = arith.constant 0 : i32
    %c0_i32_0 = arith.constant 0 : i32
    %c0_i32_1 = arith.constant 0 : i32
    return %arg1, %c0_i32, %c0_i32_0 : i32, i32, i32
  }
  func.func @transform_13(%arg0: i32, %arg1: i32) -> (i32, i32, i32) {
    %c0_i32 = arith.constant 0 : i32
    %c0_i32_0 = arith.constant 0 : i32
    %c0_i32_1 = arith.constant 0 : i32
    return %arg0, %c0_i32, %c0_i32_0 : i32, i32, i32
  }
}

</mosaic_0001>

<bundles_post_ra>
// kernel: simple_gpt_forward.3
= control target key start
LH: loop header
LB: loop body
LE: loop exit
PB: predicated region body
PF: predicated region fallthrough
CT: control target
= control target key end

     0   :  { %vm29_vm0 = vcmask 254976   ;;  %s484_s0 = inlined_call_operand.vmem [shape: f32[8,2,32], index: 0, kind: input, shape index: {}]   ;;  %s485_s1 = inlined_call_operand.vmem [shape: f32[1,32], index: 1, kind: input, shape index: {}]   ;;  %s486_s2 = inlined_call_operand.vmem [shape: f32[1,32], index: 2, kind: input, shape index: {}]   ;;  %s487_s3 = inlined_call_operand.vmem [shape: bf16[32,64], index: 3, kind: input, shape index: {}]   ;;  %s488_s4 = inlined_call_operand.hbm [shape: f32[2,8,64], index: 4, kind: output, shape index: {}]  }
   0x1   :  { %v19_v0 = vld [vmem:[%s484_s0] sm:$0x3]  ;;  %v21_v1 = vld [vmem:[%s484_s0 + $0x4] sm:$0x3]  ;;  %v20_v4 = vld [vmem:[%s484_s0 + $0x2] sm:$0x3] }
   0x2   :  { %v30_v2 = vsel %vm29_vm0, %v19_v0, 0.0  ;;  %v36_v3 = vsel %vm29_vm0, %v21_v1, 0.0  ;;  %v22_v5 = vld [vmem:[%s484_s0 + $0x6] sm:$0x3]  ;;  %v33_v6 = vsel %vm29_vm0, %v20_v4, 0.0 }
   0x3   :  { %31 = vadd.xlane.f32.xlu0 %v30_v2  ;;  %37 = vadd.xlane.f32.xlu1 %v36_v3  ;;  %v39_v7 = vsel %vm29_vm0, %v22_v5, 0.0  ;;  %v23_v8 = vld [vmem:[%s484_s0 + $0x8] sm:$0x3]  ;;  %v24_v9 = vld [vmem:[%s484_s0 + $0xa] sm:$0x3] }
   0x4   :  { %9 = vsyncpa [#allocation3], 0  ;;  %v42_v10 = vsel %vm29_vm0, %v23_v8, 0.0  ;;  %v45_v11 = vsel %vm29_vm0, %v24_v9, 0.0  ;;  %v25_v12 = vld [vmem:[%s484_s0 + $0xc] sm:$0x3] }
   0x5   :  { %v26_v13 = vld [vmem:[%s484_s0 + $0xe] sm:$0x3]  ;;  %v48_v14 = vsel %vm29_vm0, %v25_v12, 0.0  ;;  %v357_v57 = vmov 0.0   ;;  %vm358_vm1 = vmmov 0   ;;  %v318_v58 = vld [vmem:[%s487_s3] sm:$0xff]  }
   0x6   :  { %v51_v15 = vsel %vm29_vm0, %v26_v13, 0.0  ;;  %v317_v56 = vld [vmem:[%s487_s3 + $0x8] sm:$0xff]   ;;  %302 = vmatprep.subr.bf16.mxu0 %v357_v57  ;;  %306 = vmatprep.mubr.msk.bf16.mxu0 %vm358_vm1, %v357_v57  ;;  %vm230_vm2 = vcmask 261120   ;;  %vm275_vm3 = vcmask 523264  }
   0x7   :  { %34 = vadd.xlane.f32.xlu0 %v33_v6  ;;  %40 = vadd.xlane.f32.xlu1 %v39_v7 }
   0x8   :  { %303 = vmatpush3.bf16.msra.mxu0 %v317_v56 }
   0x9   :  { %304 = vmatprep.subr.bf16.mxu0 %v357_v57 }
   0xb   :  { %43 = vadd.xlane.f32.xlu0 %v42_v10  ;;  %46 = vadd.xlane.f32.xlu1 %v45_v11 }
   0xc   :  { %305 = vmatpush3.bf16.msra.mxu0 %v318_v58 }
   0xf   :  { %49 = vadd.xlane.f32.xlu0 %v48_v14  ;;  %52 = vadd.xlane.f32.xlu1 %v51_v15 }
  0x8c   :  { %v32_v16 = vpop.xlane.xlu0 %31  ;;  %v38_v17 = vpop.xlane.xlu1 %37 }
  0x8d   :  { %v55_v18 = vmul.f32 0.03125, %v32_v16  ;;  %v57_v19 = vmul.f32 0.03125, %v38_v17 }
  0x8f   :  { %v421_v20 = vsub.f32 %v19_v0, %v55_v18  ;;  %v423_v21 = vsub.f32 %v21_v1, %v57_v19 }
  0x90   :  { %v35_v22 = vpop.xlane.xlu0 %34  ;;  %v41_v23 = vpop.xlane.xlu1 %40 }
  0x91   :  { %v56_v24 = vmul.f32 0.03125, %v35_v22  ;;  %v58_v25 = vmul.f32 0.03125, %v41_v23  ;;  %v71_v26 = vmul.f32 %v421_v20, %v421_v20  ;;  %v73_v27 = vmul.f32 %v423_v21, %v423_v21 }
  0x93   :  { %v429_v28 = vsub.f32 %v20_v4, %v56_v24  ;;  %v431_v29 = vsub.f32 %v22_v5, %v58_v25  ;;  %v79_v30 = vsel %vm29_vm0, %v71_v26, 0.0  ;;  %v85_v33 = vsel %vm29_vm0, %v73_v27, 0.0 }
  0x94   :  { %80 = vadd.xlane.f32.xlu0 %v79_v30  ;;  %v44_v31 = vpop.xlane.xlu0 %43  ;;  %v47_v32 = vpop.xlane.xlu1 %46 }
  0x95   :  { %v59_v34 = vmul.f32 0.03125, %v44_v31  ;;  %v60_v35 = vmul.f32 0.03125, %v47_v32  ;;  %v72_v36 = vmul.f32 %v429_v28, %v429_v28  ;;  %v74_v37 = vmul.f32 %v431_v29, %v431_v29  ;;  %v294_v32 = vld [vmem:[%s485_s1] ss:$0 sm:$0xff]  ;;  %s361_s1 = smov [#allocation2]  }
  0x97   :  { %v439_v38 = vsub.f32 %v23_v8, %v59_v34  ;;  %v441_v39 = vsub.f32 %v24_v9, %v60_v35  ;;  %v82_v40 = vsel %vm29_vm0, %v72_v36, 0.0  ;;  %v88_v43 = vsel %vm29_vm0, %v74_v37, 0.0 }
  0x98   :  { %86 = vadd.xlane.f32.xlu0 %v85_v33  ;;  %83 = vadd.xlane.f32.xlu1 %v82_v40  ;;  %v50_v41 = vpop.xlane.xlu0 %49  ;;  %v53_v42 = vpop.xlane.xlu1 %52  ;;  %v359_v33 = vmov 1983009808   ;;  %v167_v35 = vlaneseq }
  0x99   :  { %v61_v44 = vmul.f32 0.03125, %v50_v41  ;;  %v62_v45 = vmul.f32 0.03125, %v53_v42  ;;  %v75_v46 = vmul.f32 %v439_v38, %v439_v38  ;;  %v76_v47 = vmul.f32 %v441_v39, %v441_v39 }
  0x9a   :  { %v165_v34 = vunpack.c.l.s4 %v359_v33 }
  0x9b   :  { %v449_v48 = vsub.f32 %v25_v12, %v61_v44  ;;  %v451_v49 = vsub.f32 %v26_v13, %v62_v45  ;;  %v91_v50 = vsel %vm29_vm0, %v75_v46, 0.0  ;;  %v94_v51 = vsel %vm29_vm0, %v76_v47, 0.0 }
  0x9c   :  { %89 = vadd.xlane.f32.xlu1 %v88_v43  ;;  %92 = vadd.xlane.f32.xlu0 %v91_v50  ;;  %v166_v45 = vunpack.c.0.s8 %v165_v34 }
  0x9d   :  { %v77_v52 = vmul.f32 %v449_v48, %v449_v48  ;;  %v78_v53 = vmul.f32 %v451_v49, %v451_v49 }
  0x9f   :  { %v97_v54 = vsel %vm29_vm0, %v77_v52, 0.0  ;;  %v100_v55 = vsel %vm29_vm0, %v78_v53, 0.0 }
  0xa0   :  { %95 = vadd.xlane.f32.xlu1 %v94_v51  ;;  %98 = vadd.xlane.f32.xlu0 %v97_v54  ;;  %v168_v51 = vshrl.u32 %v167_v35, 7 }
  0xa4   :  { %101 = vadd.xlane.f32.xlu1 %v100_v55 }
 0x11d   :  { %v81_v59 = vpop.xlane.xlu0 %80 }
 0x11e   :  { %v103_v60 = vmul.f32 0.03125, %v81_v59 }
 0x120   :  { %v111_v1 = vadd.f32 1e-05, %v103_v60 }
 0x121   :  { %v84_v61 = vpop.xlane.xlu1 %83  ;;  %v87_v62 = vpop.xlane.xlu0 %86 }
 0x122   :  { %v104_v63 = vmul.f32 0.03125, %v84_v61  ;;  %v105_v0 = vmul.f32 0.03125, %v87_v62  ;;  %v169_v62 = vsub.s32 %v166_v45, %v168_v51 }
 0x124   :  { %v112_v2 = vadd.f32 1e-05, %v104_v63  ;;  %v113_v3 = vadd.f32 1e-05, %v105_v0 }
 0x125   :  { %v90_v4 = vpop.xlane.xlu1 %89  ;;  %v93_v5 = vpop.xlane.xlu0 %92 }
 0x126   :  { %319 = vrsqrt.f32 %v112_v2  ;;  %v106_v6 = vmul.f32 0.03125, %v90_v4  ;;  %v107_v7 = vmul.f32 0.03125, %v93_v5 }
 0x127   :  { %321 = vrsqrt.f32 %v113_v3 }
 0x128   :  { %323 = vrsqrt.f32 %v111_v1  ;;  %v114_v8 = vadd.f32 1e-05, %v106_v6  ;;  %v115_v9 = vadd.f32 1e-05, %v107_v7 }
 0x129   :  { %v96_v10 = vpop.xlane.xlu1 %95  ;;  %v99_v11 = vpop.xlane.xlu0 %98 }
 0x12a   :  { %325 = vrsqrt.f32 %v114_v8  ;;  %v108_v12 = vmul.f32 0.03125, %v96_v10  ;;  %v109_v13 = vmul.f32 0.03125, %v99_v11 }
 0x12b   :  { %327 = vrsqrt.f32 %v115_v9 }
 0x12c   :  { %v116_v14 = vadd.f32 1e-05, %v108_v12  ;;  %v117_v15 = vadd.f32 1e-05, %v109_v13 }
 0x12d   :  { %v102_v16 = vpop.xlane.xlu1 %101 }
 0x12e   :  { %329 = vrsqrt.f32 %v116_v14  ;;  %v110_v17 = vmul.f32 0.03125, %v102_v16 }
 0x12f   :  { %331 = vrsqrt.f32 %v117_v15 }
 0x130   :  { %v118_v18 = vadd.f32 1e-05, %v110_v17 }
 0x132   :  { %333 = vrsqrt.f32 %v118_v18 }
 0x133   :  { %v320_v19 = vpop.eup %319 }
 0x134   :  { %v322_v22 = vpop.eup %321  ;;  %v128_v24 = vmul.f32 %v320_v19, %v429_v28 }
 0x135   :  { %v324_v23 = vpop.eup %323  ;;  %v129_v25 = vmul.f32 %v322_v22, %v423_v21  ;;  %v295_v21 = vld [vmem:[%s486_s2] ss:$0 sm:$0xff]  ;;  %s283_s2 = sshll.u32 %s361_s1, 4  ;;  %s284_s2 = int_to_ptr.vmem [resolvable:$true] %s283_s2 }
 0x136   :  { %v127_v30 = vmul.f32 %v324_v23, %v421_v20  ;;  %v142_v36 = vmul.f32 %v294_v32, %v128_v24  ;;  %s335_s11 = scalar_lea.vmem %s284_s2, 256  ;;  %p340_p1 = scmp.lt.s32.totalorder %s284_s2, %s284_s2 }
 0x137   :  { %v326_v26 = vpop.eup %325  ;;  %v143_v37 = vmul.f32 %v294_v32, %v129_v25  ;;  %p336_p0 = scmp.ne.s32.totalorder %s284_s2, %s335_s11  ;;  %p341_p2 = scmp.lt.s32.totalorder %s335_s11, %s335_s11 }
 0x138   :  { %v328_v27 = vpop.eup %327  ;;  %v130_v31 = vmul.f32 %v326_v26, %v431_v29  ;;  %v141_v42 = vmul.f32 %v294_v32, %v127_v30  ;;  %v156_v47 = vadd.f32 %v295_v21, %v142_v36 }
 0x139   :  { %v131_v28 = vmul.f32 %v328_v27, %v439_v38  ;;  %v157_v50 = vadd.f32 %v295_v21, %v143_v37  ;;  %v360_v38 = vmov 1934713408   ;;  %p342_p3 = por %p341_p2, %p340_p1 }
 0x13a   :  { %v144_v40 = vmul.f32 %v294_v32, %v130_v31  ;;  %v197_v54 = vunpack.c.l.s4 %v360_v38  ;;  %v155_v57 = vadd.f32 %v295_v21, %v141_v42 }
 0x13b   :  { %v330_v41 = vpop.eup %329  ;;  %v145_v46 = vmul.f32 %v294_v32, %v131_v28  ;;  %p343_p4 = pnand %p342_p3, %p336_p0 }
 0x13c   :  { %v332_v20 = vpop.eup %331  ;;  %v132_v29 = vmul.f32 %v330_v41, %v441_v39  ;;  %v158_v43 = vadd.f32 %v295_v21, %v144_v40  ;;  %v163_v61 = vcombine.low %v155_v57, %v157_v50 }
 0x13d   :  { %v133_v44 = vmul.f32 %v332_v20, %v449_v48  ;;  %v159_v39 = vadd.f32 %v295_v21, %v145_v46  ;;  %v198_v48 = vunpack.c.0.s8 %v197_v54 }
 0x13e   :  { %v146_v55 = vmul.f32 %v294_v32, %v132_v29  ;;  %v171_v58 = vcombine.low %v156_v47, %v158_v43  ;;  %v170_v3 = vrot.slane %v163_v61, %v169_v62 }
 0x13f   :  { %v334_v52 = vpop.eup %333  ;;  %v147_v53 = vmul.f32 %v294_v32, %v133_v44  ;;  %v201_v8 = vsub.s32 %v198_v48, %v168_v51 }
 0x140   :  { %v134_v56 = vmul.f32 %v334_v52, %v451_v49  ;;  %v160_v0 = vadd.f32 %v295_v21, %v146_v55  ;;  %v178_v1 = vrot.slane %v171_v58, %v169_v62 }
 0x141   :  { %v161_v59 = vadd.f32 %v295_v21, %v147_v53 }
 0x142   :  { %v148_v60 = vmul.f32 %v294_v32, %v134_v56  ;;  %v195_v7 = vcombine.low %v170_v3, %v178_v1 }
 0x143   :  { %v179_v2 = vcombine.low %v159_v39, %v161_v59 }
 0x144   :  { %v162_v63 = vadd.f32 %v295_v21, %v148_v60  ;;  %v202_v49 = vrot.slane %v195_v7, %v201_v8 }
 0x145   :  { %v186_v5 = vrot.slane %v179_v2, %v169_v62 }
 0x146   :  { %v187_v4 = vcombine.low %v160_v0, %v162_v63 }
 0x148   :  { %v194_v6 = vrot.slane %v187_v4, %v169_v62 }
 0x14a   :  { %v203_v9 = vcombine.low %v186_v5, %v194_v6 }
 0x14c   :  { %v210_v10 = vrot.slane %v203_v9, %v201_v8 }
 0x14e   :  { %v211_v11 = vcombine.low %v202_v49, %v210_v10  ;;  %v212_v12 = vcombine.high %v202_v49, %v210_v10 }
 0x150   :  { %v217_v13 = vpack.c.bf16 %v212_v12, %v211_v11 }
 0x152   :  { %307 = vmatmul.mubr.msk.bf16.vlgmr.msra.gmra.mxu0 %vm230_vm2, %v217_v13 }
 0x212   :  { %v268_v14 = vpop.f32.mrf.mxu0 }
 0x213   :  { %276 = vst.msk [vmem:[#allocation2] sm:$0xff] %vm275_vm3, %v268_v14 }
 0x214   :  { %v308_v15 = vpop.f32.mrf.mxu0 }
 0x216   :  { %v271_v16 = vpop.f32.mrf.mxu0 }
 0x217   :  { %277 = vst.msk [vmem:[#allocation2 + $0x8] sm:$0xff] %vm275_vm3, %v271_v16 }
 0x218   :  { %v309_v17 = vpop.f32.mrf.mxu0 }
 0x219   :  { %346 = shalt.err (!%p343_p4)
}
 0x21a   :  { %s362_s12 = smov 128   ;;  %s363_s13 = smov 8  }
 0x21b   :  { %289 = dma.vmem_to_hbm [thread:$0]  %s284_s2, 256, %s488_s4, [#allocation3], %s362_s12, %s362_s12, %s363_s13  }
 0x21c   :  { %355 = dma.done.wait [#allocation3], 256  }
 0x21d   :  { %356 = vsyncadd [#allocation3], 4294967040 }
 0x21e   :  { %293 = vsyncpa [#allocation3], 1 }

// kernel: simple_gpt_forward.2
= control target key start
LH: loop header
LB: loop body
LE: loop exit
PB: predicated region body
PF: predicated region fallthrough
CT: control target
= control target key end

     0   :  { %s7533_s25 = smov 0   ;;  %s7535_s26 = smov 0   ;;  %s8947_s0 = inlined_call_operand.vmem [shape: f32[8,2,32], index: 0, kind: input, shape index: {}]   ;;  %s8948_s1 = inlined_call_operand.vmem [shape: bf16[2,32,96], index: 1, kind: input, shape index: {}]   ;;  %s8949_s2 = inlined_call_operand.vmem [shape: f32[2,1,96], index: 2, kind: input, shape index: {}]   ;;  %s8950_s3 = inlined_call_operand.vmem [shape: bf16[2,32,32], index: 3, kind: input, shape index: {}]   ;;  %s8951_s4 = inlined_call_operand.vmem [shape: f32[2,1,32], index: 4, kind: input, shape index: {}]   ;;  %s8952_s5 = inlined_call_operand.vmem [shape: f32[2,1,32], index: 5, kind: input, shape index: {}]   ;;  %s8953_s6 = inlined_call_operand.vmem [shape: f32[2,1,32], index: 6, kind: input, shape index: {}]   ;;  %s8954_s7 = inlined_call_operand.vmem [shape: bf16[2,32,128], index: 7, kind: input, shape index: {}]   ;;  %s8955_s8 = inlined_call_operand.vmem [shape: f32[2,1,128], index: 8, kind: input, shape index: {}]   ;;  %s8956_s9 = inlined_call_operand.vmem [shape: bf16[2,128,32], index: 9, kind: input, shape index: {}]   ;;  %s8957_s10 = inlined_call_operand.vmem [shape: f32[2,1,32], index: 10, kind: input, shape index: {}]   ;;  %s8958_s11 = inlined_call_operand.vmem [shape: f32[2,1,32], index: 11, kind: input, shape index: {}]   ;;  %s8959_s12 = inlined_call_operand.vmem [shape: f32[2,1,32], index: 12, kind: input, shape index: {}]   ;;  %s8960_s13 = inlined_call_operand.vmem [shape: f32[8,2,32], index: 13, kind: output, shape index: {}]  }
   0x1   :  { %8965 = sst [smem:[#allocation8_spill]] %s8948_s1  ;;  %s7537_s27 = smov 0  }
   0x2   :  { %8966 = sst [smem:[#allocation9_spill]] %s8950_s3 }
   0x3   :  { %8967 = sst [smem:[#allocation10_spill]] %s8960_s13 }
   0x4 LB: > { %8968 = sst [smem:[#allocation4_spill]] %s7435_s26  ;;  %s32_s28 = sadd.s32 1, %s7435_s26  ;;  %s7439_s27 = sphi %s7537_s27, %s23_s27   ;;  %s7435_s26 = sphi %s7535_s26, %s8982_s26   ;;  %s7431_s25 = sphi %s7533_s25, %s8981_s25  }
   0x5   : > { %8969 = sst [smem:[#allocation5_spill]] %s7439_s27  ;;  %p6521_p0 = scmp.ge.s32.totalorder %s7439_s27, 1 }
   0x6   : > { %p33_p1 = scmp.ge.s32.totalorder %s32_s28, 2  ;;  %p504_p2 = scmp.lt.s32.totalorder %s7439_s27, 3 }
   0x8   : > { %s8984_s28 = smov (%p33_p1, %s32_s28), 0  ;;  %p505_p3 = pnand %p6521_p0, %p504_p2 }
   0x9   : > { %8970 = sst [smem:[#allocation6_spill]] %s8984_s28 }
   0xa   : > { %508 = sbr.rel (%p505_p3) target bundleno = 4380 (0x111c), region = 72 }
   0xf   : > { %p598_p4 = scmp.lt.s32.totalorder %s7431_s25, 1  ;;  %s8971_s1 = sld [smem:[#allocation8_spill]] }
  0x10   : > { %s8972_s3 = sld [smem:[#allocation9_spill]]  ;;  %p6530_p5 = scmp.ne.s32.totalorder %s7431_s25, 0 }
  0x11   : > { %s7555_s29 = scalar_select %p598_p4, %s7431_s25, 1 }
  0x13   : > { %s6627_s30 = sshll.u32 %s7555_s29, 4  ;;  %s635_s14 = scalar_lea.vmem %s8957_s10, %s7555_s29 }
  0x14   : > { %s638_s17 = scalar_lea.vmem %s8958_s11, %s7555_s29  ;;  %s641_s13 = scalar_lea.vmem %s8959_s12, %s7555_s29 }
  0x15   : > { %s7565_s19 = scalar_lea.vmem %s8971_s1, %s6627_s30  ;;  %s7587_s1 = scalar_lea.vmem %s8954_s7, %s6627_s30 }
  0x16   : > { %s7570_s22 = scalar_lea.vmem %s8972_s3, %s6627_s30  ;;  %s627_s3 = scalar_lea.vmem %s8955_s8, %s7555_s29 }
  0x17   : > { %8973 = sst [smem:[#allocation7_spill]] %s7570_s22  ;;  %s6630_s22 = sshll.u32 %s7555_s29, 6 }
  0x18   : > { %s7597_s28 = scalar_lea.vmem %s8956_s9, %s6630_s22  ;;  %652 = sbr.rel (%p6530_p5) target bundleno = 35 (0x23), region = 76 }
  0x1d   : > { %v653_v0 = vld [vmem:[%s8947_s0] sm:$0x3]  ;;  %vm661_vm0 = vcmask 254976   ;;  %v654_v1 = vld [vmem:[%s8947_s0 + $0x2] sm:$0x3] }
  0x1e   : > { %662 = vst.msk [vmem:[#allocation2] sm:$0x3] %vm661_vm0, %v653_v0  ;;  %663 = vst.msk [vmem:[#allocation2 + $0x2] sm:$0x3] %vm661_vm0, %v654_v1  ;;  %v655_v2 = vld [vmem:[%s8947_s0 + $0x4] sm:$0x3] }
  0x1f   : > { %v656_v3 = vld [vmem:[%s8947_s0 + $0x6] sm:$0x3]  ;;  %v657_v4 = vld [vmem:[%s8947_s0 + $0x8] sm:$0x3]  ;;  %664 = vst.msk [vmem:[#allocation2 + $0x4] sm:$0x3] %vm661_vm0, %v655_v2 }
  0x20   : > { %665 = vst.msk [vmem:[#allocation2 + $0x6] sm:$0x3] %vm661_vm0, %v656_v3  ;;  %666 = vst.msk [vmem:[#allocation2 + $0x8] sm:$0x3] %vm661_vm0, %v657_v4  ;;  %v658_v5 = vld [vmem:[%s8947_s0 + $0xa] sm:$0x3] }
  0x21   : > { %v659_v6 = vld [vmem:[%s8947_s0 + $0xc] sm:$0x3]  ;;  %v660_v7 = vld [vmem:[%s8947_s0 + $0xe] sm:$0x3]  ;;  %667 = vst.msk [vmem:[#allocation2 + $0xa] sm:$0x3] %vm661_vm0, %v658_v5 }
  0x22   : > { %668 = vst.msk [vmem:[#allocation2 + $0xc] sm:$0x3] %vm661_vm0, %v659_v6  ;;  %669 = vst.msk [vmem:[#allocation2 + $0xe] sm:$0x3] %vm661_vm0, %v660_v7 }
  0x23 PF: > { %v7251_v8 = vld [vmem:[%s7565_s19 + $0x8] sm:$0xff]   ;;  %v7441_v9 = vmov 0.0   ;;  %v7252_v10 = vld [vmem:[%s7565_s19] sm:$0xff]   ;;  %v695_v11 = vlaneseq  ;;  %vm7442_vm1 = vmmov 0   ;;  %v7443_v20 = vmov 1983009808   ;;  %s8974_s26 = scalar_lea.vmem %s8949_s2, %s7555_s29 }
  0x24   : > { %6777 = vmatprep.subr.bf16.mxu0 %v7441_v9  ;;  %6797 = vmatprep.subr.bf16.mxu1 %v7441_v9  ;;  %v693_v21 = vunpack.c.l.s4 %v7443_v20  ;;  %vm746_vm2 = vcmask 261120   ;;  %v7444_v36 = vmov 1966171168   ;;  %v6531_v38 = vld [vmem:[%s8974_s26] ss:$0 sm:$0xff]  ;;  %s7445_s27 = smov 96  }
  0x25   : > { %6778 = vmatpush3.bf16.msra.mxu0 %v7251_v8  ;;  %6781 = vmatprep.mubr.msk.bf16.mxu0 %vm7442_vm1, %v7441_v9  ;;  %v670_v12 = vld [vmem:[#allocation2] sm:$0x3]  ;;  %v671_v13 = vld [vmem:[#allocation2 + $0x2] sm:$0x3]  ;;  %v7645_v22 = vshrl.u32 %v695_v11, 7  ;;  %v797_v37 = vunpack.c.l.s4 %v7444_v36  ;;  %s7446_s15 = smov 64  }
  0x26   : > { %v672_v14 = vld [vmem:[#allocation2 + $0x4] sm:$0x3]  ;;  %6779 = vmatprep.subr.bf16.mxu0 %v7441_v9  ;;  %6799 = vmatprep.mubr.msk.bf16.mxu1 %vm7442_vm1, %v7441_v9  ;;  %v690_v23 = vcombine.low %v670_v12, %v671_v13  ;;  %v694_v25 = vunpack.c.0.s8 %v693_v21  ;;  %vm911_vm3 = vcmask 64512   ;;  %vm1495_vm4 = vcmask 1040384   ;;  %s7447_s30 = smov 88   ;;  %s7448_s18 = smov 120  }
  0x27   : > { %v673_v15 = vld [vmem:[#allocation2 + $0x6] sm:$0x3]  ;;  %v674_v16 = vld [vmem:[#allocation2 + $0x8] sm:$0x3]  ;;  %v798_v40 = vunpack.c.0.s8 %v797_v37  ;;  %vm1392_vm5 = vcmask 9216   ;;  %s7449_s20 = smov 56  }
  0x28   : > { %v675_v17 = vld [vmem:[#allocation2 + $0xa] sm:$0x3]  ;;  %v691_v24 = vcombine.low %v672_v14, %v673_v15  ;;  %v7649_v28 = vsub.s32 %v694_v25, %v7645_v22  ;;  %vm1491_vm6 = vcmask 15360   ;;  %vm1883_vm7 = vcmask 57344   ;;  %s7450_s21 = smov 80   ;;  %s7451_s22 = smov 112  }
  0x29   : > { %v676_v18 = vld [vmem:[#allocation2 + $0xc] sm:$0x3]  ;;  %v677_v19 = vld [vmem:[#allocation2 + $0xe] sm:$0x3]  ;;  %6780 = vmatpush3.bf16.msra.mxu0 %v7252_v10  ;;  %v707_v26 = vcombine.low %v674_v16, %v675_v17  ;;  %v7664_v44 = vsub.s32 %v798_v40, %v7645_v22  ;;  %s7452_s23 = smov 48   ;;  %s7453_s16 = smov 72  }
  0x2a   : > { %v708_v27 = vcombine.low %v676_v18, %v677_v19  ;;  %6785 = vmatprep.subr.bf16.mxu0 %v7441_v9  ;;  %v698_v29 = vrot.slane %v690_v23, %v7649_v28  ;;  %v705_v30 = vrot.slane %v691_v24, %v7649_v28  ;;  %s7454_s19 = smov 104   ;;  %s7455_s24 = smov 40   ;;  %vm3036_vm8 = vcmask 122944  }
  0x2b   : > { %v715_v31 = vrot.slane %v707_v26, %v7649_v28  ;;  %s7456_s26 = smov 8   ;;  %vm4077_vm9 = vcmask 188544   ;;  %vm5118_vm10 = vcmask 254144   ;;  %vm6311_vm13 = vcmask 254976   ;;  %p6622_p6 = scmp.ne.s32.totalorder %s7431_s25, 1 }
  0x2c   : > { %v722_v32 = vrot.slane %v708_v27, %v7649_v28  ;;  %v706_v33 = vcombine.low %v698_v29, %v705_v30 }
  0x2e   : > { %v723_v34 = vcombine.low %v715_v31, %v722_v32 }
  0x30   : > { %v726_v35 = vpack.c.bf16 %v723_v34, %v706_v33 }
  0x32   : > { %6782 = vmatmul.mubr.msk.bf16.vlgmr.msra.gmra.mxu0 %vm746_vm2, %v726_v35 }
  0x33   : > { %6787 = vmatprep.mubr.msk.bf16.mxu0 %vm7442_vm1, %v7441_v9 }
  0xf2   : > { %v784_v39 = vpop.f32.mrf.mxu0 }
  0xf3   : > { %v785_v42 = vadd.f32 %v6531_v38, %v784_v39 }
  0xf4   : > { %v6783_v41 = vpop.f32.mrf.mxu0 }
  0xf5   : > { %v791_v47 = vmul.f32 0.35355338, %v785_v42 }
  0xf6   : > { %v787_v43 = vpop.f32.mrf.mxu0 }
  0xf7   : > { %v788_v45 = vadd.f32 %v6531_v38, %v787_v43 }
  0xf8   : > { %v6784_v46 = vpop.f32.mrf.mxu0 }
  0xf9   : > { %v7666_v48 = vmul.f32 0.35355338, %v788_v45  ;;  %v844_v49 = vpack.c.bf16 %v788_v45, %v785_v42  ;;  %v6536_v50 = vpack.c.bf16 %v788_v45, %v788_v45 }
  0xfb   : > { %v793_v51 = vpack.c.bf16 %v7666_v48, %v791_v47  ;;  %v853_v52 = vrot.slane %v844_v49, %v7664_v44  ;;  %v860_v53 = vrot.slane %v6536_v50, %v7664_v44  ;;  %v6535_v26 = vpack.c.bf16 %v7666_v48, %v7666_v48 }
  0xfd   : > { %v861_v54 = vcombine.high %v853_v52, %v853_v52  ;;  %v869_v55 = vrot.slane %v853_v52, %v7664_v44  ;;  %v862_v56 = vcombine.high %v860_v53, %v860_v53  ;;  %v876_v62 = vrot.slane %v860_v53, %v7664_v44 }
  0xfe   : > { %v802_v17 = vrot.slane %v793_v51, %v7664_v44  ;;  %v809_v34 = vrot.slane %v6535_v26, %v7664_v44 }
  0xff   : > { %v883_v57 = vrot.slane %v861_v54, %v7664_v44  ;;  %v891_v58 = vcombine.high %v869_v55, %v869_v55  ;;  %v901_v59 = vrot.slane %v869_v55, %v7664_v44  ;;  %v890_v1 = vrot.slane %v862_v56, %v7664_v44 }
 0x100   : > { %v892_v4 = vcombine.high %v876_v62, %v876_v62  ;;  %v1150_v6 = vrot.slane %v876_v62, %v7664_v44  ;;  %v7726_v23 = vrot.slane %v802_v17, %v7664_v44  ;;  %v810_v32 = vcombine.high %v802_v17, %v802_v17 }
 0x101   : > { %v893_v60 = vcombine.high %v883_v57, %v883_v57  ;;  %v1026_v61 = vrot.slane %v891_v58, %v7664_v44  ;;  %v7677_v63 = vrot.slane %v901_v59, %v7664_v44  ;;  %v964_v0 = vrot.slane %v883_v57, %v7664_v44 }
 0x102   : > { %v894_v7 = vcombine.high %v890_v1, %v890_v1  ;;  %v1212_v10 = vrot.slane %v890_v1, %v7664_v44  ;;  %v7698_v11 = vrot.slane %v1150_v6, %v7664_v44  ;;  %v1274_v12 = vrot.slane %v892_v4, %v7664_v44 }
 0x103   : > { %v7682_v2 = vrot.slane %v1026_v61, %v7664_v44  ;;  %v1088_v3 = vrot.slane %v893_v60, %v7664_v44  ;;  %909 = vrot.lane.b32.xlu0 %v7677_v63, %s7445_s27  ;;  %v7688_v5 = vrot.slane %v964_v0, %v7664_v44  ;;  %v7733_v29 = vcombine.high %v7726_v23, %v7726_v23 }
 0x104   : > { %v7702_v13 = vrot.slane %v1212_v10, %v7664_v44  ;;  %v1336_v14 = vrot.slane %v894_v7, %v7664_v44  ;;  %v7708_v15 = vrot.slane %v1274_v12, %v7664_v44  ;;  %v7749_v36 = vrot.slane %v810_v32, %v7664_v44 }
 0x105   : > { %1034 = vrot.lane.b32.xlu1 %v7682_v2, %s7445_s27  ;;  %v7692_v8 = vrot.slane %v1088_v3, %v7664_v44  ;;  %v7752_v37 = vrot.slane %v809_v34, %v7664_v44  ;;  %v811_v47 = vcombine.high %v809_v34, %v809_v34 }
 0x106   : > { %v7711_v16 = vrot.slane %v1336_v14, %v7664_v44  ;;  %v7768_v42 = vcombine.high %v7749_v36, %v7749_v36 }
 0x107   : > { %972 = vrot.lane.b32.xlu0 %v7688_v5, %s7445_s27  ;;  %v7772_v43 = vcombine.high %v7752_v37, %v7752_v37  ;;  %v7787_v48 = vrot.slane %v811_v47, %v7664_v44 }
 0x109   : > { %1096 = vrot.lane.b32.xlu1 %v7692_v8, %s7445_s27  ;;  %v7797_v51 = vcombine.high %v7787_v48, %v7787_v48 }
 0x10b   : > { %1158 = vrot.lane.b32.xlu0 %v7698_v11, %s7445_s27 }
 0x10d   : > { %1220 = vrot.lane.b32.xlu1 %v7702_v13, %s7445_s27 }
 0x10f   : > { %1282 = vrot.lane.b32.xlu0 %v7708_v15, %s7445_s27 }
 0x111   : > { %1344 = vrot.lane.b32.xlu1 %v7711_v16, %s7445_s27  ;;  %s7457_s27 = smov 16  }
 0x113   : > { %1539 = vrot.lane.b32.xlu0 %v7688_v5, %s7446_s15 }
 0x115   : > { %1489 = vrot.lane.b32.xlu1 %v7677_v63, %s7446_s15 }
 0x119   : > { %1587 = vrot.lane.b32.xlu1 %v7682_v2, %s7446_s15 }
 0x175   : > { %v910_v18 = vpop.permute.xlu0 %909 }
 0x176   : > { %v916_v19 = vsel %vm911_vm3, %v910_v18, 0 }
 0x177   : > { %v1035_v20 = vpop.permute.xlu1 %1034  ;;  %6786 = vmatpush3.bf16.xpose.msra.mxu0 %v916_v19 }
 0x178   : > { %v1040_v21 = vsel %vm911_vm3, %v1035_v20, 0  ;;  %6791 = vmatprep.subr.bf16.mxu0 %v7441_v9 }
 0x179   : > { %6798 = vmatpush3.bf16.xpose.msra.mxu1 %v1040_v21  ;;  %v973_v24 = vpop.permute.xlu0 %972 }
 0x17a   : > { %6809 = vmatprep.subr.bf16.mxu1 %v7441_v9  ;;  %v978_v30 = vsel %vm911_vm3, %v973_v24, 0 }
 0x17b   : > { %v1097_v25 = vpop.permute.xlu1 %1096 }
 0x17c   : > { %v1102_v38 = vsel %vm911_vm3, %v1097_v25, 0 }
 0x17d   : > { %v1159_v27 = vpop.permute.xlu0 %1158 }
 0x17e   : > { %6788 = vmatmul.mubr.msk.bf16.vlgmr.msra.gmra.mxu0 %vm911_vm3, %v7726_v23  ;;  %v1164_v31 = vsel %vm911_vm3, %v1159_v27, 0 }
 0x17f   : > { %6792 = vmatpush3.bf16.xpose.msra.mxu0 %v978_v30  ;;  %v1221_v33 = vpop.permute.xlu1 %1220  ;;  %6793 = vmatprep.mubr.msk.bf16.mxu0 %vm7442_vm1, %v7441_v9 }
 0x180   : > { %6800 = vmatmul.mubr.msk.bf16.vlgmr.msra.gmra.mxu1 %vm911_vm3, %v7733_v29  ;;  %6803 = vmatprep.subr.bf16.mxu0 %v7441_v9  ;;  %v1226_v45 = vsel %vm911_vm3, %v1221_v33, 0 }
 0x181   : > { %6810 = vmatpush3.bf16.xpose.msra.mxu1 %v1164_v31  ;;  %6811 = vmatprep.mubr.msk.bf16.mxu1 %vm7442_vm1, %v7441_v9  ;;  %v1283_v35 = vpop.permute.xlu0 %1282 }
 0x182   : > { %6821 = vmatprep.subr.bf16.mxu1 %v7441_v9  ;;  %v1288_v40 = vsel %vm911_vm3, %v1283_v35, 0 }
 0x183   : > { %v1345_v39 = vpop.permute.xlu1 %1344 }
 0x184   : > { %v1350_v49 = vsel %vm911_vm3, %v1345_v39, 0 }
 0x185   : > { %v1540_v50 = vpop.permute.xlu0 %1539 }
 0x186   : > { %6794 = vmatmul.mubr.msk.bf16.vlgmr.msra.gmra.mxu0 %vm911_vm3, %v7749_v36  ;;  %v1545_v52 = vsel %vm1495_vm4, %v1540_v50, 0 }
 0x187   : > { %6804 = vmatpush3.bf16.xpose.msra.mxu0 %v1102_v38  ;;  %6805 = vmatprep.mubr.msk.bf16.mxu0 %vm7442_vm1, %v7441_v9  ;;  %v1490_v41 = vpop.permute.xlu1 %1489 }
 0x188   : > { %6812 = vmatmul.mubr.msk.bf16.vlgmr.msra.gmra.mxu1 %vm911_vm3, %v7752_v37  ;;  %6815 = vmatprep.subr.bf16.mxu0 %v7441_v9  ;;  %v1497_v46 = vsel %vm1495_vm4, %v1490_v41, 0 }
 0x189   : > { %6822 = vmatpush3.bf16.xpose.msra.mxu1 %v1288_v40  ;;  %6823 = vmatprep.mubr.msk.bf16.mxu1 %vm7442_vm1, %v7441_v9 }
 0x18a   : > { %6833 = vmatprep.subr.bf16.mxu1 %v7441_v9 }
 0x18e   : > { %6806 = vmatmul.mubr.msk.bf16.vlgmr.msra.gmra.mxu0 %vm911_vm3, %v7768_v42 }
 0x18f   : > { %6816 = vmatpush3.bf16.xpose.msra.mxu0 %v1226_v45  ;;  %6817 = vmatprep.mubr.msk.bf16.mxu0 %vm7442_vm1, %v7441_v9 }
 0x190   : > { %6824 = vmatmul.mubr.msk.bf16.vlgmr.msra.gmra.mxu1 %vm911_vm3, %v7772_v43  ;;  %6827 = vmatprep.subr.bf16.mxu0 %v7441_v9 }
 0x191   : > { %6834 = vmatpush3.bf16.msra.mxu1 %v1497_v46  ;;  %6835 = vmatprep.mubr.msk.bf16.mxu1 %vm7442_vm1, %v7441_v9 }
 0x192   : > { %6845 = vmatprep.subr.bf16.mxu1 %v7441_v9 }
 0x196   : > { %6818 = vmatmul.mubr.msk.bf16.vlgmr.msra.gmra.mxu0 %vm911_vm3, %v7787_v48 }
 0x197   : > { %6828 = vmatpush3.bf16.xpose.msra.mxu0 %v1350_v49  ;;  %6829 = vmatprep.mubr.msk.bf16.mxu0 %vm7442_vm1, %v7441_v9 }
 0x198   : > { %6839 = vmatprep.subr.bf16.mxu0 %v7441_v9 }
 0x19e   : > { %6830 = vmatmul.mubr.msk.bf16.vlgmr.msra.gmra.mxu0 %vm911_vm3, %v7797_v51 }
 0x19f   : > { %6840 = vmatpush3.bf16.msra.mxu0 %v1545_v52  ;;  %6841 = vmatprep.mubr.msk.bf16.mxu0 %vm7442_vm1, %v7441_v9  ;;  %v7826_v52 = vpop.permute.xlu1 %1587 }
 0x1a0   : > { %6851 = vmatprep.subr.bf16.mxu0 %v7441_v9 }
 0x23e   : > { %v952_v53 = vpop.f32.mrf.mxu0 }
 0x23f   : > { %v1393_v55 = vsel %vm1392_vm5, %v952_v53, -inf }
 0x240   : > { %v7805_v54 = vpop.f32.mrf.mxu1  ;;  %1394 = vmax.xlane.f32.xlu0 %v1393_v55  ;;  %v6789_v56 = vpop.f32.mrf.mxu0 }
 0x241   : > { %v1399_v60 = vsel %vm1392_vm5, %v7805_v54, -inf }
 0x242   : > { %v6801_v57 = vpop.f32.mrf.mxu1  ;;  %v955_v58 = vpop.f32.mrf.mxu0 }
 0x244   : > { %v1079_v59 = vpop.f32.mrf.mxu1  ;;  %1400 = vmax.xlane.f32.xlu0 %v1399_v60  ;;  %v6790_v61 = vpop.f32.mrf.mxu0 }
 0x246   : > { %v6802_v62 = vpop.f32.mrf.mxu1  ;;  %v1014_v0 = vpop.f32.mrf.mxu0 }
 0x247   : > { %v1396_v3 = vsel %vm1392_vm5, %v1014_v0, -inf }
 0x248   : > { %v7810_v1 = vpop.f32.mrf.mxu1  ;;  %1397 = vmax.xlane.f32.xlu1 %v1396_v3  ;;  %v6795_v4 = vpop.f32.mrf.mxu0 }
 0x249   : > { %v1405_v12 = vsel %vm1392_vm5, %v7810_v1, -inf }
 0x24a   : > { %v6813_v6 = vpop.f32.mrf.mxu1  ;;  %v1017_v7 = vpop.f32.mrf.mxu0 }
 0x24c   : > { %v1203_v10 = vpop.f32.mrf.mxu1  ;;  %1406 = vmax.xlane.f32.xlu1 %v1405_v12  ;;  %v6796_v14 = vpop.f32.mrf.mxu0 }
 0x24e   : > { %v6814_v17 = vpop.f32.mrf.mxu1  ;;  %v1138_v18 = vpop.f32.mrf.mxu0 }
 0x24f   : > { %v1402_v20 = vsel %vm1392_vm5, %v1138_v18, -inf }
 0x250   : > { %v7815_v19 = vpop.f32.mrf.mxu1  ;;  %1403 = vmax.xlane.f32.xlu0 %v1402_v20  ;;  %v6807_v21 = vpop.f32.mrf.mxu0 }
 0x251   : > { %v1411_v24 = vsel %vm1392_vm5, %v7815_v19, -inf }
 0x252   : > { %v6825_v25 = vpop.f32.mrf.mxu1  ;;  %1412 = vmax.xlane.f32.xlu1 %v1411_v24  ;;  %v1141_v26 = vpop.f32.mrf.mxu0 }
 0x254   : > { %v1327_v27 = vpop.f32.mrf.mxu1  ;;  %v6808_v30 = vpop.f32.mrf.mxu0 }
 0x256   : > { %v6826_v31 = vpop.f32.mrf.mxu1  ;;  %v1262_v32 = vpop.f32.mrf.mxu0 }
 0x257   : > { %v1408_v33 = vsel %vm1392_vm5, %v1262_v32, -inf }
 0x258   : > { %1409 = vmax.xlane.f32.xlu0 %v1408_v33  ;;  %v6819_v34 = vpop.f32.mrf.mxu0 }
 0x25a   : > { %v1265_v35 = vpop.f32.mrf.mxu0 }
 0x25c   : > { %v6820_v38 = vpop.f32.mrf.mxu0 }
 0x25e   : > { %v1386_v39 = vpop.f32.mrf.mxu0 }
 0x25f   : > { %v1414_v40 = vsel %vm1392_vm5, %v1386_v39, -inf }
 0x260   : > { %1415 = vmax.xlane.f32.xlu0 %v1414_v40  ;;  %v6831_v41 = vpop.f32.mrf.mxu0 }
 0x261   : > { %v1962_v41 = vrot.slane %v7749_v36, %v7664_v44  ;;  %v2218_v36 = vrot.slane %v7787_v48, %v7664_v44  ;;  %v2026_v48 = vrot.slane %v7733_v29, %v7664_v44  ;;  %v2154_v29 = vrot.slane %v7752_v37, %v7664_v44 }
 0x262   : > { %v1389_v45 = vpop.f32.mrf.mxu0 }
 0x263   : > { %1635 = vrot.lane.b32.xlu1 %v7692_v8, %s7446_s15  ;;  %v7874_v45 = vrot.slane %v1962_v41, %v7664_v44 }
 0x264   : > { %v6832_v46 = vpop.f32.mrf.mxu0 }
 0x265   : > { %v2090_v46 = vrot.slane %v7768_v42, %v7664_v44  ;;  %v7896_v42 = vrot.slane %v2218_v36, %v7664_v44 }
 0x276   : > { %1683 = vrot.lane.b32.xlu0 %v7698_v11, %s7446_s15 }
 0x2c9   : > { %v1395_v47 = vpop.xlane.xlu0 %1394 }
 0x2ca   : > { %v1417_v49 = vsub.f32 %v952_v53, %v1395_v47  ;;  %v7883_v47 = vrot.slane %v2090_v46, %v7664_v44 }
 0x2cc   : > { %v1425_v50 = vmul.f32 1.442695, %v1417_v49  ;;  %v1898_v49 = vrot.slane %v7726_v23, %v7664_v44  ;;  %v2346_v23 = vrot.slane %v7797_v51, %v7664_v44  ;;  %v7930_v51 = vrot.slane %v2154_v29, %v7664_v44 }
 0x2cd   : > { %v1401_v58 = vpop.xlane.xlu0 %1400 }
 0x2ce   : > { %7265 = vpow2.f32 %v1425_v50  ;;  %v7899_v50 = vrot.slane %v1898_v49, %v7664_v44 }
 0x2d1   : > { %v1398_v55 = vpop.xlane.xlu1 %1397 }
 0x2d2   : > { %v1418_v56 = vsub.f32 %v1014_v0, %v1398_v55  ;;  %v7914_v55 = vrot.slane %v2346_v23, %v7664_v44 }
 0x2d4   : > { %v1427_v57 = vmul.f32 1.442695, %v1418_v56  ;;  %v7917_v56 = vrot.slane %v2026_v48, %v7664_v44 }
 0x2d5   : > { %v1407_v20 = vpop.xlane.xlu1 %1406 }
 0x2d6   : > { %7267 = vpow2.f32 %v1427_v57  ;;  %v1421_v24 = vsub.f32 %v7810_v1, %v1407_v20  ;;  %v2282_v57 = vrot.slane %v7772_v43, %v7664_v44 }
 0x2d8   : > { %v1433_v26 = vmul.f32 1.442695, %v1421_v24  ;;  %v7943_v37 = vrot.slane %v2282_v57, %v7664_v44 }
 0x2d9   : > { %v1404_v59 = vpop.xlane.xlu0 %1403 }
 0x2da   : > { %v1420_v60 = vsub.f32 %v1138_v18, %v1404_v59  ;;  %v1419_v18 = vsub.f32 %v7805_v54, %v1401_v58 }
 0x2db   : > { %v7828_v61 = vpop.eup %7265  ;;  %v1413_v25 = vpop.xlane.xlu1 %1412 }
 0x2dc   : > { %v1431_v62 = vmul.f32 1.442695, %v1420_v60  ;;  %v1441_v3 = vsel %vm1392_vm5, %v7828_v61, 0.0  ;;  %v1429_v21 = vmul.f32 1.442695, %v1419_v18  ;;  %v1423_v27 = vsub.f32 %v7815_v19, %v1413_v25 }
 0x2dd   : > { %1442 = vadd.xlane.f32.xlu1 %v1441_v3 }
 0x2de   : > { %7269 = vpow2.f32 %v1431_v62  ;;  %v1437_v30 = vmul.f32 1.442695, %v1423_v27 }
 0x2df   : > { %v1636_v58 = vpop.permute.xlu1 %1635 }
 0x2e0   : > { %v1641_v18 = vsel %vm1495_vm4, %v1636_v58, 0 }
 0x2e1   : > { %v1410_v53 = vpop.xlane.xlu0 %1409 }
 0x2e2   : > { %v1422_v4 = vsub.f32 %v1262_v32, %v1410_v53 }
 0x2e3   : > { %v7832_v6 = vpop.eup %7267 }
 0x2e4   : > { %v1435_v7 = vmul.f32 1.442695, %v1422_v4  ;;  %v1444_v0 = vsel %vm1392_vm5, %v7832_v6, 0.0 }
 0x2e5   : > { %1445 = vadd.xlane.f32.xlu0 %v1444_v0 }
 0x2e6   : > { %7271 = vpow2.f32 %v1435_v7  ;;  %v1593_v7 = vsel %vm1495_vm4, %v7826_v52, 0 }
 0x2e7   : > { %7273 = vpow2.f32 %v1429_v21 }
 0x2e8   : > { %7275 = vpow2.f32 %v1433_v26 }
 0x2e9   : > { %7277 = vpow2.f32 %v1437_v30  ;;  %v1416_v32 = vpop.xlane.xlu0 %1415 }
 0x2ea   : > { %v1424_v33 = vsub.f32 %v1386_v39, %v1416_v32 }
 0x2eb   : > { %v7836_v10 = vpop.eup %7269 }
 0x2ec   : > { %v1450_v12 = vsel %vm1392_vm5, %v7836_v10, 0.0  ;;  %v1439_v1 = vmul.f32 1.442695, %v1424_v33 }
 0x2ed   : > { %1451 = vadd.xlane.f32.xlu0 %v1450_v12  ;;  %v1684_v60 = vpop.permute.xlu0 %1683 }
 0x2ee   : > { %1731 = vrot.lane.b32.xlu1 %v7702_v13, %s7446_s15  ;;  %7279 = vpow2.f32 %v1439_v1  ;;  %v1689_v41 = vsel %vm1495_vm4, %v1684_v60, 0 }
 0x2f3   : > { %v7842_v14 = vpop.eup %7271 }
 0x2f4   : > { %v1456_v17 = vsel %vm1392_vm5, %v7842_v14, 0.0  ;;  %v7851_v31 = vpop.eup %7273 }
 0x2f5   : > { %1457 = vadd.xlane.f32.xlu0 %v1456_v17  ;;  %v1447_v54 = vsel %vm1392_vm5, %v7851_v31, 0.0  ;;  %v7855_v34 = vpop.eup %7275 }
 0x2f6   : > { %v1453_v19 = vsel %vm1392_vm5, %v7855_v34, 0.0  ;;  %v7859_v35 = vpop.eup %7277 }
 0x2f7   : > { %v1459_v38 = vsel %vm1392_vm5, %v7859_v35, 0.0 }
 0x2fb   : > { %v7863_v40 = vpop.eup %7279 }
 0x2fc   : > { %v1462_v39 = vsel %vm1392_vm5, %v7863_v40, 0.0 }
 0x30b   : > { %1779 = vrot.lane.b32.xlu0 %v7708_v15, %s7446_s15 }
 0x312   : > { %1448 = vadd.xlane.f32.xlu1 %v1447_v54 }
 0x316   : > { %1454 = vadd.xlane.f32.xlu1 %v1453_v19 }
 0x31a   : > { %1460 = vadd.xlane.f32.xlu1 %v1459_v38 }
 0x32a   : > { %1463 = vadd.xlane.f32.xlu0 %v1462_v39 }
 0x32b   : > { %1827 = vrot.lane.b32.xlu1 %v7711_v16, %s7446_s15  ;;  %s7458_s15 = smov 24  }
 0x32f   : > { %1972 = vrot.lane.b32.xlu1 %v7688_v5, %s7447_s30 }
 0x333   : > { %1970 = vrot.lane.b32.xlu1 %v7874_v45, %s7448_s18 }
 0x337   : > { %2100 = vrot.lane.b32.xlu1 %v7692_v8, %s7447_s30 }
 0x33b   : > { %2098 = vrot.lane.b32.xlu1 %v7883_v47, %s7448_s18 }
 0x33f   : > { %2228 = vrot.lane.b32.xlu1 %v7702_v13, %s7447_s30 }
 0x340   : > { %1908 = vrot.lane.b32.xlu0 %v7677_v63, %s7447_s30 }
 0x343   : > { %2226 = vrot.lane.b32.xlu1 %v7896_v42, %s7448_s18 }
 0x344   : > { %1906 = vrot.lane.b32.xlu0 %v7899_v50, %s7448_s18 }
 0x347   : > { %2356 = vrot.lane.b32.xlu1 %v7711_v16, %s7447_s30 }
 0x348   : > { %2036 = vrot.lane.b32.xlu0 %v7682_v2, %s7447_s30 }
 0x34b   : > { %2354 = vrot.lane.b32.xlu1 %v7914_v55, %s7448_s18 }
 0x34c   : > { %2034 = vrot.lane.b32.xlu0 %v7917_v56, %s7448_s18 }
 0x34f   : > { %2500 = vrot.lane.b32.xlu1 %v7677_v63, %s7449_s20 }
 0x350   : > { %2164 = vrot.lane.b32.xlu0 %v7698_v11, %s7447_s30 }
 0x353   : > { %2596 = vrot.lane.b32.xlu1 %v7682_v2, %s7449_s20 }
 0x354   : > { %2162 = vrot.lane.b32.xlu0 %v7930_v51, %s7448_s18 }
 0x357   : > { %2644 = vrot.lane.b32.xlu1 %v7692_v8, %s7449_s20 }
 0x358   : > { %2292 = vrot.lane.b32.xlu0 %v7708_v15, %s7447_s30  ;;  %s8975_s30 = sld [smem:[#allocation7_spill]] }
 0x35c   : > { %2290 = vrot.lane.b32.xlu0 %v7943_v37, %s7448_s18 }
 0x360   : > { %2548 = vrot.lane.b32.xlu0 %v7688_v5, %s7449_s20 }
 0x366   : > { %v1443_v59 = vpop.xlane.xlu1 %1442 }
 0x367   : > { %7281 = vrcp.f32 %v1443_v59 }
 0x36a   : > { %v1732_v21 = vpop.permute.xlu1 %1731 }
 0x36e   : > { %v1446_v43 = vpop.xlane.xlu0 %1445 }
 0x36f   : > { %7283 = vrcp.f32 %v1446_v43 }
 0x374   : > { %v7282_v62 = vpop.eup %7281 }
 0x375   : > { %v1473_v3 = vmul.f32 %v7282_v62, %v7828_v61 }
 0x376   : > { %v1452_v53 = vpop.xlane.xlu0 %1451 }
 0x377   : > { %7285 = vrcp.f32 %v1452_v53  ;;  %v1481_v4 = vpack.c.bf16 %v1473_v3, %v1473_v3 }
 0x379   : > { %6836 = vmatmul.mubr.msk.bf16.vlgmr.msra.gmra.mxu1 %vm1491_vm6, %v1481_v4 }
 0x37a   : > { %6846 = vmatpush3.bf16.msra.mxu1 %v1593_v7  ;;  %6847 = vmatprep.mubr.msk.bf16.mxu1 %vm7442_vm1, %v7441_v9 }
 0x37b   : > { %6857 = vmatprep.subr.bf16.mxu1 %v7441_v9 }
 0x37c   : > { %v7284_v0 = vpop.eup %7283 }
 0x37d   : > { %v1474_v12 = vmul.f32 %v7284_v0, %v7832_v6  ;;  %v1737_v6 = vsel %vm1495_vm4, %v1732_v21, 0 }
 0x37e   : > { %v1458_v17 = vpop.xlane.xlu0 %1457 }
 0x37f   : > { %7287 = vrcp.f32 %v1458_v17  ;;  %v1482_v61 = vpack.c.bf16 %v1474_v12, %v1474_v12 }
 0x381   : > { %6842 = vmatmul.mubr.msk.bf16.vlgmr.msra.gmra.mxu0 %vm1491_vm6, %v1482_v61 }
 0x382   : > { %6852 = vmatpush3.bf16.msra.mxu0 %v1641_v18  ;;  %6853 = vmatprep.mubr.msk.bf16.mxu0 %vm7442_vm1, %v7441_v9  ;;  %v1780_v46 = vpop.permute.xlu0 %1779 }
 0x383   : > { %6863 = vmatprep.subr.bf16.mxu0 %v7441_v9  ;;  %v1785_v29 = vsel %vm1495_vm4, %v1780_v46, 0 }
 0x384   : > { %v7286_v52 = vpop.eup %7285 }
 0x385   : > { %v1476_v20 = vmul.f32 %v7286_v52, %v7836_v10 }
 0x387   : > { %v1484_v24 = vpack.c.bf16 %v1476_v20, %v1476_v20 }
 0x389   : > { %6854 = vmatmul.mubr.msk.bf16.vlgmr.msra.gmra.mxu0 %vm1491_vm6, %v1484_v24 }
 0x38a   : > { %6864 = vmatpush3.bf16.msra.mxu0 %v1737_v6  ;;  %6865 = vmatprep.mubr.msk.bf16.mxu0 %vm7442_vm1, %v7441_v9 }
 0x38b   : > { %6875 = vmatprep.subr.bf16.mxu0 %v7441_v9 }
 0x38c   : > { %v7288_v25 = vpop.eup %7287 }
 0x38d   : > { %v1478_v26 = vmul.f32 %v7288_v25, %v7842_v14 }
 0x38f   : > { %v1486_v27 = vpack.c.bf16 %v1478_v26, %v1478_v26 }
 0x391   : > { %6866 = vmatmul.mubr.msk.bf16.vlgmr.msra.gmra.mxu0 %vm1491_vm6, %v1486_v27 }
 0x392   : > { %6877 = vmatprep.mubr.msk.bf16.mxu0 %vm7442_vm1, %v7441_v9 }
 0x39b   : > { %v1449_v10 = vpop.xlane.xlu1 %1448 }
 0x39c   : > { %7289 = vrcp.f32 %v1449_v10 }
 0x39f   : > { %v1455_v30 = vpop.xlane.xlu1 %1454 }
 0x3a0   : > { %7291 = vrcp.f32 %v1455_v30 }
 0x3a3   : > { %v1461_v32 = vpop.xlane.xlu1 %1460 }
 0x3a4   : > { %7293 = vrcp.f32 %v1461_v32 }
 0x3a7   : > { %v1828_v33 = vpop.permute.xlu1 %1827 }
 0x3a8   : > { %v1833_v54 = vsel %vm1495_vm4, %v1828_v33, 0 }
 0x3a9   : > { %v7290_v1 = vpop.eup %7289  ;;  %6876 = vmatpush3.bf16.msra.mxu0 %v1833_v54 }
 0x3aa   : > { %v1475_v19 = vmul.f32 %v7290_v1, %v7851_v31  ;;  %6887 = vmatprep.subr.bf16.mxu0 %v7441_v9 }
 0x3ab   : > { %v1973_v14 = vpop.permute.xlu1 %1972 }
 0x3ac   : > { %v1483_v38 = vpack.c.bf16 %v1475_v19, %v1475_v19  ;;  %v1978_v12 = vsel %vm911_vm3, %v1973_v14, 0 }
 0x3ad   : > { %v7292_v39 = vpop.eup %7291 }
 0x3ae   : > { %6848 = vmatmul.mubr.msk.bf16.vlgmr.msra.gmra.mxu1 %vm1491_vm6, %v1483_v38  ;;  %v1477_v36 = vmul.f32 %v7292_v39, %v7855_v34 }
 0x3af   : > { %6858 = vmatpush3.bf16.msra.mxu1 %v1689_v41  ;;  %6859 = vmatprep.mubr.msk.bf16.mxu1 %vm7442_vm1, %v7441_v9  ;;  %v1971_v49 = vpop.permute.xlu1 %1970 }
 0x3b0   : > { %6869 = vmatprep.subr.bf16.mxu1 %v7441_v9  ;;  %v1485_v23 = vpack.c.bf16 %v1477_v36, %v1477_v36 }
 0x3b1   : > { %v7294_v48 = vpop.eup %7293 }
 0x3b2   : > { %v1479_v59 = vmul.f32 %v7294_v48, %v7859_v35 }
 0x3b3   : > { %v1464_v31 = vpop.xlane.xlu0 %1463  ;;  %v2101_v57 = vpop.permute.xlu1 %2100 }
 0x3b4   : > { %7295 = vrcp.f32 %v1464_v31  ;;  %v1487_v60 = vpack.c.bf16 %v1479_v59, %v1479_v59  ;;  %v2106_v52 = vsel %vm911_vm3, %v2101_v57, 0 }
 0x3b6   : > { %6860 = vmatmul.mubr.msk.bf16.vlgmr.msra.gmra.mxu1 %vm1491_vm6, %v1485_v23 }
 0x3b7   : > { %6870 = vmatpush3.bf16.msra.mxu1 %v1785_v29  ;;  %v1909_v58 = vpop.permute.xlu0 %1908  ;;  %6871 = vmatprep.mubr.msk.bf16.mxu1 %vm7442_vm1, %v7441_v9  ;;  %v2099_v43 = vpop.permute.xlu1 %2098 }
 0x3b8   : > { %6881 = vmatprep.subr.bf16.mxu1 %v7441_v9  ;;  %v1914_v62 = vsel %vm911_vm3, %v1909_v58, 0 }
 0x3bb   : > { %v1907_v34 = vpop.permute.xlu0 %1906  ;;  %v2229_v7 = vpop.permute.xlu1 %2228 }
 0x3bc   : > { %v2234_v25 = vsel %vm911_vm3, %v2229_v7, 0 }
 0x3be   : > { %6872 = vmatmul.mubr.msk.bf16.vlgmr.msra.gmra.mxu1 %vm1491_vm6, %v1487_v60 }
 0x3bf   : > { %6882 = vmatpush3.bf16.xpose.msra.mxu1 %v1914_v62  ;;  %v2037_v3 = vpop.permute.xlu0 %2036  ;;  %6883 = vmatprep.mubr.msk.bf16.mxu1 %vm7442_vm1, %v7441_v9 }
 0x3c0   : > { %6893 = vmatprep.subr.bf16.mxu1 %v7441_v9  ;;  %v2042_v17 = vsel %vm911_vm3, %v2037_v3, 0 }
 0x3c1   : > { %v7296_v53 = vpop.eup %7295 }
 0x3c2   : > { %v1480_v4 = vmul.f32 %v7296_v53, %v7863_v40  ;;  %v2227_v40 = vpop.permute.xlu1 %2226 }
 0x3c3   : > { %v2035_v0 = vpop.permute.xlu0 %2034 }
 0x3c4   : > { %v1488_v35 = vpack.c.bf16 %v1480_v4, %v1480_v4 }
 0x3c6   : > { %6878 = vmatmul.mubr.msk.bf16.vlgmr.msra.gmra.mxu0 %vm1491_vm6, %v1488_v35  ;;  %6884 = vmatmul.mubr.msk.bf16.vlgmr.msra.gmra.mxu1 %vm911_vm3, %v1907_v34  ;;  %v2357_v21 = vpop.permute.xlu1 %2356 }
 0x3c7   : > { %6888 = vmatpush3.bf16.xpose.msra.mxu0 %v1978_v12  ;;  %6894 = vmatpush3.bf16.xpose.msra.mxu1 %v2042_v17  ;;  %v2165_v61 = vpop.permute.xlu0 %2164  ;;  %v2362_v30 = vsel %vm911_vm3, %v2357_v21, 0 }
 0x3c8   : > { %6889 = vmatprep.mubr.msk.bf16.mxu0 %vm7442_vm1, %v7441_v9  ;;  %6895 = vmatprep.mubr.msk.bf16.mxu1 %vm7442_vm1, %v7441_v9  ;;  %v2170_v20 = vsel %vm911_vm3, %v2165_v61, 0 }
 0x3c9   : > { %6899 = vmatprep.subr.bf16.mxu0 %v7441_v9  ;;  %6905 = vmatprep.subr.bf16.mxu1 %v7441_v9 }
 0x3ca   : > { %v2355_v6 = vpop.permute.xlu1 %2354 }
 0x3cb   : > { %v2163_v18 = vpop.permute.xlu0 %2162 }
 0x3ce   : > { %6890 = vmatmul.mubr.msk.bf16.vlgmr.msra.gmra.mxu0 %vm911_vm3, %v1971_v49  ;;  %6896 = vmatmul.mubr.msk.bf16.vlgmr.msra.gmra.mxu1 %vm911_vm3, %v2035_v0  ;;  %v2501_v27 = vpop.permute.xlu1 %2500 }
 0x3cf   : > { %6900 = vmatpush3.bf16.xpose.msra.mxu0 %v2106_v52  ;;  %6906 = vmatpush3.bf16.xpose.msra.mxu1 %v2170_v20  ;;  %v2293_v24 = vpop.permute.xlu0 %2292  ;;  %v2506_v32 = vsel %vm1495_vm4, %v2501_v27, 0 }
 0x3d0   : > { %6901 = vmatprep.mubr.msk.bf16.mxu0 %vm7442_vm1, %v7441_v9  ;;  %6907 = vmatprep.mubr.msk.bf16.mxu1 %vm7442_vm1, %v7441_v9  ;;  %v2298_v26 = vsel %vm911_vm3, %v2293_v24, 0 }
 0x3d1   : > { %6911 = vmatprep.subr.bf16.mxu0 %v7441_v9  ;;  %6917 = vmatprep.subr.bf16.mxu1 %v7441_v9 }
 0x3d3   : > { %v2291_v10 = vpop.permute.xlu0 %2290 }
 0x3d6   : > { %6902 = vmatmul.mubr.msk.bf16.vlgmr.msra.gmra.mxu0 %vm911_vm3, %v2099_v43  ;;  %6908 = vmatmul.mubr.msk.bf16.vlgmr.msra.gmra.mxu1 %vm911_vm3, %v2163_v18 }
 0x3d7   : > { %6912 = vmatpush3.bf16.xpose.msra.mxu0 %v2234_v25  ;;  %6918 = vmatpush3.bf16.xpose.msra.mxu1 %v2298_v26  ;;  %v2549_v33 = vpop.permute.xlu0 %2548 }
 0x3d8   : > { %6913 = vmatprep.mubr.msk.bf16.mxu0 %vm7442_vm1, %v7441_v9  ;;  %6919 = vmatprep.mubr.msk.bf16.mxu1 %vm7442_vm1, %v7441_v9  ;;  %v2554_v54 = vsel %vm1495_vm4, %v2549_v33, 0 }
 0x3d9   : > { %6923 = vmatprep.subr.bf16.mxu0 %v7441_v9  ;;  %6929 = vmatprep.subr.bf16.mxu1 %v7441_v9 }
 0x3de   : > { %6914 = vmatmul.mubr.msk.bf16.vlgmr.msra.gmra.mxu0 %vm911_vm3, %v2227_v40  ;;  %6920 = vmatmul.mubr.msk.bf16.vlgmr.msra.gmra.mxu1 %vm911_vm3, %v2291_v10 }
 0x3df   : > { %6924 = vmatpush3.bf16.xpose.msra.mxu0 %v2362_v30  ;;  %6930 = vmatpush3.bf16.msra.mxu1 %v2506_v32 }
 0x3e0   : > { %6925 = vmatprep.mubr.msk.bf16.mxu0 %vm7442_vm1, %v7441_v9  ;;  %6935 = vmatprep.subr.bf16.mxu0 %v7441_v9 }
 0x3e1   : > { %6931 = vmatprep.mubr.msk.bf16.mxu1 %vm7442_vm1, %v7441_v9  ;;  %6941 = vmatprep.subr.bf16.mxu1 %v7441_v9 }
 0x3e6   : > { %6926 = vmatmul.mubr.msk.bf16.vlgmr.msra.gmra.mxu0 %vm911_vm3, %v2355_v6 }
 0x3e7   : > { %6936 = vmatpush3.bf16.msra.mxu0 %v2554_v54  ;;  %6937 = vmatprep.mubr.msk.bf16.mxu0 %vm7442_vm1, %v7441_v9 }
 0x3e8   : > { %6947 = vmatprep.subr.bf16.mxu0 %v7441_v9 }
 0x439   : > { %v1533_v1 = vpop.f32.mrf.mxu1 }
 0x43a   : > { %v1875_v19 = vpack.c.bf16 %v1533_v1, %v1533_v1 }
 0x43b   : > { %v6837_v14 = vpop.f32.mrf.mxu1 }
 0x43c   : > { %1884 = vst.msk [vmem:[#allocation3] sm:$0x1] %vm1883_vm7, %v1875_v19 }
 0x43d   : > { %v1536_v38 = vpop.f32.mrf.mxu1 }
 0x43f   : > { %v6838_v39 = vpop.f32.mrf.mxu1 }
 0x441   : > { %v1581_v41 = vpop.f32.mrf.mxu0 }
 0x442   : > { %v1876_v46 = vpack.c.bf16 %v1581_v41, %v1581_v41 }
 0x443   : > { %v6843_v36 = vpop.f32.mrf.mxu0 }
 0x444   : > { %1885 = vst.msk [vmem:[#allocation3 + $0x1] sm:$0x1] %vm1883_vm7, %v1876_v46 }
 0x445   : > { %v1584_v49 = vpop.f32.mrf.mxu0 }
 0x447   : > { %v6844_v31 = vpop.f32.mrf.mxu0 }
 0x449   : > { %v1677_v23 = vpop.f32.mrf.mxu0 }
 0x44a   : > { %v1878_v48 = vpack.c.bf16 %v1677_v23, %v1677_v23 }
 0x44b   : > { %v6855_v29 = vpop.f32.mrf.mxu0 }
 0x44c   : > { %1887 = vst.msk [vmem:[#allocation3 + $0x3] sm:$0x1] %vm1883_vm7, %v1878_v48 }
 0x44d   : > { %v1680_v57 = vpop.f32.mrf.mxu0 }
 0x44f   : > { %v6856_v58 = vpop.f32.mrf.mxu0 }
 0x451   : > { %v1773_v59 = vpop.f32.mrf.mxu0 }
 0x452   : > { %v1880_v34 = vpack.c.bf16 %v1773_v59, %v1773_v59 }
 0x453   : > { %v6867_v60 = vpop.f32.mrf.mxu0 }
 0x454   : > { %1889 = vst.msk [vmem:[#allocation3 + $0x5] sm:$0x1] %vm1883_vm7, %v1880_v34 }
 0x455   : > { %v1776_v43 = vpop.f32.mrf.mxu0 }
 0x457   : > { %v6868_v62 = vpop.f32.mrf.mxu0 }
 0x46e   : > { %v1629_v3 = vpop.f32.mrf.mxu1 }
 0x46f   : > { %v1877_v53 = vpack.c.bf16 %v1629_v3, %v1629_v3 }
 0x470   : > { %v6849_v4 = vpop.f32.mrf.mxu1 }
 0x471   : > { %1886 = vst.msk [vmem:[#allocation3 + $0x2] sm:$0x1] %vm1883_vm7, %v1877_v53 }
 0x472   : > { %v1632_v7 = vpop.f32.mrf.mxu1 }
 0x474   : > { %v6850_v0 = vpop.f32.mrf.mxu1 }
 0x476   : > { %v1725_v35 = vpop.f32.mrf.mxu1 }
 0x477   : > { %v1879_v12 = vpack.c.bf16 %v1725_v35, %v1725_v35 }
 0x478   : > { %v6861_v17 = vpop.f32.mrf.mxu1 }
 0x479   : > { %1888 = vst.msk [vmem:[#allocation3 + $0x4] sm:$0x1] %vm1883_vm7, %v1879_v12 }
 0x47a   : > { %v1728_v61 = vpop.f32.mrf.mxu1 }
 0x47c   : > { %v6862_v40 = vpop.f32.mrf.mxu1 }
 0x47e   : > { %v1821_v18 = vpop.f32.mrf.mxu1 }
 0x47f   : > { %v1881_v52 = vpack.c.bf16 %v1821_v18, %v1821_v18 }
 0x480   : > { %v6873_v20 = vpop.f32.mrf.mxu1 }
 0x481   : > { %1890 = vst.msk [vmem:[#allocation3 + $0x6] sm:$0x1] %vm1883_vm7, %v1881_v52 }
 0x482   : > { %v1824_v21 = vpop.f32.mrf.mxu1 }
 0x484   : > { %v6874_v24 = vpop.f32.mrf.mxu1 }
 0x486   : > { %v1869_v6 = vpop.f32.mrf.mxu0  ;;  %v1950_v25 = vpop.f32.mrf.mxu1 }
 0x487   : > { %v1882_v26 = vpack.c.bf16 %v1869_v6, %v1869_v6  ;;  %v2404_v27 = vsel %vm1392_vm5, %v1950_v25, -inf }
 0x488   : > { %2405 = vmax.xlane.f32.xlu0 %v2404_v27  ;;  %v6879_v10 = vpop.f32.mrf.mxu0  ;;  %v6885_v30 = vpop.f32.mrf.mxu1 }
 0x489   : > { %1891 = vst.msk [vmem:[#allocation3 + $0x7] sm:$0x1] %vm1883_vm7, %v1882_v26  ;;  %v8061_v26 = vpop.permute.xlu1 %2596 }
 0x48a   : > { %v1872_v32 = vpop.f32.mrf.mxu0  ;;  %v1953_v33 = vpop.f32.mrf.mxu1 }
 0x48c   : > { %v6880_v54 = vpop.f32.mrf.mxu0  ;;  %v6886_v1 = vpop.f32.mrf.mxu1 }
 0x48d   : > { %v8063_v32 = vpop.permute.xlu1 %2644 }
 0x48e   : > { %v2014_v19 = vpop.f32.mrf.mxu0  ;;  %v2078_v14 = vpop.f32.mrf.mxu1 }
 0x48f   : > { %v2410_v38 = vsel %vm1392_vm5, %v2078_v14, -inf  ;;  %v2407_v39 = vsel %vm1392_vm5, %v2014_v19, -inf }
 0x490   : > { %2411 = vmax.xlane.f32.xlu0 %v2410_v38  ;;  %v6897_v41 = vpop.f32.mrf.mxu1  ;;  %2408 = vmax.xlane.f32.xlu1 %v2407_v39  ;;  %v6891_v46 = vpop.f32.mrf.mxu0 }
 0x492   : > { %v2017_v36 = vpop.f32.mrf.mxu0  ;;  %v2081_v49 = vpop.f32.mrf.mxu1 }
 0x494   : > { %v6892_v31 = vpop.f32.mrf.mxu0  ;;  %v6898_v23 = vpop.f32.mrf.mxu1 }
 0x496   : > { %v2142_v48 = vpop.f32.mrf.mxu0  ;;  %v2206_v29 = vpop.f32.mrf.mxu1 }
 0x497   : > { %v2416_v57 = vsel %vm1392_vm5, %v2206_v29, -inf  ;;  %v2413_v58 = vsel %vm1392_vm5, %v2142_v48, -inf }
 0x498   : > { %v6909_v59 = vpop.f32.mrf.mxu1  ;;  %2417 = vmax.xlane.f32.xlu1 %v2416_v57  ;;  %2414 = vmax.xlane.f32.xlu0 %v2413_v58  ;;  %v6903_v34 = vpop.f32.mrf.mxu0 }
 0x49a   : > { %v2145_v60 = vpop.f32.mrf.mxu0  ;;  %v2209_v43 = vpop.f32.mrf.mxu1 }
 0x49c   : > { %v6904_v62 = vpop.f32.mrf.mxu0  ;;  %v6910_v3 = vpop.f32.mrf.mxu1 }
 0x49e   : > { %v2270_v53 = vpop.f32.mrf.mxu0  ;;  %v8051_v4 = vpop.f32.mrf.mxu1 }
 0x49f   : > { %v2422_v7 = vsel %vm1392_vm5, %v8051_v4, -inf  ;;  %v2419_v0 = vsel %vm1392_vm5, %v2270_v53, -inf }
 0x4a0   : > { %v6921_v35 = vpop.f32.mrf.mxu1  ;;  %2423 = vmax.xlane.f32.xlu1 %v2422_v7  ;;  %2420 = vmax.xlane.f32.xlu0 %v2419_v0  ;;  %v6915_v12 = vpop.f32.mrf.mxu0 }
 0x4a2   : > { %v2273_v17 = vpop.f32.mrf.mxu0  ;;  %v2337_v61 = vpop.f32.mrf.mxu1 }
 0x4a4   : > { %v6916_v40 = vpop.f32.mrf.mxu0  ;;  %v6922_v18 = vpop.f32.mrf.mxu1 }
 0x4a6   : > { %v2398_v52 = vpop.f32.mrf.mxu0 }
 0x4a7   : > { %v2425_v20 = vsel %vm1392_vm5, %v2398_v52, -inf }
 0x4a8   : > { %2426 = vmax.xlane.f32.xlu0 %v2425_v20  ;;  %v6927_v21 = vpop.f32.mrf.mxu0 }
 0x4aa   : > { %v2401_v24 = vpop.f32.mrf.mxu0 }
 0x4ac   : > { %v6928_v6 = vpop.f32.mrf.mxu0 }
 0x4b1   : > { %2740 = vrot.lane.b32.xlu1 %v7702_v13, %s7449_s20 }
 0x4be   : > { %2692 = vrot.lane.b32.xlu0 %v7698_v11, %s7449_s20 }
 0x511   : > { %v2406_v27 = vpop.xlane.xlu0 %2405 }
 0x512   : > { %v2428_v10 = vsub.f32 %v1950_v25, %v2406_v27 }
 0x514   : > { %v2436_v30 = vmul.f32 1.442695, %v2428_v10 }
 0x516   : > { %7297 = vpow2.f32 %v2436_v30 }
 0x519   : > { %v2412_v33 = vpop.xlane.xlu0 %2411  ;;  %v2409_v54 = vpop.xlane.xlu1 %2408 }
 0x51a   : > { %v2430_v1 = vsub.f32 %v2078_v14, %v2412_v33  ;;  %v2429_v38 = vsub.f32 %v2014_v19, %v2409_v54 }
 0x51c   : > { %v2440_v39 = vmul.f32 1.442695, %v2430_v1  ;;  %v2438_v41 = vmul.f32 1.442695, %v2429_v38 }
 0x51e   : > { %7299 = vpow2.f32 %v2440_v39 }
 0x51f   : > { %7301 = vpow2.f32 %v2438_v41  ;;  %v2602_v41 = vsel %vm1495_vm4, %v8061_v26, 0 }
 0x521   : > { %v2418_v46 = vpop.xlane.xlu1 %2417  ;;  %v2415_v36 = vpop.xlane.xlu0 %2414 }
 0x522   : > { %v2432_v49 = vsub.f32 %v2206_v29, %v2418_v46  ;;  %v2431_v31 = vsub.f32 %v2142_v48, %v2415_v36 }
 0x523   : > { %v8065_v23 = vpop.eup %7297 }
 0x524   : > { %v2444_v57 = vmul.f32 1.442695, %v2432_v49  ;;  %v2442_v25 = vmul.f32 1.442695, %v2431_v31  ;;  %v2452_v58 = vsel %vm1392_vm5, %v8065_v23, 0.0 }
 0x525   : > { %2453 = vadd.xlane.f32.xlu1 %v2452_v58  ;;  %v2650_v58 = vsel %vm1495_vm4, %v8063_v32, 0 }
 0x526   : > { %7303 = vpow2.f32 %v2444_v57 }
 0x527   : > { %7305 = vpow2.f32 %v2442_v25 }
 0x529   : > { %v2421_v14 = vpop.xlane.xlu0 %2420  ;;  %v2424_v35 = vpop.xlane.xlu1 %2423 }
 0x52a   : > { %v2433_v19 = vsub.f32 %v2270_v53, %v2421_v14  ;;  %v2434_v12 = vsub.f32 %v8051_v4, %v2424_v35 }
 0x52b   : > { %v8069_v59 = vpop.eup %7299 }
 0x52c   : > { %v8071_v34 = vpop.eup %7301  ;;  %v2446_v60 = vmul.f32 1.442695, %v2433_v19  ;;  %v2458_v48 = vsel %vm1392_vm5, %v8069_v59, 0.0  ;;  %v2448_v17 = vmul.f32 1.442695, %v2434_v12 }
 0x52d   : > { %2459 = vadd.xlane.f32.xlu1 %v2458_v48  ;;  %v2455_v29 = vsel %vm1392_vm5, %v8071_v34, 0.0 }
 0x52e   : > { %2456 = vadd.xlane.f32.xlu0 %v2455_v29  ;;  %7307 = vpow2.f32 %v2446_v60 }
 0x52f   : > { %7309 = vpow2.f32 %v2448_v17 }
 0x531   : > { %v2427_v61 = vpop.xlane.xlu0 %2426 }
 0x532   : > { %v2435_v40 = vsub.f32 %v2398_v52, %v2427_v61  ;;  %v2741_v52 = vpop.permute.xlu1 %2740 }
 0x533   : > { %v8077_v43 = vpop.eup %7303 }
 0x534   : > { %v8079_v62 = vpop.eup %7305  ;;  %v2464_v3 = vsel %vm1392_vm5, %v8077_v43, 0.0  ;;  %v2450_v18 = vmul.f32 1.442695, %v2435_v40 }
 0x535   : > { %2465 = vadd.xlane.f32.xlu1 %v2464_v3  ;;  %v2461_v53 = vsel %vm1392_vm5, %v8079_v62, 0.0  ;;  %v2693_v27 = vpop.permute.xlu0 %2692  ;;  %v2746_v3 = vsel %vm1495_vm4, %v2741_v52, 0 }
 0x536   : > { %2462 = vadd.xlane.f32.xlu0 %v2461_v53  ;;  %7311 = vpow2.f32 %v2450_v18  ;;  %v2698_v26 = vsel %vm1495_vm4, %v2693_v27, 0 }
 0x53b   : > { %v8085_v7 = vpop.eup %7307 }
 0x53c   : > { %v2467_v0 = vsel %vm1392_vm5, %v8085_v7, 0.0  ;;  %v8094_v20 = vpop.eup %7309 }
 0x53d   : > { %2468 = vadd.xlane.f32.xlu0 %v2467_v0  ;;  %v2470_v21 = vsel %vm1392_vm5, %v8094_v20, 0.0 }
 0x543   : > { %v8098_v24 = vpop.eup %7311 }
 0x544   : > { %v2473_v4 = vsel %vm1392_vm5, %v8098_v24, 0.0 }
 0x546   : > { %2836 = vrot.lane.b32.xlu1 %v7711_v16, %s7449_s20 }
 0x553   : > { %2788 = vrot.lane.b32.xlu0 %v7708_v15, %s7449_s20 }
 0x56a   : > { %2471 = vadd.xlane.f32.xlu1 %v2470_v21 }
 0x572   : > { %2474 = vadd.xlane.f32.xlu0 %v2473_v4 }
 0x57b   : > { %3097 = vrot.lane.b32.xlu1 %v7688_v5, %s7450_s21 }
 0x57f   : > { %3095 = vrot.lane.b32.xlu1 %v7874_v45, %s7451_s22 }
 0x583   : > { %3197 = vrot.lane.b32.xlu1 %v7692_v8, %s7450_s21 }
 0x587   : > { %3195 = vrot.lane.b32.xlu1 %v7883_v47, %s7451_s22 }
 0x588   : > { %3047 = vrot.lane.b32.xlu0 %v7677_v63, %s7450_s21 }
 0x58b   : > { %3297 = vrot.lane.b32.xlu1 %v7702_v13, %s7450_s21 }
 0x58c   : > { %3045 = vrot.lane.b32.xlu0 %v7899_v50, %s7451_s22 }
 0x58f   : > { %3295 = vrot.lane.b32.xlu1 %v7896_v42, %s7451_s22 }
 0x590   : > { %3147 = vrot.lane.b32.xlu0 %v7682_v2, %s7450_s21 }
 0x593   : > { %3397 = vrot.lane.b32.xlu1 %v7711_v16, %s7450_s21 }
 0x594   : > { %3145 = vrot.lane.b32.xlu0 %v7917_v56, %s7451_s22 }
 0x597   : > { %3395 = vrot.lane.b32.xlu1 %v7914_v55, %s7451_s22 }
 0x598   : > { %3247 = vrot.lane.b32.xlu0 %v7698_v11, %s7450_s21 }
 0x59b   : > { %3541 = vrot.lane.b32.xlu1 %v7677_v63, %s7452_s23 }
 0x59c   : > { %3245 = vrot.lane.b32.xlu0 %v7930_v51, %s7451_s22 }
 0x59f   : > { %3637 = vrot.lane.b32.xlu1 %v7682_v2, %s7452_s23 }
 0x5a0   : > { %3347 = vrot.lane.b32.xlu0 %v7708_v15, %s7450_s21  ;;  %s8976_s21 = scalar_lea.vmem %s8951_s4, %s7555_s29 }
 0x5a3   : > { %3685 = vrot.lane.b32.xlu1 %v7692_v8, %s7452_s23 }
 0x5a4   : > { %3345 = vrot.lane.b32.xlu0 %v7943_v37, %s7451_s22 }
 0x5a8   : > { %3589 = vrot.lane.b32.xlu0 %v7688_v5, %s7452_s23 }
 0x5ae   : > { %v2454_v6 = vpop.xlane.xlu1 %2453 }
 0x5af   : > { %7313 = vrcp.f32 %v2454_v6 }
 0x5b6   : > { %v2460_v10 = vpop.xlane.xlu1 %2459 }
 0x5b7   : > { %7315 = vrcp.f32 %v2460_v10  ;;  %v2457_v30 = vpop.xlane.xlu0 %2456 }
 0x5b8   : > { %7317 = vrcp.f32 %v2457_v30 }
 0x5bc   : > { %v7314_v33 = vpop.eup %7313 }
 0x5bd   : > { %v2484_v54 = vmul.f32 %v7314_v33, %v8065_v23 }
 0x5be   : > { %v2466_v1 = vpop.xlane.xlu1 %2465 }
 0x5bf   : > { %7319 = vrcp.f32 %v2466_v1  ;;  %v2463_v38 = vpop.xlane.xlu0 %2462  ;;  %v2492_v39 = vpack.c.bf16 %v2484_v54, %v2484_v54 }
 0x5c0   : > { %7321 = vrcp.f32 %v2463_v38 }
 0x5c1   : > { %6932 = vmatmul.mubr.msk.bf16.vlgmr.msra.gmra.mxu1 %vm1491_vm6, %v2492_v39 }
 0x5c2   : > { %6942 = vmatpush3.bf16.msra.mxu1 %v2602_v41  ;;  %6943 = vmatprep.mubr.msk.bf16.mxu1 %vm7442_vm1, %v7441_v9  ;;  %v2837_v53 = vpop.permute.xlu1 %2836 }
 0x5c3   : > { %6953 = vmatprep.subr.bf16.mxu1 %v7441_v9  ;;  %v2842_v35 = vsel %vm1495_vm4, %v2837_v53, 0 }
 0x5c4   : > { %v7316_v46 = vpop.eup %7315 }
 0x5c5   : > { %v7318_v36 = vpop.eup %7317  ;;  %v2486_v49 = vmul.f32 %v7316_v46, %v8069_v59 }
 0x5c6   : > { %v2485_v31 = vmul.f32 %v7318_v36, %v8071_v34  ;;  %v2469_v23 = vpop.xlane.xlu0 %2468 }
 0x5c7   : > { %v2494_v57 = vpack.c.bf16 %v2486_v49, %v2486_v49  ;;  %7323 = vrcp.f32 %v2469_v23 }
 0x5c8   : > { %v2493_v25 = vpack.c.bf16 %v2485_v31, %v2485_v31 }
 0x5c9   : > { %6944 = vmatmul.mubr.msk.bf16.vlgmr.msra.gmra.mxu1 %vm1491_vm6, %v2494_v57 }
 0x5ca   : > { %6938 = vmatmul.mubr.msk.bf16.vlgmr.msra.gmra.mxu0 %vm1491_vm6, %v2493_v25  ;;  %6954 = vmatpush3.bf16.msra.mxu1 %v2698_v26  ;;  %v2789_v34 = vpop.permute.xlu0 %2788 }
 0x5cb   : > { %6948 = vmatpush3.bf16.msra.mxu0 %v2650_v58  ;;  %6949 = vmatprep.mubr.msk.bf16.mxu0 %vm7442_vm1, %v7441_v9  ;;  %v2794_v29 = vsel %vm1495_vm4, %v2789_v34, 0 }
 0x5cc   : > { %v7320_v14 = vpop.eup %7319  ;;  %6955 = vmatprep.mubr.msk.bf16.mxu1 %vm7442_vm1, %v7441_v9  ;;  %6959 = vmatprep.subr.bf16.mxu0 %v7441_v9 }
 0x5cd   : > { %v7322_v19 = vpop.eup %7321  ;;  %6965 = vmatprep.subr.bf16.mxu1 %v7441_v9  ;;  %v2488_v59 = vmul.f32 %v7320_v14, %v8077_v43 }
 0x5ce   : > { %v2487_v32 = vmul.f32 %v7322_v19, %v8079_v62 }
 0x5cf   : > { %v2496_v60 = vpack.c.bf16 %v2488_v59, %v2488_v59 }
 0x5d0   : > { %v2495_v48 = vpack.c.bf16 %v2487_v32, %v2487_v32 }
 0x5d1   : > { %6956 = vmatmul.mubr.msk.bf16.vlgmr.msra.gmra.mxu1 %vm1491_vm6, %v2496_v60 }
 0x5d2   : > { %6950 = vmatmul.mubr.msk.bf16.vlgmr.msra.gmra.mxu0 %vm1491_vm6, %v2495_v48  ;;  %6966 = vmatpush3.bf16.msra.mxu1 %v2794_v29 }
 0x5d3   : > { %6960 = vmatpush3.bf16.msra.mxu0 %v2746_v3  ;;  %6961 = vmatprep.mubr.msk.bf16.mxu0 %vm7442_vm1, %v7441_v9 }
 0x5d4   : > { %6971 = vmatprep.subr.bf16.mxu0 %v7441_v9  ;;  %6967 = vmatprep.mubr.msk.bf16.mxu1 %vm7442_vm1, %v7441_v9  ;;  %v7324_v43 = vpop.eup %7323 }
 0x5d5   : > { %6977 = vmatprep.subr.bf16.mxu1 %v7441_v9  ;;  %v2489_v62 = vmul.f32 %v7324_v43, %v8085_v7 }
 0x5d7   : > { %v2497_v0 = vpack.c.bf16 %v2489_v62, %v2489_v62 }
 0x5da   : > { %6962 = vmatmul.mubr.msk.bf16.vlgmr.msra.gmra.mxu0 %vm1491_vm6, %v2497_v0 }
 0x5db   : > { %6972 = vmatpush3.bf16.msra.mxu0 %v2842_v35  ;;  %6973 = vmatprep.mubr.msk.bf16.mxu0 %vm7442_vm1, %v7441_v9 }
 0x5dc   : > { %6983 = vmatprep.subr.bf16.mxu0 %v7441_v9 }
 0x5f3   : > { %v2472_v12 = vpop.xlane.xlu1 %2471 }
 0x5f4   : > { %7325 = vrcp.f32 %v2472_v12 }
 0x5f7   : > { %v3098_v17 = vpop.permute.xlu1 %3097 }
 0x5f8   : > { %v3103_v41 = vsel %vm911_vm3, %v3098_v17, 0 }
 0x5fb   : > { %v3096_v61 = vpop.permute.xlu1 %3095  ;;  %v2475_v40 = vpop.xlane.xlu0 %2474 }
 0x5fc   : > { %7327 = vrcp.f32 %v2475_v40 }
 0x5ff   : > { %v3198_v18 = vpop.permute.xlu1 %3197  ;;  %v3048_v7 = vpop.permute.xlu0 %3047 }
 0x600   : > { %v3053_v10 = vsel %vm911_vm3, %v3048_v7, 0  ;;  %v3203_v31 = vsel %vm911_vm3, %v3198_v18, 0 }
 0x601   : > { %v7326_v21 = vpop.eup %7325 }
 0x602   : > { %v2490_v4 = vmul.f32 %v7326_v21, %v8094_v20 }
 0x603   : > { %v3046_v52 = vpop.permute.xlu0 %3045  ;;  %v3196_v27 = vpop.permute.xlu1 %3195 }
 0x604   : > { %v2498_v6 = vpack.c.bf16 %v2490_v4, %v2490_v4 }
 0x606   : > { %6968 = vmatmul.mubr.msk.bf16.vlgmr.msra.gmra.mxu1 %vm1491_vm6, %v2498_v6 }
 0x607   : > { %6978 = vmatpush3.bf16.xpose.msra.mxu1 %v3053_v10  ;;  %6979 = vmatprep.mubr.msk.bf16.mxu1 %vm7442_vm1, %v7441_v9  ;;  %v3148_v30 = vpop.permute.xlu0 %3147  ;;  %v3298_v54 = vpop.permute.xlu1 %3297 }
 0x608   : > { %6989 = vmatprep.subr.bf16.mxu1 %v7441_v9  ;;  %v3153_v39 = vsel %vm911_vm3, %v3148_v30, 0  ;;  %v3303_v58 = vsel %vm911_vm3, %v3298_v54, 0 }
 0x609   : > { %v7328_v33 = vpop.eup %7327 }
 0x60a   : > { %v2491_v1 = vmul.f32 %v7328_v33, %v8098_v24 }
 0x60b   : > { %v3146_v38 = vpop.permute.xlu0 %3145  ;;  %v3296_v36 = vpop.permute.xlu1 %3295 }
 0x60c   : > { %v2499_v20 = vpack.c.bf16 %v2491_v1, %v2491_v1 }
 0x60e   : > { %6980 = vmatmul.mubr.msk.bf16.vlgmr.msra.gmra.mxu1 %vm911_vm3, %v3046_v52  ;;  %6974 = vmatmul.mubr.msk.bf16.vlgmr.msra.gmra.mxu0 %vm1491_vm6, %v2499_v20 }
 0x60f   : > { %6990 = vmatpush3.bf16.xpose.msra.mxu1 %v3153_v39  ;;  %6984 = vmatpush3.bf16.xpose.msra.mxu0 %v3103_v41  ;;  %v3248_v46 = vpop.permute.xlu0 %3247  ;;  %v3398_v23 = vpop.permute.xlu1 %3397 }
 0x610   : > { %6985 = vmatprep.mubr.msk.bf16.mxu0 %vm7442_vm1, %v7441_v9  ;;  %6991 = vmatprep.mubr.msk.bf16.mxu1 %vm7442_vm1, %v7441_v9  ;;  %v3253_v49 = vsel %vm911_vm3, %v3248_v46, 0  ;;  %v3403_v34 = vsel %vm911_vm3, %v3398_v23, 0 }
 0x611   : > { %6995 = vmatprep.subr.bf16.mxu0 %v7441_v9  ;;  %7001 = vmatprep.subr.bf16.mxu1 %v7441_v9 }
 0x613   : > { %v3246_v24 = vpop.permute.xlu0 %3245  ;;  %v3396_v25 = vpop.permute.xlu1 %3395 }
 0x616   : > { %6992 = vmatmul.mubr.msk.bf16.vlgmr.msra.gmra.mxu1 %vm911_vm3, %v3146_v38  ;;  %6986 = vmatmul.mubr.msk.bf16.vlgmr.msra.gmra.mxu0 %vm911_vm3, %v3096_v61 }
 0x617   : > { %7002 = vmatpush3.bf16.xpose.msra.mxu1 %v3253_v49  ;;  %6996 = vmatpush3.bf16.xpose.msra.mxu0 %v3203_v31  ;;  %v3348_v57 = vpop.permute.xlu0 %3347  ;;  %v3542_v14 = vpop.permute.xlu1 %3541 }
 0x618   : > { %6997 = vmatprep.mubr.msk.bf16.mxu0 %vm7442_vm1, %v7441_v9  ;;  %7003 = vmatprep.mubr.msk.bf16.mxu1 %vm7442_vm1, %v7441_v9  ;;  %v3353_v26 = vsel %vm911_vm3, %v3348_v57, 0  ;;  %v3547_v59 = vsel %vm1495_vm4, %v3542_v14, 0 }
 0x619   : > { %7007 = vmatprep.subr.bf16.mxu0 %v7441_v9  ;;  %7013 = vmatprep.subr.bf16.mxu1 %v7441_v9 }
 0x61b   : > { %v3346_v19 = vpop.permute.xlu0 %3345 }
 0x61e   : > { %7004 = vmatmul.mubr.msk.bf16.vlgmr.msra.gmra.mxu1 %vm911_vm3, %v3246_v24  ;;  %6998 = vmatmul.mubr.msk.bf16.vlgmr.msra.gmra.mxu0 %vm911_vm3, %v3196_v27 }
 0x61f   : > { %7014 = vmatpush3.bf16.xpose.msra.mxu1 %v3353_v26  ;;  %7008 = vmatpush3.bf16.xpose.msra.mxu0 %v3303_v58  ;;  %v3590_v32 = vpop.permute.xlu0 %3589 }
 0x620   : > { %7009 = vmatprep.mubr.msk.bf16.mxu0 %vm7442_vm1, %v7441_v9  ;;  %7015 = vmatprep.mubr.msk.bf16.mxu1 %vm7442_vm1, %v7441_v9  ;;  %v3595_v60 = vsel %vm1495_vm4, %v3590_v32, 0 }
 0x621   : > { %7019 = vmatprep.subr.bf16.mxu0 %v7441_v9  ;;  %7025 = vmatprep.subr.bf16.mxu1 %v7441_v9 }
 0x626   : > { %7016 = vmatmul.mubr.msk.bf16.vlgmr.msra.gmra.mxu1 %vm911_vm3, %v3346_v19  ;;  %7010 = vmatmul.mubr.msk.bf16.vlgmr.msra.gmra.mxu0 %vm911_vm3, %v3296_v36 }
 0x627   : > { %7026 = vmatpush3.bf16.msra.mxu1 %v3547_v59  ;;  %7020 = vmatpush3.bf16.xpose.msra.mxu0 %v3403_v34 }
 0x628   : > { %7021 = vmatprep.mubr.msk.bf16.mxu0 %vm7442_vm1, %v7441_v9  ;;  %7031 = vmatprep.subr.bf16.mxu0 %v7441_v9 }
 0x629   : > { %7027 = vmatprep.mubr.msk.bf16.mxu1 %vm7442_vm1, %v7441_v9  ;;  %7037 = vmatprep.subr.bf16.mxu1 %v7441_v9 }
 0x62e   : > { %7022 = vmatmul.mubr.msk.bf16.vlgmr.msra.gmra.mxu0 %vm911_vm3, %v3396_v25 }
 0x62f   : > { %7032 = vmatpush3.bf16.msra.mxu0 %v3595_v60  ;;  %7033 = vmatprep.mubr.msk.bf16.mxu0 %vm7442_vm1, %v7441_v9 }
 0x630   : > { %7043 = vmatprep.subr.bf16.mxu0 %v7441_v9 }
 0x681   : > { %v8216_v48 = vpop.f32.mrf.mxu1 }
 0x683   : > { %v6933_v29 = vpop.f32.mrf.mxu1 }
 0x685   : > { %v2545_v3 = vpop.f32.mrf.mxu1 }
 0x687   : > { %v6934_v43 = vpop.f32.mrf.mxu1 }
 0x689   : > { %v8218_v62 = vpop.f32.mrf.mxu1 }
 0x68a   : > { %v8220_v53 = vpop.f32.mrf.mxu0 }
 0x68b   : > { %v6945_v0 = vpop.f32.mrf.mxu1 }
 0x68c   : > { %v6939_v35 = vpop.f32.mrf.mxu0 }
 0x68d   : > { %v2641_v12 = vpop.f32.mrf.mxu1 }
 0x68e   : > { %v2593_v17 = vpop.f32.mrf.mxu0 }
 0x68f   : > { %v6946_v61 = vpop.f32.mrf.mxu1 }
 0x690   : > { %v6940_v40 = vpop.f32.mrf.mxu0 }
 0x691   : > { %v8222_v18 = vpop.f32.mrf.mxu1 }
 0x692   : > { %v8224_v7 = vpop.f32.mrf.mxu0 }
 0x693   : > { %v6957_v21 = vpop.f32.mrf.mxu1 }
 0x694   : > { %v6951_v4 = vpop.f32.mrf.mxu0 }
 0x695   : > { %v2737_v52 = vpop.f32.mrf.mxu1 }
 0x696   : > { %v2689_v6 = vpop.f32.mrf.mxu0 }
 0x697   : > { %v6958_v27 = vpop.f32.mrf.mxu1 }
 0x698   : > { %v6952_v10 = vpop.f32.mrf.mxu0 }
 0x69a   : > { %v8226_v30 = vpop.f32.mrf.mxu0 }
 0x69c   : > { %v6963_v33 = vpop.f32.mrf.mxu0 }
 0x69e   : > { %v2785_v54 = vpop.f32.mrf.mxu0 }
 0x6a0   : > { %v6964_v1 = vpop.f32.mrf.mxu0 }
 0x6c6   : > { %v8228_v38 = vpop.f32.mrf.mxu1 }
 0x6c8   : > { %v6969_v20 = vpop.f32.mrf.mxu1 }
 0x6ca   : > { %v2833_v39 = vpop.f32.mrf.mxu1 }
 0x6cc   : > { %v6970_v41 = vpop.f32.mrf.mxu1 }
 0x6ce   : > { %v3089_v46 = vpop.f32.mrf.mxu1  ;;  %v8230_v36 = vpop.f32.mrf.mxu0 }
 0x6cf   : > { %v3445_v24 = vsel %vm1392_vm5, %v3089_v46, -inf }
 0x6d0   : > { %3446 = vmax.xlane.f32.xlu0 %v3445_v24  ;;  %v6981_v49 = vpop.f32.mrf.mxu1  ;;  %v6975_v31 = vpop.f32.mrf.mxu0 }
 0x6d2   : > { %v3092_v23 = vpop.f32.mrf.mxu1  ;;  %v2881_v57 = vpop.f32.mrf.mxu0 }
 0x6d4   : > { %v6982_v25 = vpop.f32.mrf.mxu1  ;;  %v6976_v26 = vpop.f32.mrf.mxu0 }
 0x6d6   : > { %v3189_v58 = vpop.f32.mrf.mxu1  ;;  %v3139_v14 = vpop.f32.mrf.mxu0 }
 0x6d7   : > { %v3451_v19 = vsel %vm1392_vm5, %v3189_v58, -inf  ;;  %v3448_v34 = vsel %vm1392_vm5, %v3139_v14, -inf }
 0x6d8   : > { %3452 = vmax.xlane.f32.xlu0 %v3451_v19  ;;  %v6993_v59 = vpop.f32.mrf.mxu1  ;;  %3449 = vmax.xlane.f32.xlu1 %v3448_v34  ;;  %v6987_v32 = vpop.f32.mrf.mxu0 }
 0x6d9   : > { %v8247_v19 = vpop.permute.xlu1 %3637 }
 0x6da   : > { %v3192_v60 = vpop.f32.mrf.mxu1  ;;  %v3142_v29 = vpop.f32.mrf.mxu0 }
 0x6dc   : > { %v6994_v3 = vpop.f32.mrf.mxu1  ;;  %v6988_v43 = vpop.f32.mrf.mxu0 }
 0x6dd   : > { %v8249_v60 = vpop.permute.xlu1 %3685 }
 0x6de   : > { %v3289_v0 = vpop.f32.mrf.mxu1  ;;  %v3239_v35 = vpop.f32.mrf.mxu0 }
 0x6df   : > { %v3457_v12 = vsel %vm1392_vm5, %v3289_v0, -inf  ;;  %v3454_v61 = vsel %vm1392_vm5, %v3239_v35, -inf }
 0x6e0   : > { %v7005_v17 = vpop.f32.mrf.mxu1  ;;  %3458 = vmax.xlane.f32.xlu1 %v3457_v12  ;;  %3455 = vmax.xlane.f32.xlu0 %v3454_v61  ;;  %v6999_v40 = vpop.f32.mrf.mxu0 }
 0x6e2   : > { %v3292_v21 = vpop.f32.mrf.mxu1  ;;  %v3242_v4 = vpop.f32.mrf.mxu0 }
 0x6e4   : > { %v7006_v52 = vpop.f32.mrf.mxu1  ;;  %v7000_v6 = vpop.f32.mrf.mxu0 }
 0x6e6   : > { %v8237_v27 = vpop.f32.mrf.mxu1  ;;  %v3339_v10 = vpop.f32.mrf.mxu0 }
 0x6e7   : > { %v3463_v33 = vsel %vm1392_vm5, %v8237_v27, -inf  ;;  %v3460_v1 = vsel %vm1392_vm5, %v3339_v10, -inf }
 0x6e8   : > { %v7017_v54 = vpop.f32.mrf.mxu1  ;;  %3464 = vmax.xlane.f32.xlu1 %v3463_v33  ;;  %3461 = vmax.xlane.f32.xlu0 %v3460_v1  ;;  %v7011_v20 = vpop.f32.mrf.mxu0 }
 0x6ea   : > { %v3392_v39 = vpop.f32.mrf.mxu1  ;;  %v3342_v41 = vpop.f32.mrf.mxu0 }
 0x6ec   : > { %v7018_v24 = vpop.f32.mrf.mxu1  ;;  %v7012_v49 = vpop.f32.mrf.mxu0 }
 0x6ee   : > { %v3439_v31 = vpop.f32.mrf.mxu0 }
 0x6ef   : > { %v3466_v23 = vsel %vm1392_vm5, %v3439_v31, -inf }
 0x6f0   : > { %3467 = vmax.xlane.f32.xlu0 %v3466_v23  ;;  %v7023_v57 = vpop.f32.mrf.mxu0 }
 0x6f2   : > { %v3442_v25 = vpop.f32.mrf.mxu0 }
 0x6f4   : > { %v7024_v26 = vpop.f32.mrf.mxu0 }
 0x6f9   : > { %3781 = vrot.lane.b32.xlu1 %v7702_v13, %s7452_s23 }
 0x706   : > { %3733 = vrot.lane.b32.xlu0 %v7698_v11, %s7452_s23 }
 0x759   : > { %v3447_v59 = vpop.xlane.xlu0 %3446 }
 0x75a   : > { %v3469_v34 = vsub.f32 %v3089_v46, %v3447_v59 }
 0x75c   : > { %v3477_v32 = vmul.f32 1.442695, %v3469_v34 }
 0x75e   : > { %7329 = vpow2.f32 %v3477_v32 }
 0x761   : > { %v3453_v29 = vpop.xlane.xlu0 %3452  ;;  %v3450_v43 = vpop.xlane.xlu1 %3449 }
 0x762   : > { %v3471_v3 = vsub.f32 %v3189_v58, %v3453_v29  ;;  %v3470_v12 = vsub.f32 %v3139_v14, %v3450_v43 }
 0x764   : > { %v3481_v17 = vmul.f32 1.442695, %v3471_v3  ;;  %v3479_v61 = vmul.f32 1.442695, %v3470_v12 }
 0x766   : > { %7331 = vpow2.f32 %v3481_v17 }
 0x767   : > { %7333 = vpow2.f32 %v3479_v61 }
 0x769   : > { %v3459_v40 = vpop.xlane.xlu1 %3458  ;;  %v3456_v4 = vpop.xlane.xlu0 %3455 }
 0x76a   : > { %v3473_v21 = vsub.f32 %v3289_v0, %v3459_v40  ;;  %v3472_v6 = vsub.f32 %v3239_v35, %v3456_v4 }
 0x76b   : > { %v8251_v52 = vpop.eup %7329 }
 0x76c   : > { %v3485_v33 = vmul.f32 1.442695, %v3473_v21  ;;  %v3493_v46 = vsel %vm1392_vm5, %v8251_v52, 0.0  ;;  %v3483_v54 = vmul.f32 1.442695, %v3472_v6 }
 0x76d   : > { %3494 = vadd.xlane.f32.xlu1 %v3493_v46  ;;  %v3691_v46 = vsel %vm1495_vm4, %v8249_v60, 0 }
 0x76e   : > { %7335 = vpow2.f32 %v3485_v33 }
 0x76f   : > { %7337 = vpow2.f32 %v3483_v54 }
 0x771   : > { %v3462_v58 = vpop.xlane.xlu0 %3461  ;;  %v3465_v25 = vpop.xlane.xlu1 %3464 }
 0x772   : > { %v3474_v1 = vsub.f32 %v3339_v10, %v3462_v58  ;;  %v3475_v26 = vsub.f32 %v8237_v27, %v3465_v25 }
 0x773   : > { %v8255_v14 = vpop.eup %7331 }
 0x774   : > { %v8257_v20 = vpop.eup %7333  ;;  %v3499_v0 = vsel %vm1392_vm5, %v8255_v14, 0.0  ;;  %v3487_v39 = vmul.f32 1.442695, %v3474_v1  ;;  %v3489_v59 = vmul.f32 1.442695, %v3475_v26 }
 0x775   : > { %3500 = vadd.xlane.f32.xlu1 %v3499_v0  ;;  %v3496_v35 = vsel %vm1392_vm5, %v8257_v20, 0.0 }
 0x776   : > { %3497 = vadd.xlane.f32.xlu0 %v3496_v35  ;;  %7339 = vpow2.f32 %v3487_v39 }
 0x777   : > { %7341 = vpow2.f32 %v3489_v59 }
 0x779   : > { %v3468_v34 = vpop.xlane.xlu0 %3467 }
 0x77a   : > { %v3476_v32 = vsub.f32 %v3439_v31, %v3468_v34 }
 0x77b   : > { %v8263_v41 = vpop.eup %7335 }
 0x77c   : > { %v8265_v24 = vpop.eup %7337  ;;  %v3505_v49 = vsel %vm1392_vm5, %v8263_v41, 0.0  ;;  %v3491_v29 = vmul.f32 1.442695, %v3476_v32 }
 0x77d   : > { %3506 = vadd.xlane.f32.xlu1 %v3505_v49  ;;  %v3502_v10 = vsel %vm1392_vm5, %v8265_v24, 0.0 }
 0x77e   : > { %3503 = vadd.xlane.f32.xlu0 %v3502_v10  ;;  %7343 = vpow2.f32 %v3491_v29 }
 0x783   : > { %v8271_v23 = vpop.eup %7339 }
 0x784   : > { %v3508_v57 = vsel %vm1392_vm5, %v8271_v23, 0.0  ;;  %v8280_v3 = vpop.eup %7341 }
 0x785   : > { %3509 = vadd.xlane.f32.xlu0 %v3508_v57  ;;  %v3511_v43 = vsel %vm1392_vm5, %v8280_v3, 0.0 }
 0x78b   : > { %v8284_v12 = vpop.eup %7343 }
 0x78c   : > { %v3514_v27 = vsel %vm1392_vm5, %v8284_v12, 0.0 }
 0x78e   : > { %3877 = vrot.lane.b32.xlu1 %v7711_v16, %s7452_s23 }
 0x79b   : > { %3829 = vrot.lane.b32.xlu0 %v7708_v15, %s7452_s23 }
 0x7b2   : > { %3512 = vadd.xlane.f32.xlu1 %v3511_v43 }
 0x7ba   : > { %3515 = vadd.xlane.f32.xlu0 %v3514_v27 }
 0x7c3   : > { %4138 = vrot.lane.b32.xlu1 %v7688_v5, %s7453_s16 }
 0x7c7   : > { %4136 = vrot.lane.b32.xlu1 %v7874_v45, %s7454_s19  ;;  %v3782_v45 = vpop.permute.xlu1 %3781 }
 0x7c8   : > { %v3787_v35 = vsel %vm1495_vm4, %v3782_v45, 0 }
 0x7cb   : > { %4238 = vrot.lane.b32.xlu1 %v7692_v8, %s7453_s16 }
 0x7cf   : > { %4236 = vrot.lane.b32.xlu1 %v7883_v47, %s7454_s19 }
 0x7d0   : > { %4088 = vrot.lane.b32.xlu0 %v7677_v63, %s7453_s16 }
 0x7d3   : > { %4338 = vrot.lane.b32.xlu1 %v7702_v13, %s7453_s16 }
 0x7d4   : > { %4086 = vrot.lane.b32.xlu0 %v7899_v50, %s7454_s19 }
 0x7d7   : > { %4336 = vrot.lane.b32.xlu1 %v7896_v42, %s7454_s19  ;;  %v3734_v42 = vpop.permute.xlu0 %3733 }
 0x7d8   : > { %4188 = vrot.lane.b32.xlu0 %v7682_v2, %s7453_s16 }
 0x7db   : > { %4438 = vrot.lane.b32.xlu1 %v7711_v16, %s7453_s16 }
 0x7dc   : > { %4186 = vrot.lane.b32.xlu0 %v7917_v56, %s7454_s19 }
 0x7df   : > { %4436 = vrot.lane.b32.xlu1 %v7914_v55, %s7454_s19 }
 0x7e0   : > { %4288 = vrot.lane.b32.xlu0 %v7698_v11, %s7453_s16 }
 0x7e3   : > { %4582 = vrot.lane.b32.xlu1 %v7677_v63, %s7455_s24 }
 0x7e4   : > { %4286 = vrot.lane.b32.xlu0 %v7930_v51, %s7454_s19  ;;  %v3643_v51 = vsel %vm1495_vm4, %v8247_v19, 0  ;;  %v3739_v19 = vsel %vm1495_vm4, %v3734_v42, 0 }
 0x7e8   : > { %4388 = vrot.lane.b32.xlu0 %v7708_v15, %s7453_s16  ;;  %s8977_s16 = scalar_lea.vmem %s8952_s5, %s7555_s29 }
 0x7ec   : > { %4386 = vrot.lane.b32.xlu0 %v7943_v37, %s7454_s19 }
 0x7f6   : > { %v3495_v47 = vpop.xlane.xlu1 %3494 }
 0x7f7   : > { %7345 = vrcp.f32 %v3495_v47 }
 0x7fe   : > { %v3501_v50 = vpop.xlane.xlu1 %3500 }
 0x7ff   : > { %7347 = vrcp.f32 %v3501_v50  ;;  %v3498_v56 = vpop.xlane.xlu0 %3497 }
 0x800   : > { %7349 = vrcp.f32 %v3498_v56 }
 0x804   : > { %v7346_v55 = vpop.eup %7345 }
 0x805   : > { %v3525_v31 = vmul.f32 %v7346_v55, %v8251_v52 }
 0x806   : > { %v3507_v17 = vpop.xlane.xlu1 %3506 }
 0x807   : > { %7351 = vrcp.f32 %v3507_v17  ;;  %v3504_v63 = vpop.xlane.xlu0 %3503  ;;  %v3533_v61 = vpack.c.bf16 %v3525_v31, %v3525_v31 }
 0x808   : > { %7353 = vrcp.f32 %v3504_v63 }
 0x809   : > { %7028 = vmatmul.mubr.msk.bf16.vlgmr.msra.gmra.mxu1 %vm1491_vm6, %v3533_v61 }
 0x80a   : > { %7038 = vmatpush3.bf16.msra.mxu1 %v3643_v51  ;;  %7039 = vmatprep.mubr.msk.bf16.mxu1 %vm7442_vm1, %v7441_v9  ;;  %v3878_v49 = vpop.permute.xlu1 %3877 }
 0x80b   : > { %7049 = vmatprep.subr.bf16.mxu1 %v7441_v9  ;;  %v3883_v57 = vsel %vm1495_vm4, %v3878_v49, 0 }
 0x80c   : > { %v7348_v37 = vpop.eup %7347 }
 0x80d   : > { %v7350_v40 = vpop.eup %7349  ;;  %v3527_v21 = vmul.f32 %v7348_v37, %v8255_v14 }
 0x80e   : > { %v3526_v4 = vmul.f32 %v7350_v40, %v8257_v20  ;;  %v3510_v52 = vpop.xlane.xlu0 %3509 }
 0x80f   : > { %v3535_v6 = vpack.c.bf16 %v3527_v21, %v3527_v21  ;;  %7355 = vrcp.f32 %v3510_v52 }
 0x810   : > { %v3534_v33 = vpack.c.bf16 %v3526_v4, %v3526_v4 }
 0x811   : > { %7040 = vmatmul.mubr.msk.bf16.vlgmr.msra.gmra.mxu1 %vm1491_vm6, %v3535_v6 }
 0x812   : > { %7034 = vmatmul.mubr.msk.bf16.vlgmr.msra.gmra.mxu0 %vm1491_vm6, %v3534_v33  ;;  %7050 = vmatpush3.bf16.msra.mxu1 %v3739_v19  ;;  %v3830_v1 = vpop.permute.xlu0 %3829 }
 0x813   : > { %7044 = vmatpush3.bf16.msra.mxu0 %v3691_v46  ;;  %7045 = vmatprep.mubr.msk.bf16.mxu0 %vm7442_vm1, %v7441_v9  ;;  %v3835_v39 = vsel %vm1495_vm4, %v3830_v1, 0 }
 0x814   : > { %v7352_v54 = vpop.eup %7351  ;;  %7051 = vmatprep.mubr.msk.bf16.mxu1 %vm7442_vm1, %v7441_v9  ;;  %7055 = vmatprep.subr.bf16.mxu0 %v7441_v9 }
 0x815   : > { %v7354_v58 = vpop.eup %7353  ;;  %7061 = vmatprep.subr.bf16.mxu1 %v7441_v9  ;;  %v3529_v14 = vmul.f32 %v7352_v54, %v8263_v41 }
 0x816   : > { %v3528_v60 = vmul.f32 %v7354_v58, %v8265_v24 }
 0x817   : > { %v3537_v20 = vpack.c.bf16 %v3529_v14, %v3529_v14 }
 0x818   : > { %v3536_v0 = vpack.c.bf16 %v3528_v60, %v3528_v60 }
 0x819   : > { %7052 = vmatmul.mubr.msk.bf16.vlgmr.msra.gmra.mxu1 %vm1491_vm6, %v3537_v20 }
 0x81a   : > { %7046 = vmatmul.mubr.msk.bf16.vlgmr.msra.gmra.mxu0 %vm1491_vm6, %v3536_v0  ;;  %7062 = vmatpush3.bf16.msra.mxu1 %v3835_v39 }
 0x81b   : > { %7056 = vmatpush3.bf16.msra.mxu0 %v3787_v35  ;;  %7057 = vmatprep.mubr.msk.bf16.mxu0 %vm7442_vm1, %v7441_v9 }
 0x81c   : > { %7067 = vmatprep.subr.bf16.mxu0 %v7441_v9  ;;  %7063 = vmatprep.mubr.msk.bf16.mxu1 %vm7442_vm1, %v7441_v9  ;;  %v7356_v41 = vpop.eup %7355 }
 0x81d   : > { %7073 = vmatprep.subr.bf16.mxu1 %v7441_v9  ;;  %v3530_v24 = vmul.f32 %v7356_v41, %v8271_v23 }
 0x81f   : > { %v3538_v10 = vpack.c.bf16 %v3530_v24, %v3530_v24 }
 0x822   : > { %7058 = vmatmul.mubr.msk.bf16.vlgmr.msra.gmra.mxu0 %vm1491_vm6, %v3538_v10 }
 0x823   : > { %7068 = vmatpush3.bf16.msra.mxu0 %v3883_v57  ;;  %7069 = vmatprep.mubr.msk.bf16.mxu0 %vm7442_vm1, %v7441_v9 }
 0x824   : > { %7079 = vmatprep.subr.bf16.mxu0 %v7441_v9 }
 0x83b   : > { %v3513_v25 = vpop.xlane.xlu1 %3512 }
 0x83c   : > { %7357 = vrcp.f32 %v3513_v25 }
 0x83f   : > { %v4139_v26 = vpop.permute.xlu1 %4138 }
 0x840   : > { %v4144_v61 = vsel %vm911_vm3, %v4139_v26, 0 }
 0x843   : > { %v4137_v59 = vpop.permute.xlu1 %4136  ;;  %v3516_v34 = vpop.xlane.xlu0 %3515 }
 0x844   : > { %7359 = vrcp.f32 %v3516_v34 }
 0x847   : > { %v4239_v32 = vpop.permute.xlu1 %4238  ;;  %v4089_v23 = vpop.permute.xlu0 %4088 }
 0x848   : > { %v4094_v42 = vsel %vm911_vm3, %v4089_v23, 0  ;;  %v4244_v21 = vsel %vm911_vm3, %v4239_v32, 0 }
 0x849   : > { %v7358_v29 = vpop.eup %7357 }
 0x84a   : > { %v3531_v43 = vmul.f32 %v7358_v29, %v8280_v3 }
 0x84b   : > { %v4087_v27 = vpop.permute.xlu0 %4086  ;;  %v4237_v47 = vpop.permute.xlu1 %4236 }
 0x84c   : > { %v3539_v45 = vpack.c.bf16 %v3531_v43, %v3531_v43 }
 0x84e   : > { %7064 = vmatmul.mubr.msk.bf16.vlgmr.msra.gmra.mxu1 %vm1491_vm6, %v3539_v45 }
 0x84f   : > { %7074 = vmatpush3.bf16.xpose.msra.mxu1 %v4094_v42  ;;  %7075 = vmatprep.mubr.msk.bf16.mxu1 %vm7442_vm1, %v7441_v9  ;;  %v4189_v50 = vpop.permute.xlu0 %4188  ;;  %v4339_v55 = vpop.permute.xlu1 %4338 }
 0x850   : > { %7085 = vmatprep.subr.bf16.mxu1 %v7441_v9  ;;  %v4194_v63 = vsel %vm911_vm3, %v4189_v50, 0  ;;  %v4344_v19 = vsel %vm911_vm3, %v4339_v55, 0 }
 0x851   : > { %v7360_v56 = vpop.eup %7359 }
 0x852   : > { %v3532_v31 = vmul.f32 %v7360_v56, %v8284_v12 }
 0x853   : > { %v4187_v17 = vpop.permute.xlu0 %4186  ;;  %v4337_v37 = vpop.permute.xlu1 %4336 }
 0x854   : > { %v3540_v3 = vpack.c.bf16 %v3532_v31, %v3532_v31 }
 0x856   : > { %7076 = vmatmul.mubr.msk.bf16.vlgmr.msra.gmra.mxu1 %vm911_vm3, %v4087_v27  ;;  %7070 = vmatmul.mubr.msk.bf16.vlgmr.msra.gmra.mxu0 %vm1491_vm6, %v3540_v3 }
 0x857   : > { %7086 = vmatpush3.bf16.xpose.msra.mxu1 %v4194_v63  ;;  %7080 = vmatpush3.bf16.xpose.msra.mxu0 %v4144_v61  ;;  %v4289_v51 = vpop.permute.xlu0 %4288  ;;  %v4439_v4 = vpop.permute.xlu1 %4438 }
 0x858   : > { %7081 = vmatprep.mubr.msk.bf16.mxu0 %vm7442_vm1, %v7441_v9  ;;  %7087 = vmatprep.mubr.msk.bf16.mxu1 %vm7442_vm1, %v7441_v9  ;;  %v4294_v40 = vsel %vm911_vm3, %v4289_v51, 0  ;;  %v4444_v14 = vsel %vm911_vm3, %v4439_v4, 0 }
 0x859   : > { %7091 = vmatprep.subr.bf16.mxu0 %v7441_v9  ;;  %7097 = vmatprep.subr.bf16.mxu1 %v7441_v9 }
 0x85b   : > { %v4287_v12 = vpop.permute.xlu0 %4286  ;;  %v4437_v6 = vpop.permute.xlu1 %4436 }
 0x85e   : > { %7088 = vmatmul.mubr.msk.bf16.vlgmr.msra.gmra.mxu1 %vm911_vm3, %v4187_v17  ;;  %7082 = vmatmul.mubr.msk.bf16.vlgmr.msra.gmra.mxu0 %vm911_vm3, %v4137_v59 }
 0x85f   : > { %7098 = vmatpush3.bf16.xpose.msra.mxu1 %v4294_v40  ;;  %7092 = vmatpush3.bf16.xpose.msra.mxu0 %v4244_v21  ;;  %v4389_v52 = vpop.permute.xlu0 %4388  ;;  %v4583_v46 = vpop.permute.xlu1 %4582 }
 0x860   : > { %7093 = vmatprep.mubr.msk.bf16.mxu0 %vm7442_vm1, %v7441_v9  ;;  %7099 = vmatprep.mubr.msk.bf16.mxu1 %vm7442_vm1, %v7441_v9  ;;  %v4394_v33 = vsel %vm911_vm3, %v4389_v52, 0  ;;  %v4588_v58 = vsel %vm1495_vm4, %v4583_v46, 0 }
 0x861   : > { %7103 = vmatprep.subr.bf16.mxu0 %v7441_v9  ;;  %7109 = vmatprep.subr.bf16.mxu1 %v7441_v9 }
 0x863   : > { %v4387_v54 = vpop.permute.xlu0 %4386 }
 0x866   : > { %7100 = vmatmul.mubr.msk.bf16.vlgmr.msra.gmra.mxu1 %vm911_vm3, %v4287_v12  ;;  %7094 = vmatmul.mubr.msk.bf16.vlgmr.msra.gmra.mxu0 %vm911_vm3, %v4237_v47 }
 0x867   : > { %7110 = vmatpush3.bf16.xpose.msra.mxu1 %v4394_v33  ;;  %7104 = vmatpush3.bf16.xpose.msra.mxu0 %v4344_v19 }
 0x868   : > { %7105 = vmatprep.mubr.msk.bf16.mxu0 %vm7442_vm1, %v7441_v9  ;;  %7111 = vmatprep.mubr.msk.bf16.mxu1 %vm7442_vm1, %v7441_v9 }
 0x869   : > { %7115 = vmatprep.subr.bf16.mxu0 %v7441_v9  ;;  %7121 = vmatprep.subr.bf16.mxu1 %v7441_v9 }
 0x86e   : > { %7112 = vmatmul.mubr.msk.bf16.vlgmr.msra.gmra.mxu1 %vm911_vm3, %v4387_v54  ;;  %7106 = vmatmul.mubr.msk.bf16.vlgmr.msra.gmra.mxu0 %vm911_vm3, %v4337_v37 }
 0x86f   : > { %7122 = vmatpush3.bf16.msra.mxu1 %v4588_v58  ;;  %7116 = vmatpush3.bf16.xpose.msra.mxu0 %v4444_v14 }
 0x870   : > { %7117 = vmatprep.mubr.msk.bf16.mxu0 %vm7442_vm1, %v7441_v9  ;;  %7127 = vmatprep.subr.bf16.mxu0 %v7441_v9 }
 0x871   : > { %7123 = vmatprep.mubr.msk.bf16.mxu1 %vm7442_vm1, %v7441_v9  ;;  %7133 = vmatprep.subr.bf16.mxu1 %v7441_v9 }
 0x876   : > { %7118 = vmatmul.mubr.msk.bf16.vlgmr.msra.gmra.mxu0 %vm911_vm3, %v4437_v6 }
 0x877   : > { %7129 = vmatprep.mubr.msk.bf16.mxu0 %vm7442_vm1, %v7441_v9 }
 0x8c9   : > { %v8394_v1 = vpop.f32.mrf.mxu1 }
 0x8cb   : > { %v7029_v60 = vpop.f32.mrf.mxu1 }
 0x8cd   : > { %v3586_v20 = vpop.f32.mrf.mxu1 }
 0x8cf   : > { %v7030_v0 = vpop.f32.mrf.mxu1 }
 0x8d1   : > { %v8396_v39 = vpop.f32.mrf.mxu1 }
 0x8d2   : > { %v8398_v35 = vpop.f32.mrf.mxu0 }
 0x8d3   : > { %v7041_v41 = vpop.f32.mrf.mxu1 }
 0x8d4   : > { %v7035_v24 = vpop.f32.mrf.mxu0 }
 0x8d5   : > { %v3682_v49 = vpop.f32.mrf.mxu1 }
 0x8d6   : > { %v3634_v10 = vpop.f32.mrf.mxu0 }
 0x8d7   : > { %v7042_v57 = vpop.f32.mrf.mxu1 }
 0x8d8   : > { %v7036_v25 = vpop.f32.mrf.mxu0 }
 0x8d9   : > { %v8400_v26 = vpop.f32.mrf.mxu1 }
 0x8da   : > { %v8402_v59 = vpop.f32.mrf.mxu0 }
 0x8db   : > { %v7053_v34 = vpop.f32.mrf.mxu1 }
 0x8dc   : > { %v7047_v32 = vpop.f32.mrf.mxu0 }
 0x8dd   : > { %v3778_v23 = vpop.f32.mrf.mxu1 }
 0x8de   : > { %v3730_v29 = vpop.f32.mrf.mxu0 }
 0x8df   : > { %v7054_v43 = vpop.f32.mrf.mxu1 }
 0x8e0   : > { %v7048_v27 = vpop.f32.mrf.mxu0 }
 0x8e2   : > { %v8404_v45 = vpop.f32.mrf.mxu0 }
 0x8e4   : > { %v7059_v47 = vpop.f32.mrf.mxu0 }
 0x8e6   : > { %v3826_v42 = vpop.f32.mrf.mxu0 }
 0x8e8   : > { %v7060_v50 = vpop.f32.mrf.mxu0 }
 0x90e   : > { %v8406_v56 = vpop.f32.mrf.mxu1 }
 0x910   : > { %v7065_v55 = vpop.f32.mrf.mxu1 }
 0x912   : > { %v3874_v31 = vpop.f32.mrf.mxu1 }
 0x914   : > { %v7066_v17 = vpop.f32.mrf.mxu1 }
 0x916   : > { %v4130_v3 = vpop.f32.mrf.mxu1  ;;  %v8408_v63 = vpop.f32.mrf.mxu0 }
 0x917   : > { %v4486_v61 = vsel %vm1392_vm5, %v4130_v3, -inf }
 0x918   : > { %4487 = vmax.xlane.f32.xlu0 %v4486_v61  ;;  %v7077_v51 = vpop.f32.mrf.mxu1  ;;  %v7071_v37 = vpop.f32.mrf.mxu0 }
 0x91a   : > { %v4133_v12 = vpop.f32.mrf.mxu1  ;;  %v3922_v40 = vpop.f32.mrf.mxu0 }
 0x91c   : > { %v7078_v21 = vpop.f32.mrf.mxu1  ;;  %v7072_v4 = vpop.f32.mrf.mxu0 }
 0x91e   : > { %v4230_v52 = vpop.f32.mrf.mxu1  ;;  %v4180_v6 = vpop.f32.mrf.mxu0 }
 0x91f   : > { %v4492_v33 = vsel %vm1392_vm5, %v4230_v52, -inf  ;;  %v4489_v46 = vsel %vm1392_vm5, %v4180_v6, -inf }
 0x920   : > { %4493 = vmax.xlane.f32.xlu0 %v4492_v33  ;;  %v7089_v19 = vpop.f32.mrf.mxu1  ;;  %4490 = vmax.xlane.f32.xlu1 %v4489_v46  ;;  %v7083_v54 = vpop.f32.mrf.mxu0 }
 0x922   : > { %v4233_v58 = vpop.f32.mrf.mxu1  ;;  %v4183_v14 = vpop.f32.mrf.mxu0 }
 0x924   : > { %v7090_v60 = vpop.f32.mrf.mxu1  ;;  %v7084_v20 = vpop.f32.mrf.mxu0 }
 0x926   : > { %v8413_v0 = vpop.f32.mrf.mxu1  ;;  %v4280_v41 = vpop.f32.mrf.mxu0 }
 0x927   : > { %v4498_v24 = vsel %vm1392_vm5, %v8413_v0, -inf  ;;  %v4495_v10 = vsel %vm1392_vm5, %v4280_v41, -inf }
 0x928   : > { %v7101_v49 = vpop.f32.mrf.mxu1  ;;  %4499 = vmax.xlane.f32.xlu1 %v4498_v24  ;;  %4496 = vmax.xlane.f32.xlu0 %v4495_v10  ;;  %v7095_v57 = vpop.f32.mrf.mxu0 }
 0x92a   : > { %v4333_v25 = vpop.f32.mrf.mxu1  ;;  %v4283_v34 = vpop.f32.mrf.mxu0 }
 0x92c   : > { %v7102_v32 = vpop.f32.mrf.mxu1  ;;  %v7096_v23 = vpop.f32.mrf.mxu0 }
 0x92e   : > { %v8418_v29 = vpop.f32.mrf.mxu1  ;;  %v8420_v43 = vpop.f32.mrf.mxu0 }
 0x92f   : > { %v4504_v27 = vsel %vm1392_vm5, %v8418_v29, -inf  ;;  %v4501_v42 = vsel %vm1392_vm5, %v8420_v43, -inf }
 0x930   : > { %v7113_v47 = vpop.f32.mrf.mxu1  ;;  %4505 = vmax.xlane.f32.xlu1 %v4504_v27  ;;  %4502 = vmax.xlane.f32.xlu0 %v4501_v42  ;;  %v7107_v50 = vpop.f32.mrf.mxu0 }
 0x932   : > { %v4433_v55 = vpop.f32.mrf.mxu1  ;;  %v4383_v31 = vpop.f32.mrf.mxu0 }
 0x934   : > { %v7114_v17 = vpop.f32.mrf.mxu1  ;;  %v7108_v61 = vpop.f32.mrf.mxu0 }
 0x936   : > { %v4480_v51 = vpop.f32.mrf.mxu0 }
 0x937   : > { %v4507_v37 = vsel %vm1392_vm5, %v4480_v51, -inf }
 0x938   : > { %4508 = vmax.xlane.f32.xlu0 %v4507_v37  ;;  %v7119_v12 = vpop.f32.mrf.mxu0 }
 0x93a   : > { %v4483_v40 = vpop.f32.mrf.mxu0 }
 0x93c   : > { %v7120_v21 = vpop.f32.mrf.mxu0 }
 0x941   : > { %4678 = vrot.lane.b32.xlu1 %v7682_v2, %s7455_s24 }
 0x945   : > { %4726 = vrot.lane.b32.xlu1 %v7692_v8, %s7455_s24 }
 0x94e   : > { %4630 = vrot.lane.b32.xlu0 %v7688_v5, %s7455_s24 }
 0x9a1   : > { %v4488_v4 = vpop.xlane.xlu0 %4487 }
 0x9a2   : > { %v4510_v33 = vsub.f32 %v4130_v3, %v4488_v4  ;;  %v2885_v4 = vpack.c.bf16 %v8220_v53, %v8220_v53 }
 0x9a4   : > { %v4518_v19 = vmul.f32 1.442695, %v4510_v33  ;;  %v2920_v33 = vrot.slane %v2885_v4, %v7664_v44 }
 0x9a6   : > { %7361 = vpow2.f32 %v4518_v19  ;;  %v2887_v19 = vpack.c.bf16 %v8224_v7, %v8224_v7  ;;  %v2891_v7 = vpack.c.bf16 %v8230_v36, %v8230_v36 }
 0x9a9   : > { %v4494_v46 = vpop.xlane.xlu0 %4493  ;;  %v4491_v58 = vpop.xlane.xlu1 %4490 }
 0x9aa   : > { %v4512_v54 = vsub.f32 %v4230_v52, %v4494_v46  ;;  %v4511_v14 = vsub.f32 %v4180_v6, %v4491_v58  ;;  %v2927_v46 = vrot.slane %v2920_v33, %v7664_v44  ;;  %v2889_v58 = vpack.c.bf16 %v8226_v30, %v8226_v30 }
 0x9ab   : > { %v3926_v30 = vpack.c.bf16 %v8398_v35, %v8398_v35 }
 0x9ac   : > { %v4522_v60 = vmul.f32 1.442695, %v4512_v54  ;;  %v4520_v20 = vmul.f32 1.442695, %v4511_v14  ;;  %v2948_v54 = vrot.slane %v2887_v19, %v7664_v44  ;;  %v2976_v14 = vrot.slane %v2889_v58, %v7664_v44 }
 0x9ae   : > { %7363 = vpow2.f32 %v4522_v60  ;;  %v2955_v53 = vrot.slane %v2948_v54, %v7664_v44  ;;  %v2983_v60 = vrot.slane %v2976_v14, %v7664_v44 }
 0x9af   : > { %7365 = vpow2.f32 %v4520_v20  ;;  %v3004_v20 = vrot.slane %v2891_v7, %v7664_v44 }
 0x9b1   : > { %v4497_v24 = vpop.xlane.xlu0 %4496  ;;  %v4500_v27 = vpop.xlane.xlu1 %4499  ;;  %v3011_v36 = vrot.slane %v3004_v20, %v7664_v44 }
 0x9b2   : > { %v4513_v49 = vsub.f32 %v4280_v41, %v4497_v24  ;;  %v4514_v47 = vsub.f32 %v8413_v0, %v4500_v27  ;;  %v3925_v27 = vpack.c.bf16 %v8394_v1, %v8394_v1 }
 0x9b3   : > { %v8433_v2 = vpop.eup %7361 }
 0x9b4   : > { %v4534_v8 = vsel %vm1392_vm5, %v8433_v2, 0.0  ;;  %v4524_v5 = vmul.f32 1.442695, %v4513_v49  ;;  %v4526_v50 = vmul.f32 1.442695, %v4514_v47  ;;  %v2886_v49 = vpack.c.bf16 %v8218_v62, %v8218_v62 }
 0x9b5   : > { %4535 = vadd.xlane.f32.xlu1 %v4534_v8  ;;  %v3928_v8 = vpack.c.bf16 %v8402_v59, %v8402_v59 }
 0x9b6   : > { %7367 = vpow2.f32 %v4524_v5  ;;  %v2934_v35 = vrot.slane %v2886_v49, %v7664_v44 }
 0x9b7   : > { %7369 = vpow2.f32 %v4526_v50  ;;  %v3927_v50 = vpack.c.bf16 %v8396_v39, %v8396_v39 }
 0x9b9   : > { %v4503_v57 = vpop.xlane.xlu0 %4502  ;;  %v4506_v42 = vpop.xlane.xlu1 %4505 }
 0x9ba   : > { %v4516_v55 = vsub.f32 %v8418_v29, %v4506_v42  ;;  %v4515_v17 = vsub.f32 %v8420_v43, %v4503_v57  ;;  %v3930_v57 = vpack.c.bf16 %v8404_v45, %v8404_v45 }
 0x9bb   : > { %v8437_v3 = vpop.eup %7363 }
 0x9bc   : > { %v8439_v10 = vpop.eup %7365  ;;  %v4540_v52 = vsel %vm1392_vm5, %v8437_v3, 0.0  ;;  %v4530_v31 = vmul.f32 1.442695, %v4516_v55  ;;  %v4528_v61 = vmul.f32 1.442695, %v4515_v17  ;;  %v3929_v17 = vpack.c.bf16 %v8400_v26, %v8400_v26 }
 0x9bd   : > { %4541 = vadd.xlane.f32.xlu1 %v4540_v52  ;;  %v4537_v6 = vsel %vm1392_vm5, %v8439_v10, 0.0  ;;  %v2888_v52 = vpack.c.bf16 %v8222_v18, %v8222_v18 }
 0x9be   : > { %4538 = vadd.xlane.f32.xlu0 %v4537_v6  ;;  %7371 = vpow2.f32 %v4530_v31  ;;  %v3989_v6 = vrot.slane %v3928_v8, %v7664_v44  ;;  %v3975_v31 = vrot.slane %v3927_v50, %v7664_v44  ;;  %v4003_v39 = vrot.slane %v3929_v17, %v7664_v44 }
 0x9bf   : > { %7373 = vpow2.f32 %v4528_v61  ;;  %v2962_v59 = vrot.slane %v2888_v52, %v7664_v44 }
 0x9c0   : > { %v3996_v18 = vrot.slane %v3989_v6, %v7664_v44  ;;  %v3982_v61 = vrot.slane %v3975_v31, %v7664_v44 }
 0x9c1   : > { %v4509_v41 = vpop.xlane.xlu0 %4508  ;;  %v2969_v45 = vrot.slane %v2962_v59, %v7664_v44 }
 0x9c2   : > { %v4517_v37 = vsub.f32 %v4480_v51, %v4509_v41  ;;  %v2890_v41 = vpack.c.bf16 %v8228_v38, %v8228_v38 }
 0x9c3   : > { %v8445_v25 = vpop.eup %7367 }
 0x9c4   : > { %v4543_v34 = vsel %vm1392_vm5, %v8445_v25, 0.0  ;;  %v4532_v12 = vmul.f32 1.442695, %v4517_v37  ;;  %v3931_v37 = vpack.c.bf16 %v8406_v56, %v8406_v56 }
 0x9c5   : > { %4544 = vadd.xlane.f32.xlu0 %v4543_v34  ;;  %v4631_v32 = vpop.permute.xlu0 %4630  ;;  %v4017_v34 = vrot.slane %v3930_v57, %v7664_v44 }
 0x9c6   : > { %v4636_v23 = vsel %vm1495_vm4, %v4631_v32, 0  ;;  %7375 = vpow2.f32 %v4532_v12  ;;  %v3932_v32 = vpack.c.bf16 %v8408_v63, %v8408_v63  ;;  %v3947_v63 = vrot.slane %v3925_v27, %v7664_v44 }
 0x9c7   : > { %7128 = vmatpush3.bf16.msra.mxu0 %v4636_v23  ;;  %v2990_v23 = vrot.slane %v2890_v41, %v7664_v44  ;;  %v4024_v38 = vrot.slane %v4017_v34, %v7664_v44  ;;  %v4010_v12 = vrot.slane %v4003_v39, %v7664_v44 }
 0x9c8   : > { %7139 = vmatprep.subr.bf16.mxu0 %v7441_v9  ;;  %v4045_v47 = vrot.slane %v3932_v32, %v7664_v44  ;;  %v3954_v1 = vrot.slane %v3947_v63, %v7664_v44 }
 0x9c9   : > { %v2997_v42 = vrot.slane %v2990_v23, %v7664_v44 }
 0x9ca   : > { %v4052_v55 = vrot.slane %v4045_v47, %v7664_v44 }
 0x9ce   : > { %4822 = vrot.lane.b32.xlu1 %v7702_v13, %s7455_s24  ;;  %v8458_v13 = vpop.eup %7369 }
 0x9cf   : > { %v4546_v0 = vsel %vm1392_vm5, %v8458_v13, 0.0  ;;  %v8462_v40 = vpop.eup %7371 }
 0x9d0   : > { %v8466_v29 = vpop.eup %7373 }
 0x9d1   : > { %v4549_v43 = vsel %vm1392_vm5, %v8466_v29, 0.0 }
 0x9d3   : > { %v8470_v51 = vpop.eup %7375 }
 0x9d4   : > { %v4555_v21 = vsel %vm1392_vm5, %v8470_v51, 0.0 }
 0x9db   : > { %4774 = vrot.lane.b32.xlu0 %v7698_v11, %s7455_s24  ;;  %v4552_v11 = vsel %vm1392_vm5, %v8462_v40, 0.0 }
 0x9f2   : > { %4547 = vadd.xlane.f32.xlu1 %v4546_v0  ;;  %v4031_v0 = vrot.slane %v3931_v37, %v7664_v44 }
 0x9f4   : > { %v4038_v26 = vrot.slane %v4031_v0, %v7664_v44 }
 0x9f6   : > { %4553 = vadd.xlane.f32.xlu1 %v4552_v11  ;;  %v4679_v11 = vpop.permute.xlu1 %4678 }
 0x9f7   : > { %v4684_v58 = vsel %vm1495_vm4, %v4679_v11, 0 }
 0x9fa   : > { %4550 = vadd.xlane.f32.xlu0 %v4549_v43  ;;  %v4727_v43 = vpop.permute.xlu1 %4726 }
 0x9fe   : > { %4556 = vadd.xlane.f32.xlu0 %v4555_v21 }
 0xa07   : > { %4918 = vrot.lane.b32.xlu1 %v7711_v16, %s7455_s24  ;;  %v2884_v16 = vpack.c.bf16 %v8216_v48, %v8216_v48  ;;  %v3961_v48 = vrot.slane %v3926_v30, %v7664_v44 }
 0xa09   : > { %v2906_v24 = vrot.slane %v2884_v16, %v7664_v44  ;;  %v3968_v62 = vrot.slane %v3961_v48, %v7664_v44 }
 0xa0b   : > { %3014 = vrot.lane.b32.xlu1 %v2927_v46, %s7456_s26  ;;  %v2913_v5 = vrot.slane %v2906_v24, %v7664_v44  ;;  %v4732_v24 = vsel %vm1495_vm4, %v4727_v43, 0 }
 0xa0f   : > { %3018 = vrot.lane.b32.xlu1 %v2955_v53, %s7456_s26 }
 0xa13   : > { %3022 = vrot.lane.b32.xlu1 %v2983_v60, %s7456_s26 }
 0xa14   : > { %4870 = vrot.lane.b32.xlu0 %v7708_v15, %s7455_s24  ;;  %v2941_v15 = vrot.slane %v2934_v35, %v7664_v44 }
 0xa17   : > { %3026 = vrot.lane.b32.xlu1 %v3011_v36, %s7456_s26 }
 0xa18   : > { %3012 = vrot.lane.b32.xlu0 %v2913_v5, %s7456_s26 }
 0xa1b   : > { %4055 = vrot.lane.b32.xlu1 %v3968_v62, %s7457_s27 }
 0xa1c   : > { %3016 = vrot.lane.b32.xlu0 %v2941_v15, %s7456_s26 }
 0xa1f   : > { %4059 = vrot.lane.b32.xlu1 %v3996_v18, %s7457_s27 }
 0xa20   : > { %3020 = vrot.lane.b32.xlu0 %v2969_v45, %s7456_s26 }
 0xa23   : > { %4063 = vrot.lane.b32.xlu1 %v4024_v38, %s7457_s27 }
 0xa24   : > { %3024 = vrot.lane.b32.xlu0 %v2997_v42, %s7456_s26  ;;  %s8978_s26 = scalar_lea.vmem %s8953_s6, %s7555_s29 }
 0xa27   : > { %4067 = vrot.lane.b32.xlu1 %v4052_v55, %s7457_s27 }
 0xa28   : > { %4053 = vrot.lane.b32.xlu0 %v3954_v1, %s7457_s27 }
 0xa2c   : > { %4057 = vrot.lane.b32.xlu0 %v3982_v61, %s7457_s27 }
 0xa30   : > { %4061 = vrot.lane.b32.xlu0 %v4010_v12, %s7457_s27 }
 0xa34   : > { %4065 = vrot.lane.b32.xlu0 %v4038_v26, %s7457_s27 }
 0xa3e   : > { %v4536_v21 = vpop.xlane.xlu1 %4535 }
 0xa3f   : > { %7377 = vrcp.f32 %v4536_v21 }
 0xa46   : > { %v4542_v4 = vpop.xlane.xlu1 %4541 }
 0xa47   : > { %7379 = vrcp.f32 %v4542_v4  ;;  %v4539_v33 = vpop.xlane.xlu0 %4538 }
 0xa48   : > { %7381 = vrcp.f32 %v4539_v33 }
 0xa4a   : > { %v4823_v49 = vpop.permute.xlu1 %4822 }
 0xa4b   : > { %v4828_v48 = vsel %vm1495_vm4, %v4823_v49, 0 }
 0xa4c   : > { %v7378_v56 = vpop.eup %7377 }
 0xa4d   : > { %v4566_v19 = vmul.f32 %v7378_v56, %v8433_v2 }
 0xa4e   : > { %v4545_v46 = vpop.xlane.xlu0 %4544 }
 0xa4f   : > { %v4574_v54 = vpack.c.bf16 %v4566_v19, %v4566_v19  ;;  %7383 = vrcp.f32 %v4545_v46 }
 0xa51   : > { %7124 = vmatmul.mubr.msk.bf16.vlgmr.msra.gmra.mxu1 %vm1491_vm6, %v4574_v54 }
 0xa52   : > { %7134 = vmatpush3.bf16.msra.mxu1 %v4684_v58  ;;  %7135 = vmatprep.mubr.msk.bf16.mxu1 %vm7442_vm1, %v7441_v9  ;;  %v4775_v2 = vpop.permute.xlu0 %4774 }
 0xa53   : > { %7145 = vmatprep.subr.bf16.mxu1 %v7441_v9  ;;  %v4780_v30 = vsel %vm1495_vm4, %v4775_v2, 0 }
 0xa54   : > { %v7380_v53 = vpop.eup %7379 }
 0xa55   : > { %v7382_v14 = vpop.eup %7381  ;;  %v4568_v7 = vmul.f32 %v7380_v53, %v8437_v3 }
 0xa56   : > { %v4567_v16 = vmul.f32 %v7382_v14, %v8439_v10 }
 0xa57   : > { %v4576_v60 = vpack.c.bf16 %v4568_v7, %v4568_v7 }
 0xa58   : > { %v4575_v20 = vpack.c.bf16 %v4567_v16, %v4567_v16 }
 0xa59   : > { %7136 = vmatmul.mubr.msk.bf16.vlgmr.msra.gmra.mxu1 %vm1491_vm6, %v4576_v60 }
 0xa5a   : > { %7130 = vmatmul.mubr.msk.bf16.vlgmr.msra.gmra.mxu0 %vm1491_vm6, %v4575_v20  ;;  %7146 = vmatpush3.bf16.msra.mxu1 %v4780_v30 }
 0xa5b   : > { %7140 = vmatpush3.bf16.msra.mxu0 %v4732_v24  ;;  %7141 = vmatprep.mubr.msk.bf16.mxu0 %vm7442_vm1, %v7441_v9 }
 0xa5c   : > { %7151 = vmatprep.subr.bf16.mxu0 %v7441_v9  ;;  %7147 = vmatprep.mubr.msk.bf16.mxu1 %vm7442_vm1, %v7441_v9  ;;  %v7384_v3 = vpop.eup %7383 }
 0xa5d   : > { %7157 = vmatprep.subr.bf16.mxu1 %v7441_v9  ;;  %v4569_v10 = vmul.f32 %v7384_v3, %v8445_v25 }
 0xa5f   : > { %v4577_v36 = vpack.c.bf16 %v4569_v10, %v4569_v10 }
 0xa62   : > { %7142 = vmatmul.mubr.msk.bf16.vlgmr.msra.gmra.mxu0 %vm1491_vm6, %v4577_v36 }
 0xa63   : > { %7152 = vmatpush3.bf16.msra.mxu0 %v4828_v48  ;;  %7153 = vmatprep.mubr.msk.bf16.mxu0 %vm7442_vm1, %v7441_v9 }
 0xa64   : > { %7163 = vmatprep.subr.bf16.mxu0 %v7441_v9 }
 0xa7b   : > { %v4548_v8 = vpop.xlane.xlu1 %4547 }
 0xa7c   : > { %7385 = vrcp.f32 %v4548_v8 }
 0xa7f   : > { %v4554_v5 = vpop.xlane.xlu1 %4553 }
 0xa80   : > { %7387 = vrcp.f32 %v4554_v5 }
 0xa83   : > { %v4919_v35 = vpop.permute.xlu1 %4918  ;;  %v4551_v52 = vpop.xlane.xlu0 %4550 }
 0xa84   : > { %7389 = vrcp.f32 %v4551_v52  ;;  %v4924_v50 = vsel %vm1495_vm4, %v4919_v35, 0 }
 0xa87   : > { %v3015_v25 = vpop.permute.xlu1 %3014  ;;  %v4557_v62 = vpop.xlane.xlu0 %4556 }
 0xa88   : > { %3038 = vst.msk [vmem:[#allocation3 + $0x1] sm:$0x1] %vm3036_vm8, %v3015_v25  ;;  %7391 = vrcp.f32 %v4557_v62 }
 0xa89   : > { %v7386_v6 = vpop.eup %7385 }
 0xa8a   : > { %v4570_v57 = vmul.f32 %v7386_v6, %v8458_v13 }
 0xa8b   : > { %v3019_v15 = vpop.permute.xlu1 %3018  ;;  %v4871_v41 = vpop.permute.xlu0 %4870 }
 0xa8c   : > { %v4578_v59 = vpack.c.bf16 %v4570_v57, %v4570_v57  ;;  %3040 = vst.msk [vmem:[#allocation3 + $0x3] sm:$0x1] %vm3036_vm8, %v3019_v15  ;;  %v4876_v34 = vsel %vm1495_vm4, %v4871_v41, 0 }
 0xa8d   : > { %v7388_v18 = vpop.eup %7387 }
 0xa8e   : > { %7148 = vmatmul.mubr.msk.bf16.vlgmr.msra.gmra.mxu1 %vm1491_vm6, %v4578_v59  ;;  %v4572_v45 = vmul.f32 %v7388_v18, %v8462_v40 }
 0xa8f   : > { %7158 = vmatpush3.bf16.msra.mxu1 %v4876_v34  ;;  %v3023_v32 = vpop.permute.xlu1 %3022  ;;  %7159 = vmatprep.mubr.msk.bf16.mxu1 %vm7442_vm1, %v7441_v9  ;;  %v3013_v13 = vpop.permute.xlu0 %3012 }
 0xa90   : > { %3042 = vst.msk [vmem:[#allocation3 + $0x5] sm:$0x1] %vm3036_vm8, %v3023_v32  ;;  %7169 = vmatprep.subr.bf16.mxu1 %v7441_v9  ;;  %3037 = vst.msk [vmem:[#allocation3] sm:$0x1] %vm3036_vm8, %v3013_v13  ;;  %v4580_v47 = vpack.c.bf16 %v4572_v45, %v4572_v45 }
 0xa91   : > { %v7390_v23 = vpop.eup %7389 }
 0xa92   : > { %v4571_v27 = vmul.f32 %v7390_v23, %v8466_v29 }
 0xa93   : > { %v3027_v38 = vpop.permute.xlu1 %3026  ;;  %v3017_v42 = vpop.permute.xlu0 %3016 }
 0xa94   : > { %3044 = vst.msk [vmem:[#allocation3 + $0x7] sm:$0x1] %vm3036_vm8, %v3027_v38  ;;  %v4579_v63 = vpack.c.bf16 %v4571_v27, %v4571_v27  ;;  %3039 = vst.msk [vmem:[#allocation3 + $0x2] sm:$0x1] %vm3036_vm8, %v3017_v42  ;;  %v7253_v38 = vld [vmem:[%s8975_s30 + $0x8] sm:$0xff]  }
 0xa95   : > { %v7392_v40 = vpop.eup %7391 }
 0xa96   : > { %7160 = vmatmul.mubr.msk.bf16.vlgmr.msra.gmra.mxu1 %vm1491_vm6, %v4580_v47  ;;  %7154 = vmatmul.mubr.msk.bf16.vlgmr.msra.gmra.mxu0 %vm1491_vm6, %v4579_v63  ;;  %v4573_v1 = vmul.f32 %v7392_v40, %v8470_v51 }
 0xa97   : > { %v4056_v55 = vpop.permute.xlu1 %4055  ;;  %7173 = vmatprep.mubr.msk.bf16.mxu1 %vm7442_vm1, %v7441_v9  ;;  %7164 = vmatpush3.bf16.msra.mxu0 %v4924_v50  ;;  %v3021_v29 = vpop.permute.xlu0 %3020  ;;  %v7254_v50 = vld [vmem:[%s8975_s30] sm:$0xff]  }
 0xa98   : > { %4079 = vst.msk [vmem:[#allocation3 + $0x1] sm:$0x1] %vm4077_vm9, %v4056_v55  ;;  %7165 = vmatprep.mubr.msk.bf16.mxu0 %vm7442_vm1, %v7441_v9  ;;  %7177 = vmatprep.subr.bf16.mxu0 %v7441_v9  ;;  %v4581_v61 = vpack.c.bf16 %v4573_v1, %v4573_v1 }
 0xa99   : > { %3041 = vst.msk [vmem:[#allocation3 + $0x4] sm:$0x1] %vm3036_vm8, %v3021_v29  ;;  %7170 = vmatpush3.bf16.msra.mxu1 %v7253_v38 }
 0xa9a   : > { %7171 = vmatprep.subr.bf16.mxu1 %v7441_v9 }
 0xa9b   : > { %v4060_v31 = vpop.permute.xlu1 %4059  ;;  %v3025_v17 = vpop.permute.xlu0 %3024 }
 0xa9c   : > { %4081 = vst.msk [vmem:[#allocation3 + $0x3] sm:$0x1] %vm4077_vm9, %v4060_v31 }
 0xa9d   : > { %3043 = vst.msk [vmem:[#allocation3 + $0x6] sm:$0x1] %vm3036_vm8, %v3025_v17  ;;  %7172 = vmatpush3.bf16.msra.mxu1 %v7254_v50 }
 0xa9e   : > { %7166 = vmatmul.mubr.msk.bf16.vlgmr.msra.gmra.mxu0 %vm1491_vm6, %v4581_v61  ;;  %7185 = vmatprep.subr.bf16.mxu1 %v7441_v9 }
 0xa9f   : > { %v4064_v39 = vpop.permute.xlu1 %4063  ;;  %v4054_v37 = vpop.permute.xlu0 %4053  ;;  %7181 = vmatprep.mubr.msk.bf16.mxu0 %vm7442_vm1, %v7441_v9 }
 0xaa0   : > { %4083 = vst.msk [vmem:[#allocation3 + $0x5] sm:$0x1] %vm4077_vm9, %v4064_v39  ;;  %4078 = vst.msk [vmem:[#allocation3] sm:$0x1] %vm4077_vm9, %v4054_v37 }
 0xaa3   : > { %v4068_v51 = vpop.permute.xlu1 %4067  ;;  %v4058_v12 = vpop.permute.xlu0 %4057 }
 0xaa4   : > { %4085 = vst.msk [vmem:[#allocation3 + $0x7] sm:$0x1] %vm4077_vm9, %v4068_v51  ;;  %4080 = vst.msk [vmem:[#allocation3 + $0x2] sm:$0x1] %vm4077_vm9, %v4058_v12 }
 0xaa7   : > { %v4062_v0 = vpop.permute.xlu0 %4061 }
 0xaa8   : > { %4082 = vst.msk [vmem:[#allocation3 + $0x4] sm:$0x1] %vm4077_vm9, %v4062_v0 }
 0xaab   : > { %v4066_v26 = vpop.permute.xlu0 %4065 }
 0xaac   : > { %4084 = vst.msk [vmem:[#allocation3 + $0x6] sm:$0x1] %vm4077_vm9, %v4066_v26 }
 0xb11   : > { %v4624_v11 = vpop.f32.mrf.mxu1 }
 0xb12   : > { %v4966_v43 = vpack.c.bf16 %v4624_v11, %v4624_v11 }
 0xb13   : > { %v7125_v21 = vpop.f32.mrf.mxu1 }
 0xb14   : > { %v4988_v4 = vrot.slane %v4966_v43, %v7664_v44 }
 0xb15   : > { %v4627_v33 = vpop.f32.mrf.mxu1 }
 0xb16   : > { %v4995_v56 = vrot.slane %v4988_v4, %v7664_v44 }
 0xb17   : > { %v7126_v19 = vpop.f32.mrf.mxu1 }
 0xb18   : > { %5094 = vrot.lane.b32.xlu0 %v4995_v56, %s7458_s15 }
 0xb19   : > { %v4720_v46 = vpop.f32.mrf.mxu1 }
 0xb1a   : > { %v4672_v54 = vpop.f32.mrf.mxu0  ;;  %v4968_v58 = vpack.c.bf16 %v4720_v46, %v4720_v46 }
 0xb1b   : > { %v4967_v53 = vpack.c.bf16 %v4672_v54, %v4672_v54  ;;  %v7137_v14 = vpop.f32.mrf.mxu1 }
 0xb1c   : > { %v5016_v7 = vrot.slane %v4968_v58, %v7664_v44  ;;  %v7131_v16 = vpop.f32.mrf.mxu0 }
 0xb1d   : > { %v5002_v2 = vrot.slane %v4967_v53, %v7664_v44  ;;  %v4723_v60 = vpop.f32.mrf.mxu1 }
 0xb1e   : > { %v5023_v20 = vrot.slane %v5016_v7, %v7664_v44  ;;  %v4675_v30 = vpop.f32.mrf.mxu0 }
 0xb1f   : > { %v5009_v24 = vrot.slane %v5002_v2, %v7664_v44  ;;  %v7138_v3 = vpop.f32.mrf.mxu1 }
 0xb20   : > { %v7132_v10 = vpop.f32.mrf.mxu0  ;;  %5098 = vrot.lane.b32.xlu0 %v5023_v20, %s7458_s15 }
 0xb21   : > { %5096 = vrot.lane.b32.xlu1 %v5009_v24, %s7458_s15 }
 0xb22   : > { %v4768_v49 = vpop.f32.mrf.mxu0 }
 0xb23   : > { %v4969_v36 = vpack.c.bf16 %v4768_v49, %v4768_v49 }
 0xb24   : > { %v7143_v48 = vpop.f32.mrf.mxu0 }
 0xb25   : > { %v5030_v8 = vrot.slane %v4969_v36, %v7664_v44 }
 0xb26   : > { %v4771_v5 = vpop.f32.mrf.mxu0 }
 0xb27   : > { %v5037_v35 = vrot.slane %v5030_v8, %v7664_v44 }
 0xb28   : > { %v7144_v52 = vpop.f32.mrf.mxu0 }
 0xb29   : > { %5100 = vrot.lane.b32.xlu1 %v5037_v35, %s7458_s15  ;;  %v6601_v52 = vld [vmem:[%s8976_s21] ss:$0 sm:$0xff] }
 0xb4e   : > { %v4816_v25 = vpop.f32.mrf.mxu1 }
 0xb4f   : > { %v4970_v62 = vpack.c.bf16 %v4816_v25, %v4816_v25 }
 0xb50   : > { %v7149_v6 = vpop.f32.mrf.mxu1 }
 0xb51   : > { %v5044_v57 = vrot.slane %v4970_v62, %v7664_v44 }
 0xb52   : > { %v4819_v15 = vpop.f32.mrf.mxu1 }
 0xb53   : > { %v5051_v59 = vrot.slane %v5044_v57, %v7664_v44 }
 0xb54   : > { %v7150_v41 = vpop.f32.mrf.mxu1 }
 0xb55   : > { %5102 = vrot.lane.b32.xlu0 %v5051_v59, %s7458_s15 }
 0xb56   : > { %v4912_v18 = vpop.f32.mrf.mxu1  ;;  %v4864_v34 = vpop.f32.mrf.mxu0 }
 0xb57   : > { %v4972_v32 = vpack.c.bf16 %v4912_v18, %v4912_v18  ;;  %v4971_v45 = vpack.c.bf16 %v4864_v34, %v4864_v34 }
 0xb58   : > { %v7161_v13 = vpop.f32.mrf.mxu1  ;;  %v7155_v27 = vpop.f32.mrf.mxu0 }
 0xb59   : > { %v5072_v23 = vrot.slane %v4972_v32, %v7664_v44  ;;  %v5058_v47 = vrot.slane %v4971_v45, %v7664_v44  ;;  %v7409_v45 = vld [vmem:[#allocation2] sm:$0x3] }
 0xb5a   : > { %v4915_v42 = vpop.f32.mrf.mxu1  ;;  %v4867_v40 = vpop.f32.mrf.mxu0 }
 0xb5b   : > { %v5079_v63 = vrot.slane %v5072_v23, %v7664_v44  ;;  %v5065_v55 = vrot.slane %v5058_v47, %v7664_v44  ;;  %v7410_v23 = vld [vmem:[#allocation2 + $0x2] sm:$0x3]  ;;  %v7411_v42 = vld [vmem:[#allocation2 + $0x4] sm:$0x3]  ;;  %v7412_v40 = vld [vmem:[#allocation2 + $0x6] sm:$0x3] }
 0xb5c   : > { %v7162_v29 = vpop.f32.mrf.mxu1  ;;  %v7156_v1 = vpop.f32.mrf.mxu0 }
 0xb5d   : > { %5106 = vrot.lane.b32.xlu0 %v5079_v63, %s7458_s15  ;;  %5104 = vrot.lane.b32.xlu1 %v5065_v55, %s7458_s15 }
 0xb5e   : > { %v4960_v31 = vpop.f32.mrf.mxu0 }
 0xb5f   : > { %v4973_v17 = vpack.c.bf16 %v4960_v31, %v4960_v31 }
 0xb60   : > { %v7167_v61 = vpop.f32.mrf.mxu0 }
 0xb61   : > { %v5086_v39 = vrot.slane %v4973_v17, %v7664_v44  ;;  %v7413_v61 = vld [vmem:[#allocation2 + $0x8] sm:$0x3] }
 0xb62   : > { %v4963_v37 = vpop.f32.mrf.mxu0 }
 0xb63   : > { %v5093_v51 = vrot.slane %v5086_v39, %v7664_v44  ;;  %v7414_v37 = vld [vmem:[#allocation2 + $0xa] sm:$0x3] }
 0xb64   : > { %v7168_v12 = vpop.f32.mrf.mxu0 }
 0xb65   : > { %5108 = vrot.lane.b32.xlu1 %v5093_v51, %s7458_s15  ;;  %v7415_v12 = vld [vmem:[#allocation2 + $0xc] sm:$0x3] }
 0xb8a   : > { %v5095_v0 = vpop.permute.xlu0 %5094 }
 0xb8b   : > { %5119 = vst.msk [vmem:[#allocation3] sm:$0x1] %vm5118_vm10, %v5095_v0 }
 0xb92   : > { %v5099_v26 = vpop.permute.xlu0 %5098  ;;  %v5127_v53 = vld [vmem:[#allocation3] sm:$0x1] }
 0xb93   : > { %5121 = vst.msk [vmem:[#allocation3 + $0x2] sm:$0x1] %vm5118_vm10, %v5099_v26  ;;  %v5097_v11 = vpop.permute.xlu1 %5096  ;;  %v7416_v26 = vld [vmem:[#allocation2 + $0xe] sm:$0x3] }
 0xb94   : > { %5120 = vst.msk [vmem:[#allocation3 + $0x1] sm:$0x1] %vm5118_vm10, %v5097_v11 }
 0xb9a   : > { %v5129_v54 = vld [vmem:[#allocation3 + $0x2] sm:$0x1] }
 0xb9b   : > { %v5101_v43 = vpop.permute.xlu1 %5100  ;;  %v5128_v46 = vld [vmem:[#allocation3 + $0x1] sm:$0x1] }
 0xb9c   : > { %5122 = vst.msk [vmem:[#allocation3 + $0x3] sm:$0x1] %vm5118_vm10, %v5101_v43  ;;  %v5154_v7 = vcombine.low %v5127_v53, %v5128_v46 }
 0xb9e   : > { %v5164_v3 = vrot.slane %v5154_v7, %v7664_v44 }
 0xba3   : > { %v5130_v19 = vld [vmem:[#allocation3 + $0x3] sm:$0x1] }
 0xba4   : > { %v5155_v58 = vcombine.low %v5129_v54, %v5130_v19 }
 0xba6   : > { %v5171_v60 = vrot.slane %v5155_v58, %v7664_v44 }
 0xba8   : > { %v5186_v36 = vcombine.low %v5164_v3, %v5171_v60  ;;  %v7461_v60 = vmov 1414812756  }
 0xbaa   : > { %v5194_v8 = vrot.slane %v5186_v36, %v7664_v44 }
 0xbc7   : > { %v5103_v21 = vpop.permute.xlu0 %5102 }
 0xbc8   : > { %5123 = vst.msk [vmem:[#allocation3 + $0x4] sm:$0x1] %vm5118_vm10, %v5103_v21 }
 0xbcf   : > { %v5107_v4 = vpop.permute.xlu0 %5106  ;;  %v5105_v33 = vpop.permute.xlu1 %5104  ;;  %v5131_v16 = vld [vmem:[#allocation3 + $0x4] sm:$0x1] }
 0xbd0   : > { %5125 = vst.msk [vmem:[#allocation3 + $0x6] sm:$0x1] %vm5118_vm10, %v5107_v4  ;;  %5124 = vst.msk [vmem:[#allocation3 + $0x5] sm:$0x1] %vm5118_vm10, %v5105_v33 }
 0xbd7   : > { %v5109_v56 = vpop.permute.xlu1 %5108  ;;  %v5132_v14 = vld [vmem:[#allocation3 + $0x5] sm:$0x1]  ;;  %v5133_v20 = vld [vmem:[#allocation3 + $0x6] sm:$0x1] }
 0xbd8   : > { %5126 = vst.msk [vmem:[#allocation3 + $0x7] sm:$0x1] %vm5118_vm10, %v5109_v56  ;;  %v5156_v2 = vcombine.low %v5131_v16, %v5132_v14  ;;  %v7459_v14 = vmov 269488144   ;;  %v7460_v16 = vmov 842150450  }
 0xbd9   : > { %v5369_v7 = vunpack.c.l.s4 %v7459_v14 }
 0xbda   : > { %v5178_v10 = vrot.slane %v5156_v2, %v7664_v44  ;;  %v5376_v2 = vunpack.c.l.s4 %v7460_v16 }
 0xbdb   : > { %v5370_v3 = vunpack.c.0.s8 %v5369_v7  ;;  %v6605_v7 = vld [vmem:[%s8977_s16] ss:$0 sm:$0xff] }
 0xbdf   : > { %v5134_v30 = vld [vmem:[#allocation3 + $0x7] sm:$0x1] }
 0xbe0   : > { %v5157_v24 = vcombine.low %v5133_v20, %v5134_v30  ;;  %v5383_v20 = vunpack.c.l.s4 %v7461_v60  ;;  %v7462_v30 = vmov 1987475062   ;;  %v5583_v60 = vcombine.high %v6605_v7, %v6605_v7 }
 0xbe2   : > { %v5185_v49 = vrot.slane %v5157_v24, %v7664_v44  ;;  %v5390_v24 = vunpack.c.l.s4 %v7462_v30  ;;  %v5590_v30 = vrot.slane %v6605_v7, %v7649_v28  ;;  %v7257_v7 = vld [vmem:[%s7597_s28 + $0x38] sm:$0xff]  }
 0xbe4   : > { %v5187_v48 = vcombine.low %v5178_v10, %v5185_v49  ;;  %v5377_v10 = vunpack.c.0.s8 %v5376_v2  ;;  %v5384_v49 = vunpack.c.0.s8 %v5383_v20  ;;  %v5391_v36 = vunpack.c.0.s8 %v5390_v24  ;;  %v6606_v2 = vld [vmem:[%s8978_s26] ss:$0 sm:$0xff] }
 0xbe5   : > { %v5617_v20 = vcombine.high %v6606_v2, %v6606_v2  ;;  %v5597_v24 = vrot.slane %v5583_v60, %v7649_v28  ;;  %v7260_v60 = vld [vmem:[%s7597_s28 + $0x20] sm:$0xff]  }
 0xbe6   : > { %v5201_v5 = vrot.slane %v5187_v48, %v7664_v44  ;;  %v8679_v48 = vsub.s32 %v5370_v3, %v7645_v22  ;;  %v5624_v3 = vrot.slane %v6606_v2, %v7649_v28  ;;  %v7259_v2 = vld [vmem:[%s7597_s28 + $0x28] sm:$0xff]  }
 0xbe8   : > { %v5202_v35 = vcombine.low %v5194_v8, %v5201_v5  ;;  %v8682_v8 = vsub.s32 %v5377_v10, %v7645_v22  ;;  %v8685_v5 = vsub.s32 %v5384_v49, %v7645_v22  ;;  %v5631_v10 = vrot.slane %v5617_v20, %v7649_v28  ;;  %v7261_v20 = vld [vmem:[%s7597_s28 + $0x18] sm:$0xff]  }
 0xbea   : > { %7174 = vmatmul.mubr.msk.bf16.vlgmr.msra.gmra.mxu1 %vm746_vm2, %v5202_v35  ;;  %v8688_v35 = vsub.s32 %v5391_v36, %v7645_v22  ;;  %v5598_v36 = vcombine.high %v5590_v30, %v5590_v30 }
 0xbeb   : > { %7201 = vmatprep.mubr.msk.bf16.mxu1 %vm7442_vm1, %v7441_v9  ;;  %7186 = vmatpush3.bf16.msra.mxu1 %v7257_v7 }
 0xbec   : > { %7187 = vmatprep.subr.bf16.mxu1 %v7441_v9 }
 0xcaa   : > { %v5252_v25 = vpop.f32.mrf.mxu1 }
 0xcab   : > { %v5253_v62 = vadd.f32 %v6601_v52, %v5252_v25 }
 0xcac   : > { %v7175_v6 = vpop.f32.mrf.mxu1 }
 0xcad   : > { %v5261_v57 = vcombine.high %v5253_v62, %v5253_v62  ;;  %v5268_v15 = vrot.slane %v5253_v62, %v7649_v28 }
 0xcae   : > { %v5255_v59 = vpop.f32.mrf.mxu1 }
 0xcaf   : > { %v5275_v44 = vrot.slane %v5261_v57, %v7649_v28  ;;  %v5276_v41 = vcombine.high %v5268_v15, %v5268_v15  ;;  %v5256_v18 = vadd.f32 %v6601_v52, %v5255_v59  ;;  %v5303_v13 = vadd.f32 %v7409_v45, %v5268_v15 }
 0xcb0   : > { %v7176_v34 = vpop.f32.mrf.mxu1 }
 0xcb1   : > { %v5277_v32 = vcombine.high %v5275_v44, %v5275_v44  ;;  %v5304_v27 = vadd.f32 %v7410_v23, %v5276_v41  ;;  %v5278_v38 = vcombine.high %v5256_v18, %v5256_v18  ;;  %v5285_v47 = vrot.slane %v5256_v18, %v7649_v28 }
 0xcb2   : > { %v5305_v63 = vadd.f32 %v7411_v42, %v5275_v44 }
 0xcb3   : > { %v5306_v50 = vadd.f32 %v7412_v40, %v5277_v32  ;;  %v5321_v55 = vcombine.low %v5303_v13, %v5304_v27  ;;  %v5292_v29 = vrot.slane %v5278_v38, %v7649_v28  ;;  %v5293_v1 = vcombine.high %v5285_v47, %v5285_v47 }
 0xcb4   : > { %v5307_v39 = vadd.f32 %v7413_v61, %v5285_v47 }
 0xcb5   : > { %v5294_v31 = vcombine.high %v5292_v29, %v5292_v29  ;;  %v5322_v17 = vcombine.low %v5305_v63, %v5306_v50  ;;  %v5308_v51 = vadd.f32 %v7414_v37, %v5293_v1  ;;  %v5309_v0 = vadd.f32 %v7415_v12, %v5292_v29 }
 0xcb6   : > { %v5329_v43 = vrot.slane %v5321_v55, %v7649_v28 }
 0xcb7   : > { %v5310_v11 = vadd.f32 %v7416_v26, %v5294_v31  ;;  %v5336_v21 = vrot.slane %v5322_v17, %v7649_v28  ;;  %v5338_v4 = vcombine.low %v5307_v39, %v5308_v51 }
 0xcb9   : > { %v5337_v33 = vcombine.low %v5329_v43, %v5336_v21  ;;  %v5339_v56 = vcombine.low %v5309_v0, %v5310_v11  ;;  %v5346_v46 = vrot.slane %v5338_v4, %v7649_v28 }
 0xcbb   : > { %v5357_v19 = vsel %vm746_vm2, %v5337_v33, 0.0  ;;  %v5353_v54 = vrot.slane %v5339_v56, %v7649_v28  ;;  %v7255_v56 = vld [vmem:[%s7587_s1 + $0x8] sm:$0xff]  }
 0xcbc   : > { %5358 = vadd.xlane.f32.xlu0 %v5357_v19  ;;  %7178 = vmatpush3.bf16.msra.mxu0 %v7255_v56  ;;  %v7256_v19 = vld [vmem:[%s7587_s1] sm:$0xff]  }
 0xcbd   : > { %v5354_v58 = vcombine.low %v5346_v46, %v5353_v54  ;;  %7179 = vmatprep.subr.bf16.mxu0 %v7441_v9 }
 0xcbf   : > { %v5360_v53 = vsel %vm746_vm2, %v5354_v58, 0.0 }
 0xcc0   : > { %5361 = vadd.xlane.f32.xlu1 %v5360_v53  ;;  %7180 = vmatpush3.bf16.msra.mxu0 %v7256_v19 }
 0xd45   : > { %v5359_v52 = vpop.xlane.xlu0 %5358 }
 0xd46   : > { %v5364_v25 = vmul.f32 0.03125, %v5359_v52  ;;  %v5599_v52 = vcombine.high %v5597_v24, %v5597_v24 }
 0xd48   : > { %v5374_v62 = vrot.slane %v5364_v25, %v8679_v48  ;;  %v5381_v6 = vrot.slane %v5364_v25, %v8682_v8  ;;  %v5388_v57 = vrot.slane %v5364_v25, %v8685_v5  ;;  %v5395_v15 = vrot.slane %v5364_v25, %v8688_v35 }
 0xd49   : > { %v5362_v59 = vpop.xlane.xlu1 %5361 }
 0xd4a   : > { %v8694_v44 = vsub.f32 %v5303_v13, %v5374_v62  ;;  %v8696_v41 = vsub.f32 %v5304_v27, %v5381_v6  ;;  %v8698_v18 = vsub.f32 %v5305_v63, %v5388_v57  ;;  %v8700_v34 = vsub.f32 %v5306_v50, %v5395_v15 }
 0xd4b   : > { %v5365_v22 = vmul.f32 0.03125, %v5362_v59  ;;  %v5632_v15 = vcombine.high %v5624_v3, %v5624_v3  ;;  %v5633_v59 = vcombine.high %v5631_v10, %v5631_v10 }
 0xd4c   : > { %v5440_v32 = vmul.f32 %v8694_v44, %v8694_v44  ;;  %v5441_v45 = vmul.f32 %v8696_v41, %v8696_v41  ;;  %v5442_v23 = vmul.f32 %v8698_v18, %v8698_v18  ;;  %v5443_v13 = vmul.f32 %v8700_v34, %v8700_v34 }
 0xd4d   : > { %v5402_v27 = vrot.slane %v5365_v22, %v8679_v48  ;;  %v5409_v38 = vrot.slane %v5365_v22, %v8682_v8  ;;  %v5416_v47 = vrot.slane %v5365_v22, %v8685_v5  ;;  %v5423_v42 = vrot.slane %v5365_v22, %v8688_v35 }
 0xd4e   : > { %v5456_v63 = vcombine.low %v5440_v32, %v5441_v45  ;;  %v5457_v40 = vcombine.low %v5442_v23, %v5443_v13 }
 0xd4f   : > { %v8714_v50 = vsub.f32 %v5307_v39, %v5402_v27  ;;  %v8716_v55 = vsub.f32 %v5308_v51, %v5409_v38  ;;  %v8718_v29 = vsub.f32 %v5309_v0, %v5416_v47  ;;  %v8720_v1 = vsub.f32 %v5310_v11, %v5423_v42 }
 0xd50   : > { %v5464_v31 = vrot.slane %v5456_v63, %v7649_v28  ;;  %v5471_v17 = vrot.slane %v5457_v40, %v7649_v28 }
 0xd51   : > { %v5444_v61 = vmul.f32 %v8714_v50, %v8714_v50  ;;  %v5445_v37 = vmul.f32 %v8716_v55, %v8716_v55  ;;  %v5446_v39 = vmul.f32 %v8718_v29, %v8718_v29  ;;  %v5447_v51 = vmul.f32 %v8720_v1, %v8720_v1 }
 0xd52   : > { %v5472_v12 = vcombine.low %v5464_v31, %v5471_v17 }
 0xd53   : > { %v5473_v0 = vcombine.low %v5444_v61, %v5445_v37  ;;  %v5474_v26 = vcombine.low %v5446_v39, %v5447_v51 }
 0xd54   : > { %v5492_v11 = vsel %vm746_vm2, %v5472_v12, 0.0 }
 0xd55   : > { %5493 = vadd.xlane.f32.xlu0 %v5492_v11  ;;  %v5481_v43 = vrot.slane %v5473_v0, %v7649_v28  ;;  %v5488_v21 = vrot.slane %v5474_v26, %v7649_v28 }
 0xd57   : > { %v5489_v4 = vcombine.low %v5481_v43, %v5488_v21 }
 0xd59   : > { %v5495_v33 = vsel %vm746_vm2, %v5489_v4, 0.0 }
 0xd5a   : > { %5496 = vadd.xlane.f32.xlu0 %v5495_v33 }
 0xdde   : > { %v5494_v46 = vpop.xlane.xlu0 %5493 }
 0xddf   : > { %v5498_v54 = vmul.f32 0.03125, %v5494_v46 }
 0xde1   : > { %v5500_v58 = vadd.f32 1e-05, %v5498_v54 }
 0xde3   : > { %7393 = vrsqrt.f32 %v5500_v58  ;;  %v5497_v53 = vpop.xlane.xlu0 %5496 }
 0xde4   : > { %v5499_v14 = vmul.f32 0.03125, %v5497_v53 }
 0xde6   : > { %v5501_v16 = vadd.f32 1e-05, %v5499_v14 }
 0xde8   : > { %7395 = vrsqrt.f32 %v5501_v16  ;;  %v7258_v16 = vld [vmem:[%s7597_s28 + $0x30] sm:$0xff]  }
 0xde9   : > { %7188 = vmatpush3.bf16.msra.mxu1 %v7258_v16 }
 0xdea   : > { %7189 = vmatprep.subr.bf16.mxu1 %v7441_v9 }
 0xded   : > { %7190 = vmatpush3.bf16.msra.mxu1 %v7259_v2 }
 0xdee   : > { %7191 = vmatprep.subr.bf16.mxu1 %v7441_v9 }
 0xdf0   : > { %v7394_v49 = vpop.eup %7393 }
 0xdf1   : > { %v5512_v25 = vrot.slane %v7394_v49, %v8679_v48  ;;  %v5519_v62 = vrot.slane %v7394_v49, %v8682_v8  ;;  %v5526_v6 = vrot.slane %v7394_v49, %v8685_v5  ;;  %v5533_v57 = vrot.slane %v7394_v49, %v8688_v35  ;;  %7192 = vmatpush3.bf16.msra.mxu1 %v7260_v60 }
 0xdf2   : > { %7193 = vmatprep.subr.bf16.mxu1 %v7441_v9 }
 0xdf3   : > { %v5570_v22 = vmul.f32 %v5512_v25, %v8694_v44  ;;  %v5571_v32 = vmul.f32 %v5519_v62, %v8696_v41  ;;  %v5572_v45 = vmul.f32 %v5526_v6, %v8698_v18  ;;  %v5573_v23 = vmul.f32 %v5533_v57, %v8700_v34 }
 0xdf5   : > { %v7396_v13 = vpop.eup %7395  ;;  %v5604_v27 = vmul.f32 %v5590_v30, %v5570_v22  ;;  %v5605_v38 = vmul.f32 %v5598_v36, %v5571_v32  ;;  %v5606_v47 = vmul.f32 %v5597_v24, %v5572_v45  ;;  %v5607_v42 = vmul.f32 %v5599_v52, %v5573_v23  ;;  %7194 = vmatpush3.bf16.msra.mxu1 %v7261_v20 }
 0xdf6   : > { %v5540_v63 = vrot.slane %v7396_v13, %v8679_v48  ;;  %v5547_v40 = vrot.slane %v7396_v13, %v8682_v8  ;;  %v5554_v31 = vrot.slane %v7396_v13, %v8685_v5  ;;  %v5561_v17 = vrot.slane %v7396_v13, %v8688_v35  ;;  %7195 = vmatprep.subr.bf16.mxu1 %v7441_v9 }
 0xdf7   : > { %v8765_v44 = vadd.f32 %v5624_v3, %v5604_v27  ;;  %v8767_v41 = vadd.f32 %v5632_v15, %v5605_v38  ;;  %v8769_v18 = vadd.f32 %v5631_v10, %v5606_v47  ;;  %v8771_v34 = vadd.f32 %v5633_v59, %v5607_v42 }
 0xdf8   : > { %v5574_v61 = vmul.f32 %v5540_v63, %v8714_v50  ;;  %v5575_v37 = vmul.f32 %v5547_v40, %v8716_v55  ;;  %v5576_v39 = vmul.f32 %v5554_v31, %v8718_v29  ;;  %v5577_v51 = vmul.f32 %v5561_v17, %v8720_v1 }
 0xdf9   : > { %v5658_v12 = vcombine.low %v8765_v44, %v8767_v41  ;;  %v5659_v0 = vcombine.low %v8769_v18, %v8771_v34 }
 0xdfa   : > { %v5608_v26 = vmul.f32 %v5590_v30, %v5574_v61  ;;  %v5609_v11 = vmul.f32 %v5598_v36, %v5575_v37  ;;  %v5610_v43 = vmul.f32 %v5597_v24, %v5576_v39  ;;  %v5611_v21 = vmul.f32 %v5599_v52, %v5577_v51  ;;  %v7262_v30 = vld [vmem:[%s7597_s28 + $0x10] sm:$0xff]   ;;  %v7263_v24 = vld [vmem:[%s7597_s28 + $0x8] sm:$0xff]  }
 0xdfb   : > { %v5666_v1 = vrot.slane %v5658_v12, %v7649_v28  ;;  %v5673_v33 = vrot.slane %v5659_v0, %v7649_v28  ;;  %7196 = vmatpush3.bf16.msra.mxu1 %v7262_v30 }
 0xdfc   : > { %v8781_v4 = vadd.f32 %v5624_v3, %v5608_v26  ;;  %v8783_v50 = vadd.f32 %v5632_v15, %v5609_v11  ;;  %v8785_v55 = vadd.f32 %v5631_v10, %v5610_v43  ;;  %v8787_v29 = vadd.f32 %v5633_v59, %v5611_v21  ;;  %7197 = vmatprep.subr.bf16.mxu1 %v7441_v9  ;;  %v7264_v3 = vld [vmem:[%s7597_s28] sm:$0xff]  }
 0xdfd   : > { %v5674_v58 = vcombine.low %v5666_v1, %v5673_v33  ;;  %v6607_v10 = vld [vmem:[%s627_s3] ss:$0 sm:$0xff] }
 0xdfe   : > { %v5675_v56 = vcombine.low %v8781_v4, %v8783_v50  ;;  %v5676_v19 = vcombine.low %v8785_v55, %v8787_v29 }
 0xdff   : > { %7198 = vmatpush3.bf16.msra.mxu1 %v7263_v24 }
 0xe00   : > { %v5683_v46 = vrot.slane %v5675_v56, %v7649_v28  ;;  %v5690_v54 = vrot.slane %v5676_v19, %v7649_v28  ;;  %7199 = vmatprep.subr.bf16.mxu1 %v7441_v9 }
 0xe02   : > { %v5691_v53 = vcombine.low %v5683_v46, %v5690_v54 }
 0xe03   : > { %7200 = vmatpush3.bf16.msra.mxu1 %v7264_v3 }
 0xe04   : > { %v5694_v14 = vpack.c.bf16 %v5691_v53, %v5674_v58 }
 0xe06   : > { %7182 = vmatmul.mubr.msk.bf16.vlgmr.msra.gmra.mxu0 %vm746_vm2, %v5694_v14 }
 0xec6   : > { %v5751_v49 = vpop.f32.mrf.mxu0 }
 0xec7   : > { %v5752_v36 = vadd.f32 %v6607_v10, %v5751_v49 }
 0xec8   : > { %v7183_v52 = vpop.f32.mrf.mxu0 }
 0xec9   : > { %v5760_v25 = vmul.f32 0.70710677, %v5752_v36  ;;  %v5758_v49 = vmul.f32 0.5, %v5752_v36 }
 0xeca   : > { %v5754_v62 = vpop.f32.mrf.mxu0 }
 0xecb   : > { %v5762_v6 = vand.u32 2147483647, %v5760_v25  ;;  %v5755_v57 = vadd.f32 %v6607_v10, %v5754_v62  ;;  %vm5802_vm11 = vcmp.lt.f32.partialorder %v5760_v25, 0.0 }
 0xecc   : > { %v7184_v15 = vpop.f32.mrf.mxu0 }
 0xecd   : > { %v5764_v59 = vmul.f32 0.3275911, %v5762_v6  ;;  %v5761_v22 = vmul.f32 0.70710677, %v5755_v57  ;;  %v5790_v13 = vsub.f32 0.0, %v5762_v6  ;;  %v5759_v52 = vmul.f32 0.5, %v5755_v57 }
 0xecf   : > { %v5766_v32 = vadd.f32 1.0, %v5764_v59  ;;  %v5763_v45 = vand.u32 2147483647, %v5761_v22  ;;  %v5792_v27 = vmul.f32 %v5790_v13, %v5762_v6  ;;  %vm5803_vm12 = vcmp.lt.f32.partialorder %v5761_v22, 0.0 }
 0xed1   : > { %7397 = vrcp.f32 %v5766_v32  ;;  %v5765_v9 = vmul.f32 0.3275911, %v5763_v45  ;;  %v5791_v38 = vsub.f32 0.0, %v5763_v45  ;;  %v5794_v63 = vmul.f32 1.442695, %v5792_v27 }
 0xed2   : > { %v6611_v32 = vld [vmem:[%s635_s14] ss:$0 sm:$0xff] }
 0xed3   : > { %v5767_v23 = vadd.f32 1.0, %v5765_v9  ;;  %v5793_v40 = vmul.f32 %v5791_v38, %v5763_v45 }
 0xed5   : > { %7399 = vrcp.f32 %v5767_v23  ;;  %v5796_v39 = vmul.f32 1.442695, %v5793_v40 }
 0xed6   : > { %7401 = vpow2.f32 %v5794_v63 }
 0xed7   : > { %7403 = vpow2.f32 %v5796_v39 }
 0xede   : > { %v7398_v47 = vpop.eup %7397 }
 0xedf   : > { %v5772_v42 = vmul.f32 1.0614054, %v7398_v47 }
 0xee1   : > { %v5774_v31 = vadd.f32 -1.4531521, %v5772_v42 }
 0xee2   : > { %v7400_v17 = vpop.eup %7399 }
 0xee3   : > { %v5776_v61 = vmul.f32 %v7398_v47, %v5774_v31  ;;  %v5773_v37 = vmul.f32 1.0614054, %v7400_v17  ;;  %v7402_v54 = vpop.eup %7401 }
 0xee4   : > { %v7404_v16 = vpop.eup %7403 }
 0xee5   : > { %v5778_v51 = vadd.f32 1.4214138, %v5776_v61  ;;  %v5775_v12 = vadd.f32 -1.4531521, %v5773_v37 }
 0xee7   : > { %v5780_v0 = vmul.f32 %v7398_v47, %v5778_v51  ;;  %v5777_v26 = vmul.f32 %v7400_v17, %v5775_v12 }
 0xee9   : > { %v5782_v11 = vadd.f32 -0.28449672, %v5780_v0  ;;  %v5779_v43 = vadd.f32 1.4214138, %v5777_v26 }
 0xeeb   : > { %v5784_v21 = vmul.f32 %v7398_v47, %v5782_v11  ;;  %v5781_v1 = vmul.f32 %v7400_v17, %v5779_v43 }
 0xeed   : > { %v5786_v33 = vadd.f32 0.2548296, %v5784_v21  ;;  %v5783_v56 = vadd.f32 -0.28449672, %v5781_v1 }
 0xeef   : > { %v5788_v19 = vmul.f32 %v7398_v47, %v5786_v33  ;;  %v5785_v46 = vmul.f32 %v7400_v17, %v5783_v56 }
 0xef1   : > { %v5798_v58 = vmul.f32 %v7402_v54, %v5788_v19  ;;  %v5787_v53 = vadd.f32 0.2548296, %v5785_v46 }
 0xef3   : > { %v5800_v14 = vsub.f32 1.0, %v5798_v58  ;;  %v5789_v7 = vmul.f32 %v7400_v17, %v5787_v53 }
 0xef5   : > { %v5804_v2 = vsub.f32 0.0, %v5800_v14  ;;  %v5799_v60 = vmul.f32 %v7404_v16, %v5789_v7 }
 0xef7   : > { %v5806_v20 = vsel %vm5802_vm11, %v5804_v2, %v5800_v14  ;;  %v5801_v30 = vsub.f32 1.0, %v5799_v60 }
 0xef8   : > { %v5808_v3 = vadd.f32 1.0, %v5806_v20 }
 0xef9   : > { %v5805_v24 = vsub.f32 0.0, %v5801_v30 }
 0xefa   : > { %v5810_v6 = vmul.f32 %v5808_v3, %v5758_v49 }
 0xefb   : > { %v5807_v10 = vsel %vm5803_vm12, %v5805_v24, %v5801_v30 }
 0xefc   : > { %v5809_v62 = vadd.f32 1.0, %v5807_v10 }
 0xefe   : > { %v5811_v15 = vmul.f32 %v5809_v62, %v5759_v52 }
 0xf00   : > { %v5828_v59 = vpack.c.bf16 %v5811_v15, %v5810_v6 }
 0xf02   : > { %7202 = vmatmul.mubr.bf16.vlgmr.msra.gmra.mxu1 %v5828_v59 }
 0xfc2   : > { %v5918_v45 = vpop.f32.mrf.mxu1 }
 0xfc3   : > { %v5919_v25 = vadd.f32 %v6611_v32, %v5918_v45 }
 0xfc4   : > { %v7203_v9 = vpop.f32.mrf.mxu1 }
 0xfc5   : > { %v5927_v23 = vcombine.high %v5919_v25, %v5919_v25  ;;  %v5934_v13 = vrot.slane %v5919_v25, %v7649_v28 }
 0xfc6   : > { %v5921_v22 = vpop.f32.mrf.mxu1 }
 0xfc7   : > { %v5941_v36 = vrot.slane %v5927_v23, %v7649_v28  ;;  %v5942_v57 = vcombine.high %v5934_v13, %v5934_v13  ;;  %v5922_v27 = vadd.f32 %v6611_v32, %v5921_v22  ;;  %v5969_v42 = vadd.f32 %v5934_v13, %v8765_v44 }
 0xfc8   : > { %v7204_v38 = vpop.f32.mrf.mxu1 }
 0xfc9   : > { %v5943_v47 = vcombine.high %v5941_v36, %v5941_v36  ;;  %v5970_v63 = vadd.f32 %v5942_v57, %v8767_v41  ;;  %v5944_v40 = vcombine.high %v5922_v27, %v5922_v27  ;;  %v5951_v31 = vrot.slane %v5922_v27, %v7649_v28 }
 0xfca   : > { %v5971_v17 = vadd.f32 %v5941_v36, %v8769_v18 }
 0xfcb   : > { %v5972_v61 = vadd.f32 %v5943_v47, %v8771_v34  ;;  %v5987_v37 = vcombine.low %v5969_v42, %v5970_v63  ;;  %v5958_v39 = vrot.slane %v5944_v40, %v7649_v28  ;;  %v5959_v51 = vcombine.high %v5951_v31, %v5951_v31 }
 0xfcc   : > { %v5973_v26 = vadd.f32 %v5951_v31, %v8781_v4 }
 0xfcd   : > { %v5960_v12 = vcombine.high %v5958_v39, %v5958_v39  ;;  %v5988_v0 = vcombine.low %v5971_v17, %v5972_v61  ;;  %v5974_v11 = vadd.f32 %v5959_v51, %v8783_v50  ;;  %v5975_v44 = vadd.f32 %v5958_v39, %v8785_v55 }
 0xfce   : > { %v5995_v43 = vrot.slane %v5987_v37, %v7649_v28 }
 0xfcf   : > { %v5976_v41 = vadd.f32 %v5960_v12, %v8787_v29  ;;  %v6002_v18 = vrot.slane %v5988_v0, %v7649_v28  ;;  %v6004_v21 = vcombine.low %v5973_v26, %v5974_v11 }
 0xfd1   : > { %v6003_v34 = vcombine.low %v5995_v43, %v6002_v18  ;;  %v6005_v1 = vcombine.low %v5975_v44, %v5976_v41  ;;  %v6012_v56 = vrot.slane %v6004_v21, %v7649_v28 }
 0xfd3   : > { %v6023_v33 = vsel %vm746_vm2, %v6003_v34, 0.0  ;;  %v6019_v19 = vrot.slane %v6005_v1, %v7649_v28 }
 0xfd4   : > { %6024 = vadd.xlane.f32.xlu1 %v6023_v33 }
 0xfd5   : > { %v6020_v4 = vcombine.low %v6012_v56, %v6019_v19 }
 0xfd7   : > { %v6026_v50 = vsel %vm746_vm2, %v6020_v4, 0.0 }
 0xfd8   : > { %6027 = vadd.xlane.f32.xlu0 %v6026_v50 }
0x105d   : > { %v6025_v55 = vpop.xlane.xlu1 %6024 }
0x105e   : > { %v6029_v29 = vmul.f32 0.03125, %v6025_v55 }
0x1060   : > { %v6039_v46 = vrot.slane %v6029_v29, %v8679_v48  ;;  %v6046_v54 = vrot.slane %v6029_v29, %v8682_v8  ;;  %v6053_v58 = vrot.slane %v6029_v29, %v8685_v5  ;;  %v6060_v53 = vrot.slane %v6029_v29, %v8688_v35 }
0x1061   : > { %v6028_v14 = vpop.xlane.xlu0 %6027 }
0x1062   : > { %v6097_v7 = vsub.f32 %v5969_v42, %v6039_v46  ;;  %v6098_v16 = vsub.f32 %v5970_v63, %v6046_v54  ;;  %v6099_v2 = vsub.f32 %v5971_v17, %v6053_v58  ;;  %v6100_v60 = vsub.f32 %v5972_v61, %v6060_v53 }
0x1063   : > { %v6030_v20 = vmul.f32 0.03125, %v6028_v14 }
0x1064   : > { %v6105_v30 = vmul.f32 %v6097_v7, %v6097_v7  ;;  %v6106_v24 = vmul.f32 %v6098_v16, %v6098_v16  ;;  %v6107_v3 = vmul.f32 %v6099_v2, %v6099_v2  ;;  %v6108_v10 = vmul.f32 %v6100_v60, %v6100_v60 }
0x1065   : > { %v6067_v49 = vrot.slane %v6030_v20, %v8679_v48  ;;  %v6074_v52 = vrot.slane %v6030_v20, %v8682_v8  ;;  %v6081_v62 = vrot.slane %v6030_v20, %v8685_v5  ;;  %v6088_v6 = vrot.slane %v6030_v20, %v8688_v35 }
0x1066   : > { %v6121_v15 = vcombine.low %v6105_v30, %v6106_v24  ;;  %v6122_v59 = vcombine.low %v6107_v3, %v6108_v10 }
0x1067   : > { %v8849_v32 = vsub.f32 %v5973_v26, %v6067_v49  ;;  %v8851_v45 = vsub.f32 %v5974_v11, %v6074_v52  ;;  %v8853_v25 = vsub.f32 %v5975_v44, %v6081_v62  ;;  %v8855_v9 = vsub.f32 %v5976_v41, %v6088_v6  ;;  %v6620_v26 = vld [vmem:[%s638_s17] ss:$0 sm:$0xff]  ;;  %s8979_s17 = sld [smem:[#allocation10_spill]] (!%p6622_p6) }
0x1068   : > { %v6129_v23 = vrot.slane %v6121_v15, %v7649_v28  ;;  %v6136_v13 = vrot.slane %v6122_v59, %v7649_v28  ;;  %v6621_v44 = vld [vmem:[%s641_s13] ss:$0 sm:$0xff]  ;;  %v6248_v41 = vcombine.high %v6620_v26, %v6620_v26  ;;  %v6255_v18 = vrot.slane %v6620_v26, %v7649_v28 }
0x1069   : > { %v6109_v22 = vmul.f32 %v8849_v32, %v8849_v32  ;;  %v6110_v36 = vmul.f32 %v8851_v45, %v8851_v45  ;;  %v6111_v57 = vmul.f32 %v8853_v25, %v8853_v25  ;;  %v6112_v27 = vmul.f32 %v8855_v9, %v8855_v9 }
0x106a   : > { %v6137_v38 = vcombine.low %v6129_v23, %v6136_v13  ;;  %v6282_v43 = vcombine.high %v6621_v44, %v6621_v44  ;;  %v6262_v21 = vrot.slane %v6248_v41, %v7649_v28  ;;  %v6289_v34 = vrot.slane %v6621_v44, %v7649_v28 }
0x106b   : > { %v6138_v47 = vcombine.low %v6109_v22, %v6110_v36  ;;  %v6139_v42 = vcombine.low %v6111_v57, %v6112_v27  ;;  %v6263_v56 = vcombine.high %v6255_v18, %v6255_v18 }
0x106c   : > { %v6157_v63 = vsel %vm746_vm2, %v6137_v38, 0.0  ;;  %v6296_v1 = vrot.slane %v6282_v43, %v7649_v28  ;;  %v6264_v19 = vcombine.high %v6262_v21, %v6262_v21  ;;  %v6297_v46 = vcombine.high %v6289_v34, %v6289_v34 }
0x106d   : > { %6158 = vadd.xlane.f32.xlu1 %v6157_v63  ;;  %v6146_v40 = vrot.slane %v6138_v47, %v7649_v28  ;;  %v6153_v31 = vrot.slane %v6139_v42, %v7649_v28 }
0x106e   : > { %v6298_v54 = vcombine.high %v6296_v1, %v6296_v1 }
0x106f   : > { %v6154_v17 = vcombine.low %v6146_v40, %v6153_v31 }
0x1071   : > { %v6160_v61 = vsel %vm746_vm2, %v6154_v17, 0.0 }
0x1072   : > { %6161 = vadd.xlane.f32.xlu0 %v6160_v61 }
0x10f6   : > { %v6159_v37 = vpop.xlane.xlu1 %6158 }
0x10f7   : > { %v6163_v39 = vmul.f32 0.03125, %v6159_v37 }
0x10f9   : > { %v6165_v51 = vadd.f32 1e-05, %v6163_v39 }
0x10fb   : > { %7405 = vrsqrt.f32 %v6165_v51  ;;  %v6162_v12 = vpop.xlane.xlu0 %6161 }
0x10fc   : > { %v6164_v0 = vmul.f32 0.03125, %v6162_v12 }
0x10fe   : > { %v6166_v11 = vadd.f32 1e-05, %v6164_v0 }
0x1100   : > { %7407 = vrsqrt.f32 %v6166_v11 }
0x1108   : > { %v7406_v33 = vpop.eup %7405 }
0x1109   : > { %v6177_v4 = vrot.slane %v7406_v33, %v8679_v48  ;;  %v6184_v50 = vrot.slane %v7406_v33, %v8682_v8  ;;  %v6191_v55 = vrot.slane %v7406_v33, %v8685_v5  ;;  %v6198_v29 = vrot.slane %v7406_v33, %v8688_v35 }
0x110b   : > { %v6235_v58 = vmul.f32 %v6177_v4, %v6097_v7  ;;  %v6236_v53 = vmul.f32 %v6184_v50, %v6098_v16  ;;  %v6237_v14 = vmul.f32 %v6191_v55, %v6099_v2  ;;  %v6238_v20 = vmul.f32 %v6198_v29, %v6100_v60 }
0x110d   : > { %v7408_v30 = vpop.eup %7407  ;;  %v6269_v28 = vmul.f32 %v6255_v18, %v6235_v58  ;;  %v6270_v24 = vmul.f32 %v6263_v56, %v6236_v53  ;;  %v6271_v3 = vmul.f32 %v6262_v21, %v6237_v14  ;;  %v6272_v10 = vmul.f32 %v6264_v19, %v6238_v20 }
0x110e   : > { %v6205_v49 = vrot.slane %v7408_v30, %v8679_v48  ;;  %v6212_v52 = vrot.slane %v7408_v30, %v8682_v8  ;;  %v6219_v62 = vrot.slane %v7408_v30, %v8685_v5  ;;  %v6226_v6 = vrot.slane %v7408_v30, %v8688_v35 }
0x110f   : > { %v6303_v15 = vadd.f32 %v6289_v34, %v6269_v28  ;;  %v6304_v59 = vadd.f32 %v6297_v46, %v6270_v24  ;;  %v6305_v7 = vadd.f32 %v6296_v1, %v6271_v3  ;;  %v6306_v16 = vadd.f32 %v6298_v54, %v6272_v10 }
0x1110   : > { %v6239_v2 = vmul.f32 %v6205_v49, %v8849_v32  ;;  %v6240_v60 = vmul.f32 %v6212_v52, %v8851_v45  ;;  %v6241_v23 = vmul.f32 %v6219_v62, %v8853_v25  ;;  %v6242_v13 = vmul.f32 %v6226_v6, %v8855_v9 }
0x1111   : > { %6312 = vst.msk [vmem:[#allocation2] sm:$0x3] %vm6311_vm13, %v6303_v15  ;;  %6313 = vst.msk [vmem:[#allocation2 + $0x2] sm:$0x3] %vm6311_vm13, %v6304_v59 }
0x1112   : > { %6314 = vst.msk [vmem:[#allocation2 + $0x4] sm:$0x3] %vm6311_vm13, %v6305_v7  ;;  %6315 = vst.msk [vmem:[#allocation2 + $0x6] sm:$0x3] %vm6311_vm13, %v6306_v16  ;;  %v6273_v48 = vmul.f32 %v6255_v18, %v6239_v2  ;;  %v6274_v8 = vmul.f32 %v6263_v56, %v6240_v60  ;;  %v6275_v5 = vmul.f32 %v6262_v21, %v6241_v23 }
0x1113   : > { %v6276_v35 = vmul.f32 %v6264_v19, %v6242_v13  ;;  %6323 = sbr.rel (%p6622_p6) target bundleno = 4380 (0x111c), region = 80 }
0x1114   : > { %v6307_v22 = vadd.f32 %v6289_v34, %v6273_v48  ;;  %v6308_v32 = vadd.f32 %v6297_v46, %v6274_v8  ;;  %v6309_v36 = vadd.f32 %v6296_v1, %v6275_v5 }
0x1115   : > { %v6310_v45 = vadd.f32 %v6298_v54, %v6276_v35 }
0x1116   : > { %6316 = vst.msk [vmem:[#allocation2 + $0x8] sm:$0x3] %vm6311_vm13, %v6307_v22  ;;  %6317 = vst.msk [vmem:[#allocation2 + $0xa] sm:$0x3] %vm6311_vm13, %v6308_v32 }
0x1117   : > { %6318 = vst.msk [vmem:[#allocation2 + $0xc] sm:$0x3] %vm6311_vm13, %v6309_v36  ;;  %6319 = vst.msk [vmem:[#allocation2 + $0xe] sm:$0x3] %vm6311_vm13, %v6310_v45 }
0x1118   : > { %6324 = vst.msk [vmem:[%s8979_s17] sm:$0x3] %vm6311_vm13, %v6303_v15  ;;  %6325 = vst.msk [vmem:[%s8979_s17 + $0x2] sm:$0x3] %vm6311_vm13, %v6304_v59 }
0x1119   : > { %6326 = vst.msk [vmem:[%s8979_s17 + $0x4] sm:$0x3] %vm6311_vm13, %v6305_v7  ;;  %6327 = vst.msk [vmem:[%s8979_s17 + $0x6] sm:$0x3] %vm6311_vm13, %v6306_v16 }
0x111a   : > { %6328 = vst.msk [vmem:[%s8979_s17 + $0x8] sm:$0x3] %vm6311_vm13, %v6307_v22  ;;  %6329 = vst.msk [vmem:[%s8979_s17 + $0xa] sm:$0x3] %vm6311_vm13, %v6308_v32 }
0x111b   : > { %6330 = vst.msk [vmem:[%s8979_s17 + $0xc] sm:$0x3] %vm6311_vm13, %v6309_v36  ;;  %6331 = vst.msk [vmem:[%s8979_s17 + $0xe] sm:$0x3] %vm6311_vm13, %v6310_v45 }
0x111c PF: > { %s8980_s15 = sld [smem:[#allocation5_spill]] }
0x111d   : > { %s8981_s25 = sld [smem:[#allocation4_spill]] }
0x111e   : > { %s8982_s26 = sld [smem:[#allocation6_spill]] }
0x1122   : > { %s23_s27 = sadd.s32 1, %s8980_s15  }
0x1123   : > { %p20_p7 = scmp.ge.s32.totalorder %s23_s27, 4  }
0x1125   :  { %22 = sbr.rel (!%p20_p7) target bundleno = 4 (0x4), region = 146 }

</bundles_post_ra>
